<compile_context>
chip_gen: v6e
topology: v6e:2x2x1
jax: 0.10.0
libtpu: 0.0.40
codegen_flags: <defaults>
</compile_context>

<pallas_src>
import functools

import jax
import jax.numpy as jnp
from jax import lax
from jax.experimental import pallas as pl
from jax.experimental.pallas import tpu as pltpu


def _round_up(n, m):
    return ((n + m - 1) // m) * m


def _bf16_softmax_ok():
    """bf16 VPU/EUP only exists on v6e and newer; keep f32 softmax on v5e and older."""
    try:
        kind = jax.devices()[0].device_kind.lower()
    except Exception:
        return False
    return not any(t in kind for t in ("v2", "v3", "v4", "v5"))


# ---------------------------------------------------------------------------
# Glue: PyTorch-compatible nn.Unfold emitted directly in token order
#       (B, L, C*K*K) with channel index c*K*K + ki*K + kj (PyTorch order).
#       Single NCHW->NHWC transpose, then strided slices in NHWC.
# ---------------------------------------------------------------------------
def unfold_tokens(x, K, S, P, D=1):
    B, C, H, W = x.shape
    xp = jnp.pad(x, ((0, 0), (0, 0), (P, P), (P, P)))
    xp = jnp.transpose(xp, (0, 2, 3, 1))                         # NHWC, once
    Hp, Wp = H + 2 * P, W + 2 * P
    Ho = (Hp - (D * (K - 1) + 1)) // S + 1
    Wo = (Wp - (D * (K - 1) + 1)) // S + 1
    patches = []
    for ki in range(K):
        for kj in range(K):
            p = xp[:, ki * D: ki * D + S * (Ho - 1) + 1: S,
                      kj * D: kj * D + S * (Wo - 1) + 1: S, :]   # (B, Ho, Wo, C)
            patches.append(p)
    col = jnp.stack(patches, axis=-1)                            # (B, Ho, Wo, C, K*K)
    tokens = col.reshape(B, Ho * Wo, C * K * K)                  # index = c*K*K + ki*K + kj
    return tokens, Ho, Wo


# ---------------------------------------------------------------------------
# Pallas kernel: Token_transformer forward for one batch element.
#   x:(Lp, Dp) zero-padded bf16 tokens -> out:(Lp, E) f32
#   (q,k,v) = LN1(x) @ W{q,k,v};  y = v + Proj(softmax(q k^T * scale) v) + bp
#   out = y + MLP(LN2(y));  num_heads = 1, mlp_ratio = 1.0
# ---------------------------------------------------------------------------
def token_transformer_kernel(x_ref, nd_ref, ne_ref, wqkv_ref, wpmm_ref,
                             o_ref,
                             qs_ref, kb_ref, vb_ref, y_ref,
                             *, scale, eps, inv_din, embed, l_true, l_pad,
                             tq, n_tiles, unroll, bf16_exp):
    f32, bf16 = jnp.float32, jnp.bfloat16
    E = embed

    # ---- LayerNorm 1 over the true feature dim Din (padded cols are exact zeros) ----
    x = x_ref[0].astype(f32)                                     # (Lp, Dp)
    g1 = nd_ref[0:1, :]
    b1 = nd_ref[1:2, :]
    mu = jnp.sum(x, axis=-1, keepdims=True) * inv_din            # mean over real Din
    ex2 = jnp.sum(x * x, axis=-1, keepdims=True) * inv_din       # E[x^2] over real Din
    var = ex2 - mu * mu
    h = (x - mu) * lax.rsqrt(var + eps) * g1 + b1                # padded cols stay 0
    hb = h.astype(bf16)

    # ---- fused q/k/v: single (Lp,Dp) x (Dp,3E) GEMM ----------------------------------
    qkv = jnp.dot(hb, wqkv_ref[...], preferred_element_type=f32)  # (Lp, 3E) f32
    q = qkv[:, 0:E]
    k = qkv[:, E:2 * E]
    v = qkv[:, 2 * E:3 * E]
    qs_ref[...] = (q * scale).astype(bf16)     # softmax scale folded into q
    kb_ref[...] = k.astype(bf16)
    vb_ref[...] = v.astype(bf16)               # bf16 copy, read in every q-tile
    y_ref[...] = v                             # f32 v doubles as the T2T residual slab

    # ---- operands hoisted out of the q-tile loop -------------------------------------
    wp = wpmm_ref[:, 0:E]                      # (E, E) bf16 projection weight
    bp = ne_ref[0:1, :]                        # (1, E) f32 projection bias

    if l_pad > l_true:                         # mask phantom (padded) key columns
        kmask = lax.broadcasted_iota(jnp.int32, (tq, l_pad), 1) < l_true
    else:
        kmask = None

    # ---- attention + projection + residual, tiled over q rows ------------------------
    def q_tile(i, carry):
        row = pl.multiple_of(i * tq, tq)
        rows = pl.ds(row, tq)
        qt = qs_ref[rows, :]                                              # (tq, E) bf16
        s = lax.dot_general(qt, kb_ref[...], (((1,), (1,)), ((), ())),
                            preferred_element_type=f32)                   # (tq, Lp)
        if kmask is not None:
            s = jnp.where(kmask, s, -jnp.inf)
        s = s - jnp.max(s, axis=-1, keepdims=True)
        if bf16_exp:                                                      # v6e / v7x
            p = jnp.exp(s.astype(bf16))
            den = jnp.sum(p, axis=-1, keepdims=True, dtype=f32)
        else:                                                             # v5e and older
            pf = jnp.exp(s)
            den = jnp.sum(pf, axis=-1, keepdims=True)
            p = pf.astype(bf16)
        r = pl.reciprocal(den, approx=True)                               # (tq, 1)
        a = jnp.dot(p, vb_ref[...], preferred_element_type=f32) * r       # deferred norm
        proj = jnp.dot(a.astype(bf16), wp, preferred_element_type=f32)    # (tq, E)
        y_ref[rows, :] = y_ref[rows, :] + proj + bp                       # v + Proj(attn)
        return carry

    lax.fori_loop(0, n_tiles, q_tile, 0, unroll=unroll)

    # ---- LayerNorm 2 (over E) + MLP (hidden = E, exact GELU) -------------------------
    g2 = ne_ref[1:2, :]
    b2 = ne_ref[2:3, :]
    bf1 = ne_ref[3:4, :]
    bf2 = ne_ref[4:5, :]
    w1 = wpmm_ref[:, E:2 * E]
    w2 = wpmm_ref[:, 2 * E:3 * E]

    y = y_ref[...]
    mu2 = jnp.mean(y, axis=-1, keepdims=True)
    var2 = jnp.mean((y - mu2) ** 2, axis=-1, keepdims=True)
    z = (y - mu2) * lax.rsqrt(var2 + eps) * g2 + b2
    m = jnp.dot(z.astype(bf16), w1, preferred_element_type=f32) + bf1
    m = 0.5 * m * (1.0 + lax.erf(m * 0.7071067811865476))
    m = jnp.dot(m.astype(bf16), w2, preferred_element_type=f32) + bf2
    o_ref[0] = y + m


def token_transformer(tokens, nd, ne, wqkv, wpmm, *, embed_dim, din, l_true):
    """tokens: (B, Lp, Dp) bf16 (Dp, Lp padded to 128) -> (B, Lp, embed_dim) f32."""
    B, Lp, Dp = tokens.shape
    E = embed_dim
    scale = float(E) ** -0.5          # head_dim = in_dim // num_heads = embed_dim (heads=1)
    eps = 1e-5                        # PyTorch LayerNorm default
    tq = 256 if (Lp % 256 == 0 and Lp <= 4096) else 128   # Lp is a multiple of 128
    n_tiles = Lp // tq
    unroll = n_tiles if n_tiles <= 8 else 4

    kernel = functools.partial(
        token_transformer_kernel,
        scale=scale, eps=eps, inv_din=1.0 / float(din), embed=E,
        l_true=l_true, l_pad=Lp, tq=tq, n_tiles=n_tiles, unroll=unroll,
        bf16_exp=_bf16_softmax_ok())

    return pl.pallas_call(
        kernel,
        out_shape=jax.ShapeDtypeStruct((B, Lp, E), jnp.float32),
        grid=(B,),
        in_specs=[
            pl.BlockSpec((1, Lp, Dp), lambda b: (b, 0, 0)),   # tokens (bf16, zero-padded)
            pl.BlockSpec((2, Dp), lambda b: (0, 0)),          # [g1; b1]  (f32, 0-padded)
            pl.BlockSpec((8, E), lambda b: (0, 0)),           # [bp; g2; b2; bf1; bf2; 0..]
            pl.BlockSpec((Dp, 3 * E), lambda b: (0, 0)),      # Wq|Wk|Wv (bf16, 0-pad rows)
            pl.BlockSpec((E, 3 * E), lambda b: (0, 0)),       # Wp|W1|W2 (bf16)
        ],
        out_specs=pl.BlockSpec((1, Lp, E), lambda b: (b, 0, 0)),
        scratch_shapes=[
            pltpu.VMEM((Lp, E), jnp.bfloat16),   # q * scale (bf16)
            pltpu.VMEM((Lp, E), jnp.bfloat16),   # k (bf16)
            pltpu.VMEM((Lp, E), jnp.bfloat16),   # v (bf16, hoisted cast)
            pltpu.VMEM((Lp, E), jnp.float32),    # y: f32 v, then v + Proj(attn) + bp
        ],
        compiler_params=pltpu.CompilerParams(
            dimension_semantics=("parallel",)),
    )(tokens, nd, ne, wqkv, wpmm)


# ---------------------------------------------------------------------------
# Parameter handling
# ---------------------------------------------------------------------------
def init_params(key, in_chans, k, embed_dim):
    din = in_chans * k * k
    E = embed_dim
    ks = jax.random.split(key, 9)
    std = 0.02
    # weights stored as (in, out): y = x @ W + b   (W == W_pytorch.T)
    wq = jax.random.normal(ks[0], (din, E), jnp.float32) * std
    wk = jax.random.normal(ks[1], (din, E), jnp.float32) * std
    wv = jax.random.normal(ks[2], (din, E), jnp.float32) * std
    wp = jax.random.normal(ks[3], (E, E), jnp.float32) * std
    bp = jax.random.normal(ks[4], (1, E), jnp.float32) * std
    w1 = jax.random.normal(ks[5], (E, E), jnp.float32) * std
    bf1 = jax.random.normal(ks[6], (1, E), jnp.float32) * std
    w2 = jax.random.normal(ks[7], (E, E), jnp.float32) * std
    bf2 = jax.random.normal(ks[8], (1, E), jnp.float32) * std
    g1 = jnp.ones((1, din), jnp.float32)
    b1 = jnp.zeros((1, din), jnp.float32)
    g2 = jnp.ones((1, E), jnp.float32)
    b2 = jnp.zeros((1, E), jnp.float32)
    return (g1, b1, wq, wk, wv, wp, bp, g2, b2, w1, bf1, w2, bf2)


def pack_params(params, din, dp, embed_dim):
    """Pack the 13 parameter tensors into 4 lane-friendly slabs (fewer DMA streams)."""
    (g1, b1, wq, wk, wv, wp, bp, g2, b2, w1, bf1, w2, bf2) = params
    E = embed_dim
    pad = dp - din
    padf = lambda a: jnp.pad(a, ((0, 0), (0, pad)))   # pad feature (last) dim with zeros
    padr = lambda w: jnp.pad(w, ((0, pad), (0, 0)))   # pad contraction rows with zeros
    nd = jnp.concatenate([padf(g1), padf(b1)], axis=0)                       # (2, Dp) f32
    ne = jnp.concatenate([bp, g2, b2, bf1, bf2,
                          jnp.zeros((3, E), jnp.float32)], axis=0)           # (8, E) f32
    wqkv = jnp.concatenate([padr(wq), padr(wk), padr(wv)],
                           axis=1).astype(jnp.bfloat16)                      # (Dp, 3E)
    wpmm = jnp.concatenate([wp, w1, w2], axis=1).astype(jnp.bfloat16)        # (E, 3E)
    return nd, ne, wqkv, wpmm


# ---------------------------------------------------------------------------
# Downsample forward (matches the PyTorch module: K=k, S=P=(k-1)//2, D=1)
# ---------------------------------------------------------------------------
def downsample_forward(x, params, embed_dim, k=3):
    K = k
    S = (k - 1) // 2
    P = (k - 1) // 2
    tokens, Ho, Wo = unfold_tokens(x, K, S, P, D=1)       # (B, L, Din) f32
    B, L, Din = tokens.shape
    Dp = _round_up(Din, 128)                              # lane-pad the feature dim
    Lp = _round_up(L, 128)                                # pad tokens so q-tiling never
    tokens = jnp.pad(tokens,                              # materializes an (L,L) matrix
                     ((0, 0), (0, Lp - L), (0, Dp - Din))).astype(jnp.bfloat16)
    packed = pack_params(params, Din, Dp, embed_dim)
    out = token_transformer(tokens, *packed, embed_dim=embed_dim, din=Din, l_true=L)
    out = out[:, :L, :]                                   # drop padded token rows
    # NCHW using the true (Ho, Wo) (== int(sqrt(L)) for square inputs as in PyTorch).
    return jnp.transpose(out, (0, 2, 1)).reshape(B, embed_dim, Ho, Wo)


# ---------------------------------------------------------------------------
# Pure-JAX reference (f32) for tolerance checking
# ---------------------------------------------------------------------------
def downsample_ref(x, params, embed_dim, k=3):
    K, S, P = k, (k - 1) // 2, (k - 1) // 2
    tokens, Ho, Wo = unfold_tokens(x, K, S, P, D=1)
    (g1, b1, wq, wk, wv, wp, bp, g2, b2, w1, bf1, w2, bf2) = params
    E, eps = embed_dim, 1e-5
    scale = float(E) ** -0.5
    mu = jnp.mean(tokens, -1, keepdims=True)
    var = jnp.var(tokens, -1, keepdims=True)
    h = (tokens - mu) / jnp.sqrt(var + eps) * g1 + b1
    q, kk, v = h @ wq, h @ wk, h @ wv
    s = jnp.einsum("bld,bmd->blm", q, kk) * scale
    p = jax.nn.softmax(s, axis=-1)
    a = jnp.einsum("blm,bmd->bld", p, v)
    y = v + a @ wp + bp
    mu2 = jnp.mean(y, -1, keepdims=True)
    var2 = jnp.var(y, -1, keepdims=True)
    z = (y - mu2) / jnp.sqrt(var2 + eps) * g2 + b2
    m = z @ w1 + bf1
    m = 0.5 * m * (1.0 + lax.erf(m * 0.7071067811865476))
    m = m @ w2 + bf2
    out = y + m
    return jnp.transpose(out, (0, 2, 1)).reshape(x.shape[0], E, Ho, Wo)


if __name__ == "__main__":
    B, C, IMG = 2, 4, 16
    K_SIZE = 3
    EMBED = 64          # L = 16*16 = 256 tokens, Din = C*K*K = 36 -> padded to 128

    key = jax.random.PRNGKey(0)
    kx, kp, kx2 = jax.random.split(key, 3)
    x = jax.random.normal(kx, (B, C, IMG, IMG), jnp.float32)
    params = init_params(kp, C, K_SIZE, EMBED)

    fwd = jax.jit(lambda xx, pp: downsample_forward(xx, pp, EMBED, k=K_SIZE))
    out = jax.block_until_ready(fwd(x, params))
    assert out.shape == (B, EMBED, IMG, IMG), out.shape
    assert bool(jnp.all(jnp.isfinite(out)))
    ref = downsample_ref(x, params, EMBED, k=K_SIZE)
    assert float(jnp.max(jnp.abs(out - ref))) < 5e-2     # bf16 matmuls / approx recip

    # A second, non-128-divisible token count to exercise the L-padding + key-mask path.
    IMG2 = 10                                            # L = 100 -> Lp = 128
    x2 = jax.random.normal(kx2, (B, C, IMG2, IMG2), jnp.float32)
    out2 = jax.block_until_ready(fwd(x2, params))
    assert out2.shape == (B, EMBED, IMG2, IMG2), out2.shape
    assert bool(jnp.all(jnp.isfinite(out2)))
    ref2 = downsample_ref(x2, params, EMBED, k=K_SIZE)
    assert float(jnp.max(jnp.abs(out2 - ref2))) < 5e-2

    print("KERNEL_OK")
</pallas_src>

<mosaic_0001>
module attributes {stable_mosaic.version = 11 : i64} {
  func.func @token_transformer_kernel(%arg0: i32, %arg1: memref<1x256x128xbf16, #tpu.memory_space<vmem>>, %arg2: memref<2x128xf32, #tpu.memory_space<vmem>>, %arg3: memref<8x64xf32, #tpu.memory_space<vmem>>, %arg4: memref<128x192xbf16, #tpu.memory_space<vmem>>, %arg5: memref<64x192xbf16, #tpu.memory_space<vmem>>, %arg6: memref<1x256x64xf32, #tpu.memory_space<vmem>>, %arg7: memref<256x64xbf16, #tpu.memory_space<vmem>>, %arg8: memref<256x64xbf16, #tpu.memory_space<vmem>>, %arg9: memref<256x64xbf16, #tpu.memory_space<vmem>>, %arg10: memref<256x64xf32, #tpu.memory_space<vmem>>) attributes {dimension_semantics = [#tpu.dimension_semantics<parallel>], iteration_bounds = array<i64: 2>, scalar_prefetch = 0 : i64, scratch_operands = 4 : i64, tpu.core_type = #tpu.core_type<tc>, window_params = [{transform_indices = @transform_0, window_bounds = array<i64: 1, 256, 128>}, {pipeline_mode = #tpu.pipeline_mode<synchronous>, transform_indices = @transform_1, window_bounds = array<i64: 2, 128>}, {pipeline_mode = #tpu.pipeline_mode<synchronous>, transform_indices = @transform_2, window_bounds = array<i64: 8, 64>}, {pipeline_mode = #tpu.pipeline_mode<synchronous>, transform_indices = @transform_3, window_bounds = array<i64: 128, 192>}, {pipeline_mode = #tpu.pipeline_mode<synchronous>, transform_indices = @transform_4, window_bounds = array<i64: 64, 192>}, {transform_indices = @transform_5, window_bounds = array<i64: 1, 256, 64>}]} {
    %c0 = arith.constant 0 : index
    %c0_0 = arith.constant 0 : index
    %c0_1 = arith.constant 0 : index
    %0 = vector.load %arg1[%c0, %c0_0, %c0_1] : memref<1x256x128xbf16, #tpu.memory_space<vmem>>, vector<1x256x128xbf16>
    %1 = vector.shape_cast %0 : vector<1x256x128xbf16> to vector<256x128xbf16>
    %2 = arith.extf %1 : vector<256x128xbf16> to vector<256x128xf32>
    %c0_2 = arith.constant 0 : index
    %c0_3 = arith.constant 0 : index
    %3 = vector.load %arg2[%c0_2, %c0_3] : memref<2x128xf32, #tpu.memory_space<vmem>>, vector<1x128xf32>
    %c1 = arith.constant 1 : index
    %c0_4 = arith.constant 0 : index
    %4 = vector.load %arg2[%c1, %c0_4] : memref<2x128xf32, #tpu.memory_space<vmem>>, vector<1x128xf32>
    %cst = arith.constant dense<0.000000e+00> : vector<256xf32>
    %5 = vector.multi_reduction <add>, %2, %cst [1] : vector<256x128xf32> to vector<256xf32>
    %6 = vector.shape_cast %5 : vector<256xf32> to vector<256x1xf32>
    %cst_5 = arith.constant 0.027777778 : f32
    %7 = vector.broadcast %cst_5 : f32 to vector<256x1xf32>
    %8 = arith.mulf %6, %7 : vector<256x1xf32>
    %9 = arith.mulf %2, %2 : vector<256x128xf32>
    %cst_6 = arith.constant dense<0.000000e+00> : vector<256xf32>
    %10 = vector.multi_reduction <add>, %9, %cst_6 [1] : vector<256x128xf32> to vector<256xf32>
    %11 = vector.shape_cast %10 : vector<256xf32> to vector<256x1xf32>
    %cst_7 = arith.constant 0.027777778 : f32
    %12 = vector.broadcast %cst_7 : f32 to vector<256x1xf32>
    %13 = arith.mulf %11, %12 : vector<256x1xf32>
    %14 = arith.mulf %8, %8 : vector<256x1xf32>
    %15 = arith.subf %13, %14 : vector<256x1xf32>
    %16 = vector.broadcast %8 : vector<256x1xf32> to vector<256x128xf32>
    %17 = arith.subf %2, %16 : vector<256x128xf32>
    %cst_8 = arith.constant 9.99999974E-6 : f32
    %18 = vector.broadcast %cst_8 : f32 to vector<256x1xf32>
    %19 = arith.addf %15, %18 : vector<256x1xf32>
    %20 = math.rsqrt %19 : vector<256x1xf32>
    %21 = vector.broadcast %20 : vector<256x1xf32> to vector<256x128xf32>
    %22 = arith.mulf %17, %21 : vector<256x128xf32>
    %23 = vector.broadcast %3 : vector<1x128xf32> to vector<256x128xf32>
    %24 = arith.mulf %22, %23 : vector<256x128xf32>
    %25 = vector.broadcast %4 : vector<1x128xf32> to vector<256x128xf32>
    %26 = arith.addf %24, %25 : vector<256x128xf32>
    %27 = arith.truncf %26 : vector<256x128xf32> to vector<256x128xbf16>
    %c0_9 = arith.constant 0 : index
    %c0_10 = arith.constant 0 : index
    %28 = vector.load %arg4[%c0_9, %c0_10] : memref<128x192xbf16, #tpu.memory_space<vmem>>, vector<128x192xbf16>
    %cst_11 = arith.constant dense<0.000000e+00> : vector<256x192xf32>
    %29 = tpu.matmul %27, %28, %cst_11 {dimension_numbers = #tpu.dot_dimension_numbers<[1], [0], [0], [1], [0, 0, 1, 1], [], []>} : vector<256x128xbf16>, vector<128x192xbf16>, vector<256x192xf32> -> vector<256x192xf32>
    %30 = vector.extract_strided_slice %29 {offsets = [0, 0], sizes = [256, 64], strides = [1, 1]} : vector<256x192xf32> to vector<256x64xf32>
    %31 = vector.extract_strided_slice %29 {offsets = [0, 64], sizes = [256, 64], strides = [1, 1]} : vector<256x192xf32> to vector<256x64xf32>
    %32 = vector.extract_strided_slice %29 {offsets = [0, 128], sizes = [256, 64], strides = [1, 1]} : vector<256x192xf32> to vector<256x64xf32>
    %cst_12 = arith.constant 1.250000e-01 : f32
    %33 = vector.broadcast %cst_12 : f32 to vector<256x64xf32>
    %34 = arith.mulf %30, %33 : vector<256x64xf32>
    %35 = arith.truncf %34 : vector<256x64xf32> to vector<256x64xbf16>
    %c0_13 = arith.constant 0 : index
    %c0_14 = arith.constant 0 : index
    %36 = vector.load %arg7[%c0_13, %c0_14] : memref<256x64xbf16, #tpu.memory_space<vmem>>, vector<256x64xbf16>
    tpu.vector_store %arg7[%c0_13, %c0_14], %35 {strides = array<i32>} : memref<256x64xbf16, #tpu.memory_space<vmem>>, vector<256x64xbf16>,
    %37 = arith.truncf %31 : vector<256x64xf32> to vector<256x64xbf16>
    %c0_15 = arith.constant 0 : index
    %c0_16 = arith.constant 0 : index
    %38 = vector.load %arg8[%c0_15, %c0_16] : memref<256x64xbf16, #tpu.memory_space<vmem>>, vector<256x64xbf16>
    tpu.vector_store %arg8[%c0_15, %c0_16], %37 {strides = array<i32>} : memref<256x64xbf16, #tpu.memory_space<vmem>>, vector<256x64xbf16>,
    %39 = arith.truncf %32 : vector<256x64xf32> to vector<256x64xbf16>
    %c0_17 = arith.constant 0 : index
    %c0_18 = arith.constant 0 : index
    %40 = vector.load %arg9[%c0_17, %c0_18] : memref<256x64xbf16, #tpu.memory_space<vmem>>, vector<256x64xbf16>
    tpu.vector_store %arg9[%c0_17, %c0_18], %39 {strides = array<i32>} : memref<256x64xbf16, #tpu.memory_space<vmem>>, vector<256x64xbf16>,
    %c0_19 = arith.constant 0 : index
    %c0_20 = arith.constant 0 : index
    %41 = vector.load %arg10[%c0_19, %c0_20] : memref<256x64xf32, #tpu.memory_space<vmem>>, vector<256x64xf32>
    tpu.vector_store %arg10[%c0_19, %c0_20], %32 {strides = array<i32>} : memref<256x64xf32, #tpu.memory_space<vmem>>, vector<256x64xf32>,
    %c0_21 = arith.constant 0 : index
    %c0_22 = arith.constant 0 : index
    %42 = vector.load %arg5[%c0_21, %c0_22] : memref<64x192xbf16, #tpu.memory_space<vmem>>, vector<64x64xbf16>
    %c0_23 = arith.constant 0 : index
    %c0_24 = arith.constant 0 : index
    %43 = vector.load %arg3[%c0_23, %c0_24] : memref<8x64xf32, #tpu.memory_space<vmem>>, vector<1x64xf32>
    %c0_i32 = arith.constant 0 : i32
    %c256_i32 = arith.constant 256 : i32
    %44 = arith.muli %c0_i32, %c256_i32 : i32
    %45 = tpu.assume_multiple %44, 256 : i32
    %46 = arith.index_cast %45 : i32 to index
    %c0_25 = arith.constant 0 : index
    %47 = vector.load %arg7[%46, %c0_25] : memref<256x64xbf16, #tpu.memory_space<vmem>>, vector<256x64xbf16>
    %c0_26 = arith.constant 0 : index
    %c0_27 = arith.constant 0 : index
    %48 = vector.load %arg8[%c0_26, %c0_27] : memref<256x64xbf16, #tpu.memory_space<vmem>>, vector<256x64xbf16>
    %cst_28 = arith.constant dense<0.000000e+00> : vector<256x256xf32>
    %49 = tpu.matmul %47, %48, %cst_28 {dimension_numbers = #tpu.dot_dimension_numbers<[1], [1], [0], [0], [0, 0, 1, 0], [], []>} : vector<256x64xbf16>, vector<256x64xbf16>, vector<256x256xf32> -> vector<256x256xf32>
    %cst_29 = arith.constant dense<0xFF800000> : vector<256xf32>
    %50 = vector.multi_reduction <maximumf>, %49, %cst_29 [1] : vector<256x256xf32> to vector<256xf32>
    %51 = vector.shape_cast %50 : vector<256xf32> to vector<256x1xf32>
    %52 = vector.broadcast %51 : vector<256x1xf32> to vector<256x256xf32>
    %53 = arith.subf %49, %52 : vector<256x256xf32>
    %54 = arith.truncf %53 : vector<256x256xf32> to vector<256x256xbf16>
    %55 = math.exp %54 : vector<256x256xbf16>
    %56 = arith.extf %55 : vector<256x256xbf16> to vector<256x256xf32>
    %cst_30 = arith.constant dense<0.000000e+00> : vector<256xf32>
    %57 = vector.multi_reduction <add>, %56, %cst_30 [1] : vector<256x256xf32> to vector<256xf32>
    %58 = vector.shape_cast %57 : vector<256xf32> to vector<256x1xf32>
    %59 = tpu.reciprocal %58 {approx = true} : vector<256x1xf32> -> vector<256x1xf32>
    %c0_31 = arith.constant 0 : index
    %c0_32 = arith.constant 0 : index
    %60 = vector.load %arg9[%c0_31, %c0_32] : memref<256x64xbf16, #tpu.memory_space<vmem>>, vector<256x64xbf16>
    %cst_33 = arith.constant dense<0.000000e+00> : vector<256x64xf32>
    %61 = tpu.matmul %55, %60, %cst_33 {dimension_numbers = #tpu.dot_dimension_numbers<[1], [0], [0], [1], [0, 0, 1, 1], [], []>} : vector<256x256xbf16>, vector<256x64xbf16>, vector<256x64xf32> -> vector<256x64xf32>
    %62 = vector.broadcast %59 : vector<256x1xf32> to vector<256x64xf32>
    %63 = arith.mulf %61, %62 : vector<256x64xf32>
    %64 = arith.truncf %63 : vector<256x64xf32> to vector<256x64xbf16>
    %cst_34 = arith.constant dense<0.000000e+00> : vector<256x64xf32>
    %65 = tpu.matmul %64, %42, %cst_34 {dimension_numbers = #tpu.dot_dimension_numbers<[1], [0], [0], [1], [0, 0, 1, 1], [], []>} : vector<256x64xbf16>, vector<64x64xbf16>, vector<256x64xf32> -> vector<256x64xf32>
    %66 = arith.index_cast %45 : i32 to index
    %c0_35 = arith.constant 0 : index
    %67 = vector.load %arg10[%66, %c0_35] : memref<256x64xf32, #tpu.memory_space<vmem>>, vector<256x64xf32>
    %68 = arith.addf %67, %65 : vector<256x64xf32>
    %69 = vector.broadcast %43 : vector<1x64xf32> to vector<256x64xf32>
    %70 = arith.addf %68, %69 : vector<256x64xf32>
    %71 = arith.index_cast %45 : i32 to index
    %c0_36 = arith.constant 0 : index
    %72 = vector.load %arg10[%71, %c0_36] : memref<256x64xf32, #tpu.memory_space<vmem>>, vector<256x64xf32>
    tpu.vector_store %arg10[%71, %c0_36], %70 {strides = array<i32>} : memref<256x64xf32, #tpu.memory_space<vmem>>, vector<256x64xf32>,
    %c1_i32 = arith.constant 1 : i32
    %c1_37 = arith.constant 1 : index
    %c0_38 = arith.constant 0 : index
    %73 = vector.load %arg3[%c1_37, %c0_38] : memref<8x64xf32, #tpu.memory_space<vmem>>, vector<1x64xf32>
    %c2 = arith.constant 2 : index
    %c0_39 = arith.constant 0 : index
    %74 = vector.load %arg3[%c2, %c0_39] : memref<8x64xf32, #tpu.memory_space<vmem>>, vector<1x64xf32>
    %c3 = arith.constant 3 : index
    %c0_40 = arith.constant 0 : index
    %75 = vector.load %arg3[%c3, %c0_40] : memref<8x64xf32, #tpu.memory_space<vmem>>, vector<1x64xf32>
    %c4 = arith.constant 4 : index
    %c0_41 = arith.constant 0 : index
    %76 = vector.load %arg3[%c4, %c0_41] : memref<8x64xf32, #tpu.memory_space<vmem>>, vector<1x64xf32>
    %c0_42 = arith.constant 0 : index
    %c64 = arith.constant 64 : index
    %77 = vector.load %arg5[%c0_42, %c64] : memref<64x192xbf16, #tpu.memory_space<vmem>>, vector<64x64xbf16>
    %c0_43 = arith.constant 0 : index
    %c128 = arith.constant 128 : index
    %78 = vector.load %arg5[%c0_43, %c128] : memref<64x192xbf16, #tpu.memory_space<vmem>>, vector<64x64xbf16>
    %c0_44 = arith.constant 0 : index
    %c0_45 = arith.constant 0 : index
    %79 = vector.load %arg10[%c0_44, %c0_45] : memref<256x64xf32, #tpu.memory_space<vmem>>, vector<256x64xf32>
    %cst_46 = arith.constant dense<0.000000e+00> : vector<256xf32>
    %80 = vector.multi_reduction <add>, %79, %cst_46 [1] : vector<256x64xf32> to vector<256xf32>
    %81 = vector.shape_cast %80 : vector<256xf32> to vector<256x1xf32>
    %cst_47 = arith.constant 6.400000e+01 : f32
    %82 = vector.broadcast %cst_47 : f32 to vector<256x1xf32>
    %83 = arith.divf %81, %82 : vector<256x1xf32>
    %84 = vector.broadcast %83 : vector<256x1xf32> to vector<256x64xf32>
    %85 = arith.subf %79, %84 : vector<256x64xf32>
    %86 = arith.mulf %85, %85 : vector<256x64xf32>
    %cst_48 = arith.constant dense<0.000000e+00> : vector<256xf32>
    %87 = vector.multi_reduction <add>, %86, %cst_48 [1] : vector<256x64xf32> to vector<256xf32>
    %88 = vector.shape_cast %87 : vector<256xf32> to vector<256x1xf32>
    %cst_49 = arith.constant 6.400000e+01 : f32
    %89 = vector.broadcast %cst_49 : f32 to vector<256x1xf32>
    %90 = arith.divf %88, %89 : vector<256x1xf32>
    %91 = vector.broadcast %83 : vector<256x1xf32> to vector<256x64xf32>
    %92 = arith.subf %79, %91 : vector<256x64xf32>
    %cst_50 = arith.constant 9.99999974E-6 : f32
    %93 = vector.broadcast %cst_50 : f32 to vector<256x1xf32>
    %94 = arith.addf %90, %93 : vector<256x1xf32>
    %95 = math.rsqrt %94 : vector<256x1xf32>
    %96 = vector.broadcast %95 : vector<256x1xf32> to vector<256x64xf32>
    %97 = arith.mulf %92, %96 : vector<256x64xf32>
    %98 = vector.broadcast %73 : vector<1x64xf32> to vector<256x64xf32>
    %99 = arith.mulf %97, %98 : vector<256x64xf32>
    %100 = vector.broadcast %74 : vector<1x64xf32> to vector<256x64xf32>
    %101 = arith.addf %99, %100 : vector<256x64xf32>
    %102 = arith.truncf %101 : vector<256x64xf32> to vector<256x64xbf16>
    %cst_51 = arith.constant dense<0.000000e+00> : vector<256x64xf32>
    %103 = tpu.matmul %102, %77, %cst_51 {dimension_numbers = #tpu.dot_dimension_numbers<[1], [0], [0], [1], [0, 0, 1, 1], [], []>} : vector<256x64xbf16>, vector<64x64xbf16>, vector<256x64xf32> -> vector<256x64xf32>
    %104 = vector.broadcast %75 : vector<1x64xf32> to vector<256x64xf32>
    %105 = arith.addf %103, %104 : vector<256x64xf32>
    %cst_52 = arith.constant 5.000000e-01 : f32
    %106 = vector.broadcast %cst_52 : f32 to vector<256x64xf32>
    %107 = arith.mulf %106, %105 : vector<256x64xf32>
    %cst_53 = arith.constant 0.707106769 : f32
    %108 = vector.broadcast %cst_53 : f32 to vector<256x64xf32>
    %109 = arith.mulf %105, %108 : vector<256x64xf32>
    %110 = math.erf %109 : vector<256x64xf32>
    %cst_54 = arith.constant 1.000000e+00 : f32
    %111 = vector.broadcast %cst_54 : f32 to vector<256x64xf32>
    %112 = arith.addf %111, %110 : vector<256x64xf32>
    %113 = arith.mulf %107, %112 : vector<256x64xf32>
    %114 = arith.truncf %113 : vector<256x64xf32> to vector<256x64xbf16>
    %cst_55 = arith.constant dense<0.000000e+00> : vector<256x64xf32>
    %115 = tpu.matmul %114, %78, %cst_55 {dimension_numbers = #tpu.dot_dimension_numbers<[1], [0], [0], [1], [0, 0, 1, 1], [], []>} : vector<256x64xbf16>, vector<64x64xbf16>, vector<256x64xf32> -> vector<256x64xf32>
    %116 = vector.broadcast %76 : vector<1x64xf32> to vector<256x64xf32>
    %117 = arith.addf %115, %116 : vector<256x64xf32>
    %118 = arith.addf %79, %117 : vector<256x64xf32>
    %c0_56 = arith.constant 0 : index
    %c0_57 = arith.constant 0 : index
    %c0_58 = arith.constant 0 : index
    %119 = vector.load %arg6[%c0_56, %c0_57, %c0_58] : memref<1x256x64xf32, #tpu.memory_space<vmem>>, vector<1x256x64xf32>
    %120 = vector.shape_cast %119 : vector<1x256x64xf32> to vector<256x64xf32>
    %121 = vector.shape_cast %118 : vector<256x64xf32> to vector<1x256x64xf32>
    tpu.vector_store %arg6[%c0_56, %c0_57, %c0_58], %121 {strides = array<i32>} : memref<1x256x64xf32, #tpu.memory_space<vmem>>, vector<1x256x64xf32>,
    return
  }
  func.func @transform_0(%arg0: i32) -> (i32, i32, i32) {
    %c0_i32 = arith.constant 0 : i32
    %c0_i32_0 = arith.constant 0 : i32
    %c0_i32_1 = arith.constant 0 : i32
    return %arg0, %c0_i32, %c0_i32_0 : i32, i32, i32
  }
  func.func @transform_1(%arg0: i32) -> (i32, i32) {
    %c0_i32 = arith.constant 0 : i32
    %c0_i32_0 = arith.constant 0 : i32
    %c0_i32_1 = arith.constant 0 : i32
    return %c0_i32, %c0_i32_0 : i32, i32
  }
  func.func @transform_2(%arg0: i32) -> (i32, i32) {
    %c0_i32 = arith.constant 0 : i32
    %c0_i32_0 = arith.constant 0 : i32
    %c0_i32_1 = arith.constant 0 : i32
    return %c0_i32, %c0_i32_0 : i32, i32
  }
  func.func @transform_3(%arg0: i32) -> (i32, i32) {
    %c0_i32 = arith.constant 0 : i32
    %c0_i32_0 = arith.constant 0 : i32
    %c0_i32_1 = arith.constant 0 : i32
    return %c0_i32, %c0_i32_0 : i32, i32
  }
  func.func @transform_4(%arg0: i32) -> (i32, i32) {
    %c0_i32 = arith.constant 0 : i32
    %c0_i32_0 = arith.constant 0 : i32
    %c0_i32_1 = arith.constant 0 : i32
    return %c0_i32, %c0_i32_0 : i32, i32
  }
  func.func @transform_5(%arg0: i32) -> (i32, i32, i32) {
    %c0_i32 = arith.constant 0 : i32
    %c0_i32_0 = arith.constant 0 : i32
    %c0_i32_1 = arith.constant 0 : i32
    return %arg0, %c0_i32, %c0_i32_0 : i32, i32, i32
  }
}

</mosaic_0001>

<bundles_post_ra>
// kernel: _lambda_.1
= control target key start
LH: loop header
LB: loop body
LE: loop exit
PB: predicated region body
PF: predicated region fallthrough
CT: control target
= control target key end

     0   :  { %10 = vsyncpa [#allocation7], 0  ;;  %s8159_s0 = inlined_call_operand.vmem [shape: bf16[2,256,128], index: 0, kind: input, shape index: {}]   ;;  %s8160_s1 = inlined_call_operand.vmem [shape: f32[2,128], index: 1, kind: input, shape index: {}]   ;;  %s8161_s2 = inlined_call_operand.vmem [shape: f32[8,64], index: 2, kind: input, shape index: {}]   ;;  %s8162_s3 = inlined_call_operand.vmem [shape: bf16[128,192], index: 3, kind: input, shape index: {}]   ;;  %s8163_s4 = inlined_call_operand.vmem [shape: bf16[64,192], index: 4, kind: input, shape index: {}]   ;;  %s8164_s5 = inlined_call_operand.hbm [shape: f32[2,256,64], index: 5, kind: output, shape index: {}]  }
   0x1   :  { %12 = vsyncpa [#allocation7 + $0x1], 0  ;;  %s6125_s18 = smov 0   ;;  %s6127_s19 = smov 0  }
   0x2   :  { %s6129_s20 = smov 0   ;;  %s6131_s21 = smov 0  }
   0x3 LB: > { %s6146_s22 = sadd.s32 4294967295, %s6088_s21   ;;  %s4752_s23 = sadd.s32 4294967294, %s6088_s21   ;;  %s6088_s21 = sphi %s6131_s21, %s8215_s21   ;;  %s6084_s20 = sphi %s6129_s20, %s8214_s20   ;;  %s6080_s19 = sphi %s6127_s19, %s8213_s19   ;;  %s6076_s18 = sphi %s6125_s18, %s8212_s18  }
   0x4   : > { %s6150_s24 = sadd.s32 1, %s6088_s21   ;;  %s135_s25 = sadd.s32 1, %s6084_s20 }
   0x5   : > { %s132_s26 = ssub.s32 %s6088_s21, %s6150_s24  ;;  %p145_p0 = scmp.ne.s32.totalorder %s6084_s20, %s6080_s19 }
   0x6   : > { %p133_p1 = scmp.eq.s32.totalorder %s132_s26, 0  ;;  %p146_p2 = scmp.eq.s32.totalorder %s6146_s22, 1 }
   0x7   : > { %p151_p3 = scmp.ne.s32.totalorder %s6080_s19, %s6076_s18  ;;  %p152_p4 = scmp.eq.s32.totalorder %s4752_s23, 1 }
   0x8   : > { %s6161_s27 = scalar_select %p133_p1, %s6084_s20, %s135_s25  }
   0x9   : > { %p6163_p5 = por %p146_p2, %p145_p0  ;;  %p6167_p6 = por %p152_p4, %p151_p3 }
   0xa   : > { %p4755_p7 = scmp.ge.s32.totalorder %s6088_s21, 1  ;;  %p190_p8 = scmp.lt.s32.totalorder %s6088_s21, 3 }
   0xc   : > { %p191_p9 = pnand %p4755_p7, %p190_p8 }
   0xe   : > { %194 = sbr.rel (%p191_p9) target bundleno = 2372 (0x944), region = 40 }
  0x13   : > { %p218_p10 = scmp.lt.s32.totalorder %s6146_s22, 1  ;;  %v5591_v11 = vld [vmem:[%s8162_s3 + $0x74] ss:$8 sps:$4 sm:$0xff]   ;;  %v5593_v12 = vld [vmem:[%s8162_s3 + $0x70] ss:$8 sps:$4 sm:$0xff]   ;;  %v6090_v48 = vmov 0  }
  0x14   : > { %890 = vmatprep.subr.bf16.mxu0 %v5591_v11  ;;  %v5594_v15 = vld [vmem:[%s8162_s3 + $0x64] ss:$8 sps:$4 sm:$0xff]   ;;  %v5596_v16 = vld [vmem:[%s8162_s3 + $0x60] ss:$8 sps:$4 sm:$0xff]   ;;  %v5597_v20 = vld [vmem:[%s8162_s3 + $0x54] ss:$8 sps:$4 sm:$0xff]   ;;  %922 = vmatprep.mubr.bf16.mxu0 %v6090_v48 }
  0x15   : > { %s219_s30 = scalar_select %p218_p10, %s6146_s22, 1  ;;  %891 = vmatpush1.bf16.msra.mxu0 %v5593_v12  ;;  %v5599_v21 = vld [vmem:[%s8162_s3 + $0x50] ss:$8 sps:$4 sm:$0xff]   ;;  %v5600_v24 = vld [vmem:[%s8162_s3 + $0x44] ss:$8 sps:$4 sm:$0xff]   ;;  %vm1660_vm0 = vcmask 523264  }
  0x16   : > { %892 = vmatprep.subr.bf16.mxu0 %v5594_v15  ;;  %v5602_v25 = vld [vmem:[%s8162_s3 + $0x40] ss:$8 sps:$4 sm:$0xff]   ;;  %v5603_v29 = vld [vmem:[%s8162_s3 + $0x34] ss:$8 sps:$4 sm:$0xff]   ;;  %v5605_v31 = vld [vmem:[%s8162_s3 + $0x30] ss:$8 sps:$4 sm:$0xff]  }
  0x17   : > { %s5007_s6 = sshll.u32 %s219_s30, 7  ;;  %v5606_v33 = vld [vmem:[%s8162_s3 + $0x24] ss:$8 sps:$4 sm:$0xff]   ;;  %v5608_v35 = vld [vmem:[%s8162_s3 + $0x20] ss:$8 sps:$4 sm:$0xff]   ;;  %vm1243_vm1 = vcmask 519168  }
  0x18   : > { %s6178_s9 = scalar_lea.vmem %s8159_s0, %s5007_s6  ;;  %v5609_v38 = vld [vmem:[%s8162_s3 + $0x14] ss:$8 sps:$4 sm:$0xff]   ;;  %v5611_v40 = vld [vmem:[%s8162_s3 + $0x10] ss:$8 sps:$4 sm:$0xff]   ;;  %v5612_v42 = vld [vmem:[%s8162_s3 + $0x4] ss:$8 sps:$4 sm:$0xff]  }
  0x19   : > { %v5106_v0 = vld [vmem:[%s6178_s9] sm:$0xff]   ;;  %v5169_v4 = vld [vmem:[%s6178_s9 + $0x8] sm:$0xff]   ;;  %v5170_v9 = vld [vmem:[%s6178_s9 + $0x10] sm:$0xff]   ;;  %893 = vmatpush1.bf16.msra.mxu0 %v5596_v16  ;;  %s6091_s15 = smov 64   ;;  %s215_s17 = sand.u32 1, %s6080_s19  }
  0x1a   : > { %v6181_v1 = vunpack.c.l.bf16 %v5106_v0  ;;  %v6183_v2 = vunpack.c.h.bf16 %v5106_v0  ;;  %v6192_v6 = vunpack.c.l.bf16 %v5169_v4  ;;  %v6194_v7 = vunpack.c.h.bf16 %v5169_v4  ;;  %v5171_v18 = vld [vmem:[%s6178_s9 + $0x18] sm:$0xff]   ;;  %894 = vmatprep.subr.bf16.mxu0 %v5597_v20  ;;  %v5172_v27 = vld [vmem:[%s6178_s9 + $0x20] sm:$0xff]   ;;  %v5173_v36 = vld [vmem:[%s6178_s9 + $0x28] sm:$0xff]   ;;  %s4756_s25 = sshll.u32 %s215_s17, 8  ;;  %s5104_s30 = sshll.u32 %s6146_s22, 12 }
  0x1b   : > { %v6209_v13 = vunpack.c.l.bf16 %v5170_v9  ;;  %v6211_v14 = vunpack.c.h.bf16 %v5170_v9  ;;  %v6232_v22 = vunpack.c.l.bf16 %v5171_v18  ;;  %v6234_v23 = vunpack.c.h.bf16 %v5171_v18  ;;  %v5614_v44 = vld [vmem:[%s8162_s3] ss:$8 sps:$4 sm:$0xff]   ;;  %v5174_v45 = vld [vmem:[%s6178_s9 + $0x30] sm:$0xff]   ;;  %v5175_v51 = vld [vmem:[%s6178_s9 + $0x38] sm:$0xff]   ;;  %s8012_s26 = scalar_lea.vmem [#allocation6], %s4756_s25  ;;  %s8109_s10 = scalar_lea.hbm %s8164_s5, %s5104_s30 }
  0x1c   : > { %290 = vadd.xlane.f32.xlu0 %v6181_v1  ;;  %v386_v3 = vmul.f32 %v6181_v1, %v6181_v1  ;;  %v387_v5 = vmul.f32 %v6183_v2, %v6183_v2  ;;  %v388_v8 = vmul.f32 %v6192_v6, %v6192_v6  ;;  %v389_v10 = vmul.f32 %v6194_v7, %v6194_v7  ;;  %v5176_v56 = vld [vmem:[%s6178_s9 + $0x40] sm:$0xff]   ;;  %v5177_v61 = vld [vmem:[%s6178_s9 + $0x48] sm:$0xff]   ;;  %v5178_v4 = vld [vmem:[%s6178_s9 + $0x50] sm:$0xff]   ;;  %s4690_s6 = sshll.u32 %s8012_s26, 4  ;;  %s8119_s22 = scalar_lea.sflag [#allocation7], %s215_s17  ;;  %s8111_s6 = int_to_ptr.vmem [resolvable:$true] %s4690_s6 }
  0x1d   : > { %v390_v17 = vmul.f32 %v6209_v13, %v6209_v13  ;;  %v391_v19 = vmul.f32 %v6211_v14, %v6211_v14  ;;  %895 = vmatpush1.bf16.msra.mxu0 %v5599_v21  ;;  %v392_v26 = vmul.f32 %v6232_v22, %v6232_v22  ;;  %v393_v28 = vmul.f32 %v6234_v23, %v6234_v23  ;;  %v5179_v11 = vld [vmem:[%s6178_s9 + $0x58] sm:$0xff]   ;;  %v5180_v18 = vld [vmem:[%s6178_s9 + $0x60] sm:$0xff]   ;;  %s6028_s11 = scalar_lea.vmem %s8111_s6, 4096 }
  0x1e   : > { %418 = vadd.xlane.f32.xlu1 %v386_v3  ;;  %896 = vmatprep.subr.bf16.mxu0 %v5600_v24  ;;  %v6252_v30 = vunpack.c.l.bf16 %v5172_v27  ;;  %v6257_v32 = vunpack.c.h.bf16 %v5172_v27  ;;  %v6275_v39 = vunpack.c.l.bf16 %v5173_v36  ;;  %v6280_v41 = vunpack.c.h.bf16 %v5173_v36  ;;  %p6029_p11 = scmp.ne.s32.totalorder %s8111_s6, %s6028_s11 }
  0x1f   : > { %v6295_v47 = vunpack.c.l.bf16 %v5174_v45  ;;  %v6298_v49 = vunpack.c.h.bf16 %v5174_v45  ;;  %v6307_v53 = vunpack.c.l.bf16 %v5175_v51  ;;  %v6309_v54 = vunpack.c.h.bf16 %v5175_v51 }
  0x20   : > { %292 = vadd.xlane.f32.xlu0 %v6183_v2  ;;  %v394_v34 = vmul.f32 %v6252_v30, %v6252_v30  ;;  %v395_v37 = vmul.f32 %v6257_v32, %v6257_v32  ;;  %v396_v43 = vmul.f32 %v6275_v39, %v6275_v39  ;;  %v397_v46 = vmul.f32 %v6280_v41, %v6280_v41  ;;  %p6030_p12 = pnand %p6029_p11, %p6163_p5 }
  0x21   : > { %897 = vmatpush1.bf16.msra.mxu0 %v5602_v25  ;;  %v398_v50 = vmul.f32 %v6295_v47, %v6295_v47  ;;  %v399_v52 = vmul.f32 %v6298_v49, %v6298_v49  ;;  %v400_v55 = vmul.f32 %v6307_v53, %v6307_v53  ;;  %v401_v57 = vmul.f32 %v6309_v54, %v6309_v54  ;;  %v5181_v25 = vld [vmem:[%s6178_s9 + $0x68] sm:$0xff]  }
  0x22   : > { %420 = vadd.xlane.f32.xlu1 %v387_v5  ;;  %898 = vmatprep.subr.bf16.mxu0 %v5603_v29  ;;  %v6318_v58 = vunpack.c.l.bf16 %v5176_v56  ;;  %v6320_v59 = vunpack.c.h.bf16 %v5176_v56  ;;  %v6329_v63 = vunpack.c.l.bf16 %v5177_v61  ;;  %v6331_v0 = vunpack.c.h.bf16 %v5177_v61  ;;  %p6031_p13 = pneg %p6030_p12 }
  0x23   : > { %v6342_v9 = vunpack.c.h.bf16 %v5178_v4  ;;  %v6351_v15 = vunpack.c.l.bf16 %v5179_v11  ;;  %v6353_v16 = vunpack.c.h.bf16 %v5179_v11  ;;  %v6362_v20 = vunpack.c.l.bf16 %v5180_v18 }
  0x24   : > { %294 = vadd.xlane.f32.xlu0 %v6192_v6  ;;  %v402_v60 = vmul.f32 %v6318_v58, %v6318_v58  ;;  %v403_v62 = vmul.f32 %v6320_v59, %v6320_v59  ;;  %v404_v3 = vmul.f32 %v6329_v63, %v6329_v63  ;;  %v405_v5 = vmul.f32 %v6331_v0, %v6331_v0 }
  0x25   : > { %899 = vmatpush1.bf16.msra.mxu0 %v5605_v31  ;;  %v407_v12 = vmul.f32 %v6342_v9, %v6342_v9  ;;  %v6364_v21 = vunpack.c.h.bf16 %v5180_v18  ;;  %v410_v24 = vmul.f32 %v6362_v20, %v6362_v20  ;;  %v6373_v27 = vunpack.c.l.bf16 %v5181_v25  ;;  %v5182_v31 = vld [vmem:[%s6178_s9 + $0x70] sm:$0xff]  }
  0x26   : > { %296 = vadd.xlane.f32.xlu1 %v6194_v7  ;;  %900 = vmatprep.subr.bf16.mxu0 %v5606_v33 }
  0x27   : > { %v412_v29 = vmul.f32 %v6373_v27, %v6373_v27 }
  0x28   : > { %422 = vadd.xlane.f32.xlu0 %v388_v8  ;;  %v6340_v8 = vunpack.c.l.bf16 %v5178_v4 }
  0x29   : > { %901 = vmatpush1.bf16.msra.mxu0 %v5608_v35  ;;  %v6386_v35 = vunpack.c.h.bf16 %v5182_v31 }
  0x2a   : > { %424 = vadd.xlane.f32.xlu1 %v389_v10  ;;  %902 = vmatprep.subr.bf16.mxu0 %v5609_v38  ;;  %v406_v10 = vmul.f32 %v6340_v8, %v6340_v8 }
  0x2b   : > { %v415_v38 = vmul.f32 %v6386_v35, %v6386_v35 }
  0x2c   : > { %298 = vadd.xlane.f32.xlu0 %v6209_v13 }
  0x2d   : > { %903 = vmatpush1.bf16.msra.mxu0 %v5611_v40 }
  0x2e   : > { %300 = vadd.xlane.f32.xlu1 %v6211_v14  ;;  %904 = vmatprep.subr.bf16.mxu0 %v5612_v42 }
  0x30   : > { %426 = vadd.xlane.f32.xlu0 %v390_v17  ;;  %v408_v17 = vmul.f32 %v6351_v15, %v6351_v15 }
  0x31   : > { %905 = vmatpush1.bf16.msra.mxu0 %v5614_v44 }
  0x32   : > { %428 = vadd.xlane.f32.xlu1 %v391_v19  ;;  %v409_v19 = vmul.f32 %v6353_v16, %v6353_v16 }
  0x34   : > { %302 = vadd.xlane.f32.xlu0 %v6232_v22 }
  0x36   : > { %304 = vadd.xlane.f32.xlu1 %v6234_v23 }
  0x38   : > { %430 = vadd.xlane.f32.xlu0 %v392_v26  ;;  %v411_v26 = vmul.f32 %v6364_v21, %v6364_v21 }
  0x3a   : > { %432 = vadd.xlane.f32.xlu1 %v393_v28  ;;  %v6375_v28 = vunpack.c.h.bf16 %v5181_v25 }
  0x3c   : > { %306 = vadd.xlane.f32.xlu0 %v6252_v30  ;;  %v413_v33 = vmul.f32 %v6375_v28, %v6375_v28 }
  0x3e   : > { %308 = vadd.xlane.f32.xlu1 %v6257_v32 }
  0x40   : > { %434 = vadd.xlane.f32.xlu0 %v394_v34  ;;  %v6384_v34 = vunpack.c.l.bf16 %v5182_v31 }
  0x42   : > { %436 = vadd.xlane.f32.xlu1 %v395_v37  ;;  %v414_v36 = vmul.f32 %v6384_v34, %v6384_v34  ;;  %v5183_v37 = vld [vmem:[%s6178_s9 + $0x78] sm:$0xff]   ;;  %s6092_s9 = smov [#allocation6]  }
  0x43   : > { %v6395_v40 = vunpack.c.l.bf16 %v5183_v37  ;;  %v6397_v42 = vunpack.c.h.bf16 %v5183_v37  ;;  %s6032_s12 = sshll.u32 %s6092_s9, 4  ;;  %s6033_s12 = int_to_ptr.vmem [resolvable:$false] %s6032_s12 }
  0x44   : > { %310 = vadd.xlane.f32.xlu0 %v6275_v39  ;;  %s6034_s13 = scalar_lea.vmem %s6033_s12, 8192  ;;  %p6035_p0 = scmp.lt.s32.totalorder %s8111_s6, %s6033_s12 }
  0x45   : > { %v417_v44 = vmul.f32 %v6397_v42, %v6397_v42  ;;  %p6036_p1 = scmp.lt.s32.totalorder %s6034_s13, %s6028_s11 }
  0x46   : > { %312 = vadd.xlane.f32.xlu1 %v6280_v41 }
  0x47   : > { %p6037_p2 = por %p6036_p1, %p6035_p0 }
  0x48   : > { %438 = vadd.xlane.f32.xlu0 %v396_v43  ;;  %v416_v43 = vmul.f32 %v6395_v40, %v6395_v40 }
  0x49   : > { %p6038_p3 = pnand %p6037_p2, %p6031_p13 }
  0x4a   : > { %440 = vadd.xlane.f32.xlu1 %v397_v46 }
  0x4c   : > { %314 = vadd.xlane.f32.xlu0 %v6295_v47 }
  0x4e   : > { %316 = vadd.xlane.f32.xlu1 %v6298_v49 }
  0x50   : > { %442 = vadd.xlane.f32.xlu0 %v398_v50 }
  0x52   : > { %444 = vadd.xlane.f32.xlu1 %v399_v52 }
  0x54   : > { %318 = vadd.xlane.f32.xlu0 %v6307_v53 }
  0x56   : > { %320 = vadd.xlane.f32.xlu1 %v6309_v54 }
  0x58   : > { %446 = vadd.xlane.f32.xlu0 %v400_v55 }
  0x5a   : > { %448 = vadd.xlane.f32.xlu1 %v401_v57 }
  0x5c   : > { %322 = vadd.xlane.f32.xlu0 %v6318_v58 }
  0x5e   : > { %324 = vadd.xlane.f32.xlu1 %v6320_v59 }
  0x60   : > { %450 = vadd.xlane.f32.xlu0 %v402_v60 }
  0x62   : > { %452 = vadd.xlane.f32.xlu1 %v403_v62 }
  0x64   : > { %326 = vadd.xlane.f32.xlu0 %v6329_v63 }
  0x66   : > { %328 = vadd.xlane.f32.xlu1 %v6331_v0 }
  0x68   : > { %454 = vadd.xlane.f32.xlu0 %v404_v3 }
  0x6a   : > { %456 = vadd.xlane.f32.xlu1 %v405_v5 }
  0x6c   : > { %330 = vadd.xlane.f32.xlu0 %v6340_v8 }
  0x6e   : > { %332 = vadd.xlane.f32.xlu1 %v6342_v9 }
  0x70   : > { %458 = vadd.xlane.f32.xlu0 %v406_v10 }
  0x72   : > { %460 = vadd.xlane.f32.xlu1 %v407_v12 }
  0x74   : > { %334 = vadd.xlane.f32.xlu0 %v6351_v15 }
  0x76   : > { %336 = vadd.xlane.f32.xlu1 %v6353_v16 }
  0x78   : > { %462 = vadd.xlane.f32.xlu0 %v408_v17 }
  0x7a   : > { %464 = vadd.xlane.f32.xlu1 %v409_v19 }
  0x7c   : > { %338 = vadd.xlane.f32.xlu0 %v6362_v20 }
  0x7e   : > { %340 = vadd.xlane.f32.xlu1 %v6364_v21 }
  0x80   : > { %466 = vadd.xlane.f32.xlu0 %v410_v24 }
  0x82   : > { %468 = vadd.xlane.f32.xlu1 %v411_v26 }
  0x84   : > { %342 = vadd.xlane.f32.xlu0 %v6373_v27 }
  0x86   : > { %344 = vadd.xlane.f32.xlu1 %v6375_v28 }
  0x88   : > { %470 = vadd.xlane.f32.xlu0 %v412_v29 }
  0x8a   : > { %472 = vadd.xlane.f32.xlu1 %v413_v33 }
  0x8c   : > { %346 = vadd.xlane.f32.xlu0 %v6384_v34 }
  0x8e   : > { %348 = vadd.xlane.f32.xlu1 %v6386_v35 }
  0x90   : > { %474 = vadd.xlane.f32.xlu0 %v414_v36 }
  0x92   : > { %476 = vadd.xlane.f32.xlu1 %v415_v38 }
  0x94   : > { %350 = vadd.xlane.f32.xlu0 %v6395_v40 }
  0x96   : > { %352 = vadd.xlane.f32.xlu1 %v6397_v42 }
  0x98   : > { %478 = vadd.xlane.f32.xlu0 %v416_v43 }
  0x9a   : > { %480 = vadd.xlane.f32.xlu1 %v417_v44 }
  0xa5   : > { %v291_v45 = vpop.xlane.xlu0 %290 }
  0xa6   : > { %v354_v46 = vmul.f32 0.027777778, %v291_v45 }
  0xa7   : > { %v419_v50 = vpop.xlane.xlu1 %418 }
  0xa8   : > { %v514_v51 = vmul.f32 %v354_v46, %v354_v46  ;;  %v482_v52 = vmul.f32 0.027777778, %v419_v50 }
  0xa9   : > { %v293_v55 = vpop.xlane.xlu0 %292 }
  0xaa   : > { %v546_v56 = vsub.f32 %v482_v52, %v514_v51  ;;  %v355_v57 = vmul.f32 0.027777778, %v293_v55 }
  0xab   : > { %v421_v60 = vpop.xlane.xlu1 %420 }
  0xac   : > { %v610_v61 = vadd.f32 1e-05, %v546_v56  ;;  %v515_v62 = vmul.f32 %v355_v57, %v355_v57  ;;  %v483_v3 = vmul.f32 0.027777778, %v421_v60  ;;  %v578_v56 = vsub.f32 %v6181_v1, %v354_v46 }
  0xad   : > { %v295_v4 = vpop.xlane.xlu0 %294  ;;  %v579_v1 = vsub.f32 %v6183_v2, %v355_v57 }
  0xae   : > { %5675 = vrsqrt.f32 %v610_v61  ;;  %v547_v5 = vsub.f32 %v483_v3, %v515_v62  ;;  %v6405_v10 = vmul.f32 0.027777778, %v295_v4 }
  0xaf   : > { %v297_v11 = vpop.xlane.xlu1 %296 }
  0xb0   : > { %v611_v12 = vadd.f32 1e-05, %v547_v5  ;;  %v516_v17 = vmul.f32 %v6405_v10, %v6405_v10  ;;  %v6409_v18 = vmul.f32 0.027777778, %v297_v11 }
  0xb1   : > { %v423_v19 = vpop.xlane.xlu0 %422 }
  0xb2   : > { %5677 = vrsqrt.f32 %v611_v12  ;;  %v484_v24 = vmul.f32 0.027777778, %v423_v19  ;;  %v517_v26 = vmul.f32 %v6409_v18, %v6409_v18  ;;  %v6427_v19 = vld [vmem:[%s8160_s1] ss:$0 sm:$0xff] }
  0xb3   : > { %v425_v25 = vpop.xlane.xlu1 %424 }
  0xb4   : > { %v548_v29 = vsub.f32 %v484_v24, %v516_v17  ;;  %v485_v31 = vmul.f32 0.027777778, %v425_v25 }
  0xb5   : > { %v299_v33 = vpop.xlane.xlu0 %298 }
  0xb6   : > { %v612_v36 = vadd.f32 1e-05, %v548_v29  ;;  %v549_v37 = vsub.f32 %v485_v31, %v517_v26  ;;  %v6413_v38 = vmul.f32 0.027777778, %v299_v33 }
  0xb7   : > { %v301_v43 = vpop.xlane.xlu1 %300 }
  0xb8   : > { %5679 = vrsqrt.f32 %v612_v36  ;;  %v613_v44 = vadd.f32 1e-05, %v549_v37  ;;  %v518_v45 = vmul.f32 %v6413_v38, %v6413_v38  ;;  %v6417_v50 = vmul.f32 0.027777778, %v301_v43  ;;  %v6438_v43 = vld [vmem:[%s8160_s1 + $0x1] ss:$0 sm:$0xff] }
  0xb9   : > { %v427_v51 = vpop.xlane.xlu0 %426 }
  0xba   : > { %5681 = vrsqrt.f32 %v613_v44  ;;  %v486_v52 = vmul.f32 0.027777778, %v427_v51  ;;  %v519_v61 = vmul.f32 %v6417_v50, %v6417_v50  ;;  %v580_v44 = vsub.f32 %v6192_v6, %v6405_v10 }
  0xbb   : > { %v5676_v55 = vpop.eup %5675  ;;  %v429_v60 = vpop.xlane.xlu1 %428  ;;  %v581_v6 = vsub.f32 %v6194_v7, %v6409_v18  ;;  %v582_v18 = vsub.f32 %v6209_v13, %v6413_v38  ;;  %v583_v13 = vsub.f32 %v6211_v14, %v6417_v50 }
  0xbc   : > { %v550_v62 = vsub.f32 %v486_v52, %v518_v45  ;;  %v487_v3 = vmul.f32 0.027777778, %v429_v60  ;;  %v674_v5 = vmul.f32 %v5676_v55, %v578_v56 }
  0xbd   : > { %v303_v4 = vpop.xlane.xlu0 %302 }
  0xbe   : > { %v614_v11 = vadd.f32 1e-05, %v550_v62  ;;  %v551_v12 = vsub.f32 %v487_v3, %v519_v61  ;;  %v6422_v17 = vmul.f32 0.027777778, %v303_v4  ;;  %v710_v36 = vmul.f32 %v6427_v19, %v674_v5 }
  0xbf   : > { %v5678_v24 = vpop.eup %5677  ;;  %v305_v46 = vpop.xlane.xlu1 %304 }
  0xc0   : > { %5683 = vrsqrt.f32 %v614_v11  ;;  %v615_v25 = vadd.f32 1e-05, %v551_v12  ;;  %v520_v26 = vmul.f32 %v6422_v17, %v6422_v17  ;;  %v6432_v29 = vmul.f32 0.027777778, %v305_v46 }
  0xc1   : > { %v431_v31 = vpop.xlane.xlu0 %430  ;;  %v675_v33 = vmul.f32 %v5678_v24, %v579_v1  ;;  %v746_v60 = vadd.f32 %v6438_v43, %v710_v36  ;;  %v584_v50 = vsub.f32 %v6232_v22, %v6422_v17 }
  0xc2   : > { %5685 = vrsqrt.f32 %v615_v25  ;;  %v488_v37 = vmul.f32 0.027777778, %v431_v31  ;;  %v521_v45 = vmul.f32 %v6432_v29, %v6432_v29  ;;  %v585_v22 = vsub.f32 %v6234_v23, %v6432_v29 }
  0xc3   : > { %v433_v2 = vpop.xlane.xlu1 %432  ;;  %v711_v57 = vmul.f32 %v6427_v19, %v675_v33 }
  0xc4   : > { %v552_v51 = vsub.f32 %v488_v37, %v520_v26  ;;  %v489_v52 = vmul.f32 0.027777778, %v433_v2 }
  0xc5   : > { %v5680_v55 = vpop.eup %5679  ;;  %v307_v56 = vpop.xlane.xlu0 %306  ;;  %v747_v61 = vadd.f32 %v6438_v43, %v711_v57 }
  0xc6   : > { %v616_v62 = vadd.f32 1e-05, %v552_v51  ;;  %v553_v3 = vsub.f32 %v489_v52, %v521_v45  ;;  %v6447_v4 = vmul.f32 0.027777778, %v307_v56  ;;  %v676_v5 = vmul.f32 %v5680_v55, %v580_v44 }
  0xc7   : > { %v5682_v11 = vpop.eup %5681  ;;  %v309_v10 = vpop.xlane.xlu1 %308  ;;  %v778_v12 = vpack.c.bf16 %v747_v61, %v746_v60 }
  0xc8   : > { %5687 = vrsqrt.f32 %v616_v62  ;;  %v617_v24 = vadd.f32 1e-05, %v553_v3  ;;  %v522_v1 = vmul.f32 %v6447_v4, %v6447_v4  ;;  %v6453_v46 = vmul.f32 0.027777778, %v309_v10 }
  0xc9   : > { %923 = vmatmul.mubr.bf16.vlgmr.msra.gmra.mxu0 %v778_v12  ;;  %v435_v25 = vpop.xlane.xlu0 %434  ;;  %v677_v26 = vmul.f32 %v5682_v11, %v581_v6  ;;  %v712_v31 = vmul.f32 %v6427_v19, %v676_v5  ;;  %v586_v29 = vsub.f32 %v6252_v30, %v6447_v4 }
  0xca   : > { %5689 = vrsqrt.f32 %v617_v24  ;;  %v490_v33 = vmul.f32 0.027777778, %v435_v25  ;;  %932 = vmatprep.mubr.bf16.mxu0 %v6090_v48  ;;  %v523_v37 = vmul.f32 %v6453_v46, %v6453_v46  ;;  %v587_v30 = vsub.f32 %v6257_v32, %v6453_v46 }
  0xcb   : > { %v437_v36 = vpop.xlane.xlu1 %436  ;;  %v713_v7 = vmul.f32 %v6427_v19, %v677_v26  ;;  %v748_v51 = vadd.f32 %v6438_v43, %v712_v31 }
  0xcc   : > { %v554_v2 = vsub.f32 %v490_v33, %v522_v1  ;;  %v491_v57 = vmul.f32 0.027777778, %v437_v36 }
  0xcd   : > { %v5684_v44 = vpop.eup %5683  ;;  %v311_v45 = vpop.xlane.xlu0 %310  ;;  %v749_v52 = vadd.f32 %v6438_v43, %v713_v7 }
  0xce   : > { %v618_v55 = vadd.f32 1e-05, %v554_v2  ;;  %v555_v56 = vsub.f32 %v491_v57, %v523_v37  ;;  %v6464_v60 = vmul.f32 0.027777778, %v311_v45  ;;  %v678_v61 = vmul.f32 %v5684_v44, %v582_v18 }
  0xcf   : > { %v5686_v62 = vpop.eup %5685  ;;  %v313_v38 = vpop.xlane.xlu1 %312  ;;  %v779_v3 = vpack.c.bf16 %v749_v52, %v748_v51 }
  0xd0   : > { %5691 = vrsqrt.f32 %v618_v55  ;;  %v619_v5 = vadd.f32 1e-05, %v555_v56  ;;  %v524_v11 = vmul.f32 %v6464_v60, %v6464_v60  ;;  %v6470_v6 = vmul.f32 0.027777778, %v313_v38 }
  0xd1   : > { %933 = vmatmul.mubr.bf16.gmra.mxu0 %v779_v3  ;;  %v439_v10 = vpop.xlane.xlu0 %438  ;;  %v679_v12 = vmul.f32 %v5686_v62, %v583_v13  ;;  %v714_v24 = vmul.f32 %v6427_v19, %v678_v61  ;;  %v588_v46 = vsub.f32 %v6275_v39, %v6464_v60 }
  0xd2   : > { %5693 = vrsqrt.f32 %v619_v5  ;;  %v492_v1 = vmul.f32 0.027777778, %v439_v10  ;;  %942 = vmatprep.mubr.bf16.mxu0 %v6090_v48  ;;  %v525_v26 = vmul.f32 %v6470_v6, %v6470_v6  ;;  %v589_v39 = vsub.f32 %v6280_v41, %v6470_v6 }
  0xd3   : > { %v441_v25 = vpop.xlane.xlu1 %440  ;;  %v715_v14 = vmul.f32 %v6427_v19, %v679_v12  ;;  %v750_v18 = vadd.f32 %v6438_v43, %v714_v24 }
  0xd4   : > { %v556_v31 = vsub.f32 %v492_v1, %v524_v11  ;;  %v493_v33 = vmul.f32 0.027777778, %v441_v25 }
  0xd5   : > { %v5688_v36 = vpop.eup %5687  ;;  %v315_v7 = vpop.xlane.xlu0 %314  ;;  %v751_v37 = vadd.f32 %v6438_v43, %v715_v14 }
  0xd6   : > { %v620_v2 = vadd.f32 1e-05, %v556_v31  ;;  %v557_v57 = vsub.f32 %v493_v33, %v525_v26  ;;  %v6481_v44 = vmul.f32 0.027777778, %v315_v7  ;;  %v680_v45 = vmul.f32 %v5688_v36, %v584_v50 }
  0xd7   : > { %v5690_v51 = vpop.eup %5689  ;;  %v317_v17 = vpop.xlane.xlu1 %316  ;;  %v780_v52 = vpack.c.bf16 %v751_v37, %v750_v18 }
  0xd8   : > { %5695 = vrsqrt.f32 %v620_v2  ;;  %v621_v55 = vadd.f32 1e-05, %v557_v57  ;;  %v526_v56 = vmul.f32 %v6481_v44, %v6481_v44  ;;  %v6487_v61 = vmul.f32 0.027777778, %v317_v17 }
  0xd9   : > { %943 = vmatmul.mubr.bf16.gmra.mxu0 %v780_v52  ;;  %v443_v62 = vpop.xlane.xlu0 %442  ;;  %v681_v13 = vmul.f32 %v5690_v51, %v585_v22  ;;  %v716_v38 = vmul.f32 %v6427_v19, %v680_v45  ;;  %v590_v6 = vsub.f32 %v6295_v47, %v6481_v44 }
  0xda   : > { %5697 = vrsqrt.f32 %v621_v55  ;;  %v494_v3 = vmul.f32 0.027777778, %v443_v62  ;;  %952 = vmatprep.mubr.bf16.mxu0 %v6090_v48  ;;  %v527_v11 = vmul.f32 %v6487_v61, %v6487_v61  ;;  %v591_v47 = vsub.f32 %v6298_v49, %v6487_v61 }
  0xdb   : > { %v445_v5 = vpop.xlane.xlu1 %444  ;;  %v717_v23 = vmul.f32 %v6427_v19, %v681_v13  ;;  %v752_v25 = vadd.f32 %v6438_v43, %v716_v38 }
  0xdc   : > { %v558_v10 = vsub.f32 %v494_v3, %v526_v56  ;;  %v495_v12 = vmul.f32 0.027777778, %v445_v5 }
  0xdd   : > { %v5692_v24 = vpop.eup %5691  ;;  %v319_v1 = vpop.xlane.xlu0 %318  ;;  %v753_v14 = vadd.f32 %v6438_v43, %v717_v23 }
  0xde   : > { %v622_v50 = vadd.f32 1e-05, %v558_v10  ;;  %v559_v26 = vsub.f32 %v495_v12, %v527_v11  ;;  %v6498_v31 = vmul.f32 0.027777778, %v319_v1  ;;  %v682_v33 = vmul.f32 %v5692_v24, %v586_v29 }
  0xdf   : > { %v5694_v36 = vpop.eup %5693  ;;  %v321_v4 = vpop.xlane.xlu1 %320  ;;  %v781_v7 = vpack.c.bf16 %v753_v14, %v752_v25 }
  0xe0   : > { %5699 = vrsqrt.f32 %v622_v50  ;;  %v623_v18 = vadd.f32 1e-05, %v559_v26  ;;  %v528_v37 = vmul.f32 %v6498_v31, %v6498_v31  ;;  %v6504_v2 = vmul.f32 0.027777778, %v321_v4 }
  0xe1   : > { %953 = vmatmul.mubr.bf16.gmra.mxu0 %v781_v7  ;;  %v447_v57 = vpop.xlane.xlu0 %446  ;;  %v683_v45 = vmul.f32 %v5694_v36, %v587_v30  ;;  %v718_v51 = vmul.f32 %v6427_v19, %v682_v33  ;;  %v592_v61 = vsub.f32 %v6307_v53, %v6498_v31 }
  0xe2   : > { %5701 = vrsqrt.f32 %v623_v18  ;;  %v496_v22 = vmul.f32 0.027777778, %v447_v57  ;;  %962 = vmatprep.mubr.bf16.mxu0 %v6090_v48  ;;  %v529_v52 = vmul.f32 %v6504_v2, %v6504_v2  ;;  %v593_v53 = vsub.f32 %v6309_v54, %v6504_v2 }
  0xe3   : > { %v449_v17 = vpop.xlane.xlu1 %448  ;;  %v719_v32 = vmul.f32 %v6427_v19, %v683_v45  ;;  %v754_v38 = vadd.f32 %v6438_v43, %v718_v51 }
  0xe4   : > { %v560_v55 = vsub.f32 %v496_v22, %v528_v37  ;;  %v497_v56 = vmul.f32 0.027777778, %v449_v17 }
  0xe5   : > { %v5696_v62 = vpop.eup %5695  ;;  %v323_v13 = vpop.xlane.xlu0 %322  ;;  %v755_v3 = vadd.f32 %v6438_v43, %v719_v32 }
  0xe6   : > { %v624_v5 = vadd.f32 1e-05, %v560_v55  ;;  %v561_v23 = vsub.f32 %v497_v56, %v529_v52  ;;  %v6515_v29 = vmul.f32 0.027777778, %v323_v13  ;;  %v684_v11 = vmul.f32 %v5696_v62, %v588_v46 }
  0xe7   : > { %v5698_v10 = vpop.eup %5697  ;;  %v325_v60 = vpop.xlane.xlu1 %324  ;;  %v782_v12 = vpack.c.bf16 %v755_v3, %v754_v38 }
  0xe8   : > { %5703 = vrsqrt.f32 %v624_v5  ;;  %v625_v24 = vadd.f32 1e-05, %v561_v23  ;;  %v530_v1 = vmul.f32 %v6515_v29, %v6515_v29  ;;  %v6521_v25 = vmul.f32 0.027777778, %v325_v60 }
  0xe9   : > { %963 = vmatmul.mubr.bf16.gmra.mxu0 %v782_v12  ;;  %v451_v14 = vpop.xlane.xlu0 %450  ;;  %v685_v50 = vmul.f32 %v5698_v10, %v589_v39  ;;  %v720_v26 = vmul.f32 %v6427_v19, %v684_v11  ;;  %v594_v2 = vsub.f32 %v6318_v58, %v6515_v29 }
  0xea   : > { %5705 = vrsqrt.f32 %v625_v24  ;;  %v498_v33 = vmul.f32 0.027777778, %v451_v14  ;;  %972 = vmatprep.mubr.bf16.mxu0 %v6090_v48  ;;  %v531_v30 = vmul.f32 %v6521_v25, %v6521_v25  ;;  %v595_v58 = vsub.f32 %v6320_v59, %v6521_v25 }
  0xeb   : > { %v453_v36 = vpop.xlane.xlu1 %452  ;;  %v721_v41 = vmul.f32 %v6427_v19, %v685_v50  ;;  %v756_v57 = vadd.f32 %v6438_v43, %v720_v26 }
  0xec   : > { %v562_v4 = vsub.f32 %v498_v33, %v530_v1  ;;  %v499_v7 = vmul.f32 0.027777778, %v453_v36 }
  0xed   : > { %v5700_v18 = vpop.eup %5699  ;;  %v327_v37 = vpop.xlane.xlu0 %326  ;;  %v757_v45 = vadd.f32 %v6438_v43, %v721_v41 }
  0xee   : > { %v626_v51 = vadd.f32 1e-05, %v562_v4  ;;  %v563_v22 = vsub.f32 %v499_v7, %v531_v30  ;;  %v6532_v17 = vmul.f32 0.027777778, %v327_v37  ;;  %v686_v32 = vmul.f32 %v5700_v18, %v590_v6 }
  0xef   : > { %v5702_v46 = vpop.eup %5701  ;;  %v329_v44 = vpop.xlane.xlu1 %328  ;;  %v783_v52 = vpack.c.bf16 %v757_v45, %v756_v57 }
  0xf0   : > { %5707 = vrsqrt.f32 %v626_v51  ;;  %v627_v55 = vadd.f32 1e-05, %v563_v22  ;;  %v532_v56 = vmul.f32 %v6532_v17, %v6532_v17  ;;  %v6538_v62 = vmul.f32 0.027777778, %v329_v44 }
  0xf1   : > { %973 = vmatmul.mubr.bf16.gmra.mxu0 %v783_v52  ;;  %v455_v13 = vpop.xlane.xlu0 %454  ;;  %v687_v38 = vmul.f32 %v5702_v46, %v591_v47  ;;  %v722_v3 = vmul.f32 %v6427_v19, %v686_v32  ;;  %v596_v25 = vsub.f32 %v6329_v63, %v6532_v17 }
  0xf2   : > { %5709 = vrsqrt.f32 %v627_v55  ;;  %v500_v5 = vmul.f32 0.027777778, %v455_v13  ;;  %982 = vmatprep.mubr.bf16.mxu0 %v6090_v48  ;;  %v533_v11 = vmul.f32 %v6538_v62, %v6538_v62  ;;  %v597_v63 = vsub.f32 %v6331_v0, %v6538_v62 }
  0xf3   : > { %v457_v23 = vpop.xlane.xlu1 %456  ;;  %v723_v49 = vmul.f32 %v6427_v19, %v687_v38  ;;  %v758_v24 = vadd.f32 %v6438_v43, %v722_v3 }
  0xf4   : > { %v564_v10 = vsub.f32 %v500_v5, %v532_v56  ;;  %v501_v39 = vmul.f32 0.027777778, %v457_v23 }
  0xf5   : > { %v5704_v60 = vpop.eup %5703  ;;  %v331_v12 = vpop.xlane.xlu0 %330  ;;  %v759_v1 = vadd.f32 %v6438_v43, %v723_v49 }
  0xf6   : > { %v628_v14 = vadd.f32 1e-05, %v564_v10  ;;  %v565_v50 = vsub.f32 %v501_v39, %v533_v11  ;;  %v6549_v26 = vmul.f32 0.027777778, %v331_v12  ;;  %v688_v33 = vmul.f32 %v5704_v60, %v592_v61 }
  0xf7   : > { %v5706_v36 = vpop.eup %5705  ;;  %v333_v31 = vpop.xlane.xlu1 %332  ;;  %v784_v41 = vpack.c.bf16 %v759_v1, %v758_v24 }
  0xf8   : > { %5711 = vrsqrt.f32 %v628_v14  ;;  %v629_v6 = vadd.f32 1e-05, %v565_v50  ;;  %v534_v30 = vmul.f32 %v6549_v26, %v6549_v26  ;;  %v6555_v4 = vmul.f32 0.027777778, %v333_v31 }
  0xf9   : > { %983 = vmatmul.mubr.bf16.gmra.mxu0 %v784_v41  ;;  %v459_v7 = vpop.xlane.xlu0 %458  ;;  %v689_v18 = vmul.f32 %v5706_v36, %v593_v53  ;;  %v724_v37 = vmul.f32 %v6427_v19, %v688_v33  ;;  %v598_v62 = vsub.f32 %v6340_v8, %v6549_v26 }
  0xfa   : > { %5713 = vrsqrt.f32 %v629_v6  ;;  %v502_v57 = vmul.f32 0.027777778, %v459_v7  ;;  %992 = vmatprep.mubr.bf16.mxu0 %v6090_v48  ;;  %v535_v51 = vmul.f32 %v6555_v4, %v6555_v4  ;;  %v599_v8 = vsub.f32 %v6342_v9, %v6555_v4 }
  0xfb   : > { %v461_v45 = vpop.xlane.xlu1 %460  ;;  %v725_v54 = vmul.f32 %v6427_v19, %v689_v18  ;;  %v760_v44 = vadd.f32 %v6438_v43, %v724_v37 }
  0xfc   : > { %v566_v22 = vsub.f32 %v502_v57, %v534_v30  ;;  %v503_v32 = vmul.f32 0.027777778, %v461_v45 }
  0xfd   : > { %v5708_v46 = vpop.eup %5707  ;;  %v335_v47 = vpop.xlane.xlu0 %334  ;;  %v761_v52 = vadd.f32 %v6438_v43, %v725_v54 }
  0xfe   : > { %v630_v55 = vadd.f32 1e-05, %v566_v22  ;;  %v567_v56 = vsub.f32 %v503_v32, %v535_v51  ;;  %v6566_v13 = vmul.f32 0.027777778, %v335_v47  ;;  %v690_v38 = vmul.f32 %v5708_v46, %v594_v2 }
  0xff   : > { %v5710_v3 = vpop.eup %5709  ;;  %v337_v29 = vpop.xlane.xlu1 %336  ;;  %v785_v5 = vpack.c.bf16 %v761_v52, %v760_v44 }
 0x100   : > { %5715 = vrsqrt.f32 %v630_v55  ;;  %v631_v23 = vadd.f32 1e-05, %v567_v56  ;;  %v536_v49 = vmul.f32 %v6566_v13, %v6566_v13  ;;  %v6572_v61 = vmul.f32 0.027777778, %v337_v29 }
 0x101   : > { %993 = vmatmul.mubr.bf16.gmra.mxu0 %v785_v5  ;;  %v463_v11 = vpop.xlane.xlu0 %462  ;;  %v691_v10 = vmul.f32 %v5710_v3, %v595_v58  ;;  %v726_v39 = vmul.f32 %v6427_v19, %v690_v38  ;;  %v600_v4 = vsub.f32 %v6351_v15, %v6566_v13 }
 0x102   : > { %5717 = vrsqrt.f32 %v631_v23  ;;  %v504_v60 = vmul.f32 0.027777778, %v463_v11  ;;  %1002 = vmatprep.mubr.bf16.mxu0 %v6090_v48  ;;  %v537_v24 = vmul.f32 %v6572_v61, %v6572_v61  ;;  %v601_v15 = vsub.f32 %v6353_v16, %v6572_v61 }
 0x103   : > { %v465_v12 = vpop.xlane.xlu1 %464  ;;  %v727_v59 = vmul.f32 %v6427_v19, %v691_v10  ;;  %v762_v36 = vadd.f32 %v6438_v43, %v726_v39 }
 0x104   : > { %v568_v1 = vsub.f32 %v504_v60, %v536_v49  ;;  %v505_v14 = vmul.f32 0.027777778, %v465_v12 }
 0x105   : > { %v5712_v50 = vpop.eup %5711  ;;  %v339_v33 = vpop.xlane.xlu0 %338  ;;  %v763_v53 = vadd.f32 %v6438_v43, %v727_v59 }
 0x106   : > { %v632_v31 = vadd.f32 1e-05, %v568_v1  ;;  %v569_v41 = vsub.f32 %v505_v14, %v537_v24  ;;  %v6583_v6 = vmul.f32 0.027777778, %v339_v33  ;;  %v692_v30 = vmul.f32 %v5712_v50, %v596_v25 }
 0x107   : > { %v5714_v7 = vpop.eup %5713  ;;  %v341_v17 = vpop.xlane.xlu1 %340  ;;  %v786_v18 = vpack.c.bf16 %v763_v53, %v762_v36 }
 0x108   : > { %5719 = vrsqrt.f32 %v632_v31  ;;  %v633_v37 = vadd.f32 1e-05, %v569_v41  ;;  %v538_v57 = vmul.f32 %v6583_v6, %v6583_v6  ;;  %v6589_v45 = vmul.f32 0.027777778, %v341_v17 }
 0x109   : > { %1003 = vmatmul.mubr.bf16.gmra.mxu0 %v786_v18  ;;  %v467_v54 = vpop.xlane.xlu0 %466  ;;  %v693_v2 = vmul.f32 %v5714_v7, %v597_v63  ;;  %v728_v51 = vmul.f32 %v6427_v19, %v692_v30  ;;  %v602_v61 = vsub.f32 %v6362_v20, %v6583_v6 }
 0x10a   : > { %5721 = vrsqrt.f32 %v633_v37  ;;  %v506_v22 = vmul.f32 0.027777778, %v467_v54  ;;  %1012 = vmatprep.mubr.bf16.mxu0 %v6090_v48  ;;  %v539_v46 = vmul.f32 %v6589_v45, %v6589_v45 }
 0x10b   : > { %v469_v32 = vpop.xlane.xlu1 %468  ;;  %v729_v0 = vmul.f32 %v6427_v19, %v693_v2  ;;  %v764_v56 = vadd.f32 %v6438_v43, %v728_v51 }
 0x10c   : > { %v570_v47 = vsub.f32 %v506_v22, %v538_v57  ;;  %v507_v44 = vmul.f32 0.027777778, %v469_v32 }
 0x10d   : > { %v5716_v52 = vpop.eup %5715  ;;  %v343_v55 = vpop.xlane.xlu0 %342  ;;  %v765_v38 = vadd.f32 %v6438_v43, %v729_v0 }
 0x10e   : > { %v634_v3 = vadd.f32 1e-05, %v570_v47  ;;  %v571_v58 = vsub.f32 %v507_v44, %v539_v46  ;;  %v6600_v29 = vmul.f32 0.027777778, %v343_v55  ;;  %v694_v5 = vmul.f32 %v5716_v52, %v598_v62 }
 0x10f   : > { %v5718_v23 = vpop.eup %5717  ;;  %v345_v26 = vpop.xlane.xlu1 %344  ;;  %v787_v49 = vpack.c.bf16 %v765_v38, %v764_v56 }
 0x110   : > { %5723 = vrsqrt.f32 %v634_v3  ;;  %v635_v11 = vadd.f32 1e-05, %v571_v58  ;;  %v540_v10 = vmul.f32 %v6600_v29, %v6600_v29  ;;  %v6606_v39 = vmul.f32 0.027777778, %v345_v26 }
 0x111   : > { %1013 = vmatmul.mubr.bf16.gmra.mxu0 %v787_v49  ;;  %v471_v60 = vpop.xlane.xlu0 %470  ;;  %v695_v12 = vmul.f32 %v5718_v23, %v599_v8  ;;  %v730_v59 = vmul.f32 %v6427_v19, %v694_v5  ;;  %v603_v8 = vsub.f32 %v6364_v21, %v6589_v45  ;;  %v604_v21 = vsub.f32 %v6373_v27, %v6600_v29 }
 0x112   : > { %5725 = vrsqrt.f32 %v635_v11  ;;  %v508_v25 = vmul.f32 0.027777778, %v471_v60  ;;  %1022 = vmatprep.mubr.bf16.mxu0 %v6090_v48  ;;  %v541_v1 = vmul.f32 %v6606_v39, %v6606_v39 }
 0x113   : > { %v473_v24 = vpop.xlane.xlu1 %472  ;;  %v731_v9 = vmul.f32 %v6427_v19, %v695_v12  ;;  %v766_v53 = vadd.f32 %v6438_v43, %v730_v59 }
 0x114   : > { %v572_v14 = vsub.f32 %v508_v25, %v540_v10  ;;  %v509_v50 = vmul.f32 0.027777778, %v473_v24 }
 0x115   : > { %v5720_v33 = vpop.eup %5719  ;;  %v347_v36 = vpop.xlane.xlu0 %346  ;;  %v767_v31 = vadd.f32 %v6438_v43, %v731_v9 }
 0x116   : > { %v636_v41 = vadd.f32 1e-05, %v572_v14  ;;  %v573_v30 = vsub.f32 %v509_v50, %v541_v1  ;;  %v6617_v7 = vmul.f32 0.027777778, %v347_v36  ;;  %v696_v63 = vmul.f32 %v5720_v33, %v600_v4 }
 0x117   : > { %v5722_v17 = vpop.eup %5721  ;;  %v349_v13 = vpop.xlane.xlu1 %348  ;;  %v788_v18 = vpack.c.bf16 %v767_v31, %v766_v53  ;;  %v605_v33 = vsub.f32 %v6375_v28, %v6606_v39 }
 0x118   : > { %5727 = vrsqrt.f32 %v636_v41  ;;  %v637_v37 = vadd.f32 1e-05, %v573_v30  ;;  %v542_v57 = vmul.f32 %v6617_v7, %v6617_v7  ;;  %v6623_v54 = vmul.f32 0.027777778, %v349_v13 }
 0x119   : > { %1023 = vmatmul.mubr.bf16.gmra.mxu0 %v788_v18  ;;  %v475_v2 = vpop.xlane.xlu0 %474  ;;  %v697_v51 = vmul.f32 %v5722_v17, %v601_v15  ;;  %v732_v22 = vmul.f32 %v6427_v19, %v696_v63  ;;  %v606_v15 = vsub.f32 %v6384_v34, %v6617_v7 }
 0x11a   : > { %5729 = vrsqrt.f32 %v637_v37  ;;  %v510_v32 = vmul.f32 0.027777778, %v475_v2  ;;  %1032 = vmatprep.mubr.bf16.mxu0 %v6090_v48  ;;  %v543_v62 = vmul.f32 %v6623_v54, %v6623_v54  ;;  %v607_v18 = vsub.f32 %v6386_v35, %v6623_v54 }
 0x11b   : > { %v477_v0 = vpop.xlane.xlu1 %476  ;;  %v733_v16 = vmul.f32 %v6427_v19, %v697_v51  ;;  %v768_v55 = vadd.f32 %v6438_v43, %v732_v22 }
 0x11c   : > { %v574_v46 = vsub.f32 %v510_v32, %v542_v57  ;;  %v511_v47 = vmul.f32 0.027777778, %v477_v0 }
 0x11d   : > { %v5724_v44 = vpop.eup %5723  ;;  %v351_v52 = vpop.xlane.xlu0 %350  ;;  %v769_v56 = vadd.f32 %v6438_v43, %v733_v16 }
 0x11e   : > { %v638_v38 = vadd.f32 1e-05, %v574_v46  ;;  %v575_v3 = vsub.f32 %v511_v47, %v543_v62  ;;  %v384_v58 = vmul.f32 0.027777778, %v351_v52  ;;  %v698_v5 = vmul.f32 %v5724_v44, %v602_v61 }
 0x11f   : > { %v5726_v23 = vpop.eup %5725  ;;  %v353_v20 = vpop.xlane.xlu1 %352  ;;  %v789_v6 = vpack.c.bf16 %v769_v56, %v768_v55 }
 0x120   : > { %5731 = vrsqrt.f32 %v638_v38  ;;  %v639_v26 = vadd.f32 1e-05, %v575_v3  ;;  %v544_v49 = vmul.f32 %v384_v58, %v384_v58  ;;  %v385_v11 = vmul.f32 0.027777778, %v353_v20 }
 0x121   : > { %1033 = vmatmul.mubr.bf16.gmra.mxu0 %v789_v6  ;;  %v479_v10 = vpop.xlane.xlu0 %478  ;;  %v699_v60 = vmul.f32 %v5726_v23, %v603_v8  ;;  %v734_v12 = vmul.f32 %v6427_v19, %v698_v5  ;;  %v608_v34 = vsub.f32 %v6395_v40, %v384_v58 }
 0x122   : > { %5733 = vrsqrt.f32 %v639_v26  ;;  %v512_v59 = vmul.f32 0.027777778, %v479_v10  ;;  %1042 = vmatprep.mubr.bf16.mxu0 %v6090_v48  ;;  %v545_v45 = vmul.f32 %v385_v11, %v385_v11  ;;  %v609_v35 = vsub.f32 %v6397_v42, %v385_v11 }
 0x123   : > { %v481_v25 = vpop.xlane.xlu1 %480  ;;  %v735_v24 = vmul.f32 %v6427_v19, %v699_v60  ;;  %v770_v14 = vadd.f32 %v6438_v43, %v734_v12 }
 0x124   : > { %v576_v9 = vsub.f32 %v512_v59, %v544_v49  ;;  %v513_v4 = vmul.f32 0.027777778, %v481_v25 }
 0x125   : > { %v5728_v1 = vpop.eup %5727  ;;  %v771_v50 = vadd.f32 %v6438_v43, %v735_v24 }
 0x126   : > { %v640_v36 = vadd.f32 1e-05, %v576_v9  ;;  %v577_v53 = vsub.f32 %v513_v4, %v545_v45  ;;  %v700_v31 = vmul.f32 %v5728_v1, %v604_v21 }
 0x127   : > { %v5730_v41 = vpop.eup %5729  ;;  %v790_v30 = vpack.c.bf16 %v771_v50, %v770_v14 }
 0x128   : > { %5735 = vrsqrt.f32 %v640_v36  ;;  %v641_v63 = vadd.f32 1e-05, %v577_v53  ;;  %v701_v17 = vmul.f32 %v5730_v41, %v605_v33  ;;  %v736_v27 = vmul.f32 %v6427_v19, %v700_v31 }
 0x129   : > { %1043 = vmatmul.mubr.bf16.gmra.mxu0 %v790_v30 }
 0x12a   : > { %5737 = vrsqrt.f32 %v641_v63  ;;  %1052 = vmatprep.mubr.bf16.mxu0 %v6090_v48  ;;  %v737_v29 = vmul.f32 %v6427_v19, %v701_v17  ;;  %v772_v28 = vadd.f32 %v6438_v43, %v736_v27 }
 0x12c   : > { %v773_v39 = vadd.f32 %v6438_v43, %v737_v29 }
 0x12d   : > { %v5732_v13 = vpop.eup %5731 }
 0x12e   : > { %v791_v37 = vpack.c.bf16 %v773_v39, %v772_v28  ;;  %v702_v57 = vmul.f32 %v5732_v13, %v606_v15 }
 0x12f   : > { %v5734_v2 = vpop.eup %5733 }
 0x130   : > { %v703_v51 = vmul.f32 %v5734_v2, %v607_v18  ;;  %v738_v22 = vmul.f32 %v6427_v19, %v702_v57 }
 0x131   : > { %1053 = vmatmul.mubr.bf16.gmra.mxu0 %v791_v37 }
 0x132   : > { %1062 = vmatprep.mubr.bf16.mxu0 %v6090_v48  ;;  %v739_v32 = vmul.f32 %v6427_v19, %v703_v51  ;;  %v774_v7 = vadd.f32 %v6438_v43, %v738_v22 }
 0x134   : > { %v775_v0 = vadd.f32 %v6438_v43, %v739_v32 }
 0x135   : > { %v5736_v16 = vpop.eup %5735 }
 0x136   : > { %v792_v54 = vpack.c.bf16 %v775_v0, %v774_v7  ;;  %v704_v61 = vmul.f32 %v5736_v16, %v608_v34 }
 0x137   : > { %v5738_v62 = vpop.eup %5737 }
 0x138   : > { %v705_v46 = vmul.f32 %v5738_v62, %v609_v35  ;;  %v740_v47 = vmul.f32 %v6427_v19, %v704_v61 }
 0x139   : > { %1063 = vmatmul.mubr.bf16.gmra.mxu0 %v792_v54 }
 0x13a   : > { %1072 = vmatprep.mubr.bf16.mxu0 %v6090_v48  ;;  %v741_v44 = vmul.f32 %v6427_v19, %v705_v46  ;;  %v776_v40 = vadd.f32 %v6438_v43, %v740_v47 }
 0x13c   : > { %v777_v52 = vadd.f32 %v6438_v43, %v741_v44 }
 0x13e   : > { %v793_v55 = vpack.c.bf16 %v777_v52, %v776_v40 }
 0x141   : > { %1073 = vmatmul.mubr.bf16.gmra.mxu0 %v793_v55 }
 0x189   : > { %v6666_v56 = vpop.f32.mrf.mxu0 }
 0x18a   : > { %v1083_v42 = vmul.f32 0.125, %v6666_v56 }
 0x18b   : > { %v926_v38 = vpop.f32.mrf.mxu0 }
 0x18c   : > { %v5008_v3 = vpack.c.bf16 %v1083_v42, %v1083_v42  ;;  %v5072_v58 = vpack.c.bf16 %v926_v38, %v926_v38  ;;  %1661 = vst.msk [vmem:[#allocation5] sm:$0xff] %vm1660_vm0, %v926_v38 }
 0x18d   : > { %v6670_v48 = vpop.f32.mrf.mxu0 }
 0x18e   : > { %1244 = vst.msk [vmem:[#allocation2] sm:$0xf] %vm1243_vm1, %v5008_v3  ;;  %1628 = vst.msk [vmem:[#allocation4] sm:$0xf] %vm1243_vm1, %v5072_v58  ;;  %v1084_v19 = vmul.f32 0.125, %v6670_v48 }
 0x18f   : > { %v930_v43 = vpop.f32.mrf.mxu0 }
 0x190   : > { %v5009_v5 = vpack.c.bf16 %v1084_v19, %v1084_v19  ;;  %v5073_v23 = vpack.c.bf16 %v930_v43, %v930_v43  ;;  %1662 = vst.msk [vmem:[#allocation5 + $0x8] sm:$0xff] %vm1660_vm0, %v930_v43 }
 0x191   : > { %v6676_v8 = vpop.f32.mrf.mxu0 }
 0x192   : > { %1245 = vst.msk [vmem:[#allocation2 + $0x4] sm:$0xf] %vm1243_vm1, %v5009_v5  ;;  %1629 = vst.msk [vmem:[#allocation4 + $0x4] sm:$0xf] %vm1243_vm1, %v5073_v23  ;;  %v1085_v20 = vmul.f32 0.125, %v6676_v8 }
 0x193   : > { %v936_v6 = vpop.f32.mrf.mxu0 }
 0x194   : > { %v5010_v26 = vpack.c.bf16 %v1085_v20, %v1085_v20  ;;  %v5074_v49 = vpack.c.bf16 %v936_v6, %v936_v6  ;;  %1663 = vst.msk [vmem:[#allocation5 + $0x10] sm:$0xff] %vm1660_vm0, %v936_v6 }
 0x195   : > { %v6682_v11 = vpop.f32.mrf.mxu0 }
 0x196   : > { %1246 = vst.msk [vmem:[#allocation2 + $0x8] sm:$0xf] %vm1243_vm1, %v5010_v26  ;;  %1630 = vst.msk [vmem:[#allocation4 + $0x8] sm:$0xf] %vm1243_vm1, %v5074_v49  ;;  %v1086_v10 = vmul.f32 0.125, %v6682_v11 }
 0x197   : > { %v940_v60 = vpop.f32.mrf.mxu0 }
 0x198   : > { %v5011_v12 = vpack.c.bf16 %v1086_v10, %v1086_v10  ;;  %v5075_v59 = vpack.c.bf16 %v940_v60, %v940_v60  ;;  %1664 = vst.msk [vmem:[#allocation5 + $0x18] sm:$0xff] %vm1660_vm0, %v940_v60 }
 0x199   : > { %v6688_v25 = vpop.f32.mrf.mxu0  ;;  %v5615_v24 = vld [vmem:[#allocation2] sm:$0xff]  }
 0x19a   : > { %1247 = vst.msk [vmem:[#allocation2 + $0xc] sm:$0xf] %vm1243_vm1, %v5011_v12  ;;  %1631 = vst.msk [vmem:[#allocation4 + $0xc] sm:$0xf] %vm1243_vm1, %v5075_v59  ;;  %v1087_v21 = vmul.f32 0.125, %v6688_v25  ;;  %5200 = vmatprep.mubr.msk.bf16.mxu1 %vm1660_vm0, %v5615_v24 }
 0x19b   : > { %v946_v45 = vpop.f32.mrf.mxu0 }
 0x19c   : > { %v5012_v9 = vpack.c.bf16 %v1087_v21, %v1087_v21  ;;  %v5076_v4 = vpack.c.bf16 %v946_v45, %v946_v45  ;;  %1665 = vst.msk [vmem:[#allocation5 + $0x20] sm:$0xff] %vm1660_vm0, %v946_v45 }
 0x19d   : > { %v6695_v1 = vpop.f32.mrf.mxu0 }
 0x19e   : > { %1248 = vst.msk [vmem:[#allocation2 + $0x10] sm:$0xf] %vm1243_vm1, %v5012_v9  ;;  %1632 = vst.msk [vmem:[#allocation4 + $0x10] sm:$0xf] %vm1243_vm1, %v5076_v4  ;;  %v1088_v14 = vmul.f32 0.125, %v6695_v1 }
 0x19f   : > { %v950_v50 = vpop.f32.mrf.mxu0 }
 0x1a0   : > { %v5013_v33 = vpack.c.bf16 %v1088_v14, %v1088_v14  ;;  %v5077_v36 = vpack.c.bf16 %v950_v50, %v950_v50  ;;  %1666 = vst.msk [vmem:[#allocation5 + $0x28] sm:$0xff] %vm1660_vm0, %v950_v50 }
 0x1a1   : > { %v6701_v53 = vpop.f32.mrf.mxu0 }
 0x1a2   : > { %1249 = vst.msk [vmem:[#allocation2 + $0x14] sm:$0xf] %vm1243_vm1, %v5013_v33  ;;  %1633 = vst.msk [vmem:[#allocation4 + $0x14] sm:$0xf] %vm1243_vm1, %v5077_v36  ;;  %v1089_v31 = vmul.f32 0.125, %v6701_v53 }
 0x1a3   : > { %v956_v41 = vpop.f32.mrf.mxu0 }
 0x1a4   : > { %v5014_v30 = vpack.c.bf16 %v1089_v31, %v1089_v31  ;;  %v5078_v63 = vpack.c.bf16 %v956_v41, %v956_v41  ;;  %1667 = vst.msk [vmem:[#allocation5 + $0x30] sm:$0xff] %vm1660_vm0, %v956_v41 }
 0x1a5   : > { %v6707_v17 = vpop.f32.mrf.mxu0 }
 0x1a6   : > { %1250 = vst.msk [vmem:[#allocation2 + $0x18] sm:$0xf] %vm1243_vm1, %v5014_v30  ;;  %1634 = vst.msk [vmem:[#allocation4 + $0x18] sm:$0xf] %vm1243_vm1, %v5078_v63  ;;  %v1090_v27 = vmul.f32 0.125, %v6707_v17 }
 0x1a7   : > { %v960_v29 = vpop.f32.mrf.mxu0 }
 0x1a8   : > { %v5015_v15 = vpack.c.bf16 %v1090_v27, %v1090_v27  ;;  %v5079_v28 = vpack.c.bf16 %v960_v29, %v960_v29  ;;  %1668 = vst.msk [vmem:[#allocation5 + $0x38] sm:$0xff] %vm1660_vm0, %v960_v29 }
 0x1a9   : > { %v6713_v39 = vpop.f32.mrf.mxu0 }
 0x1aa   : > { %1251 = vst.msk [vmem:[#allocation2 + $0x1c] sm:$0xf] %vm1243_vm1, %v5015_v15  ;;  %1635 = vst.msk [vmem:[#allocation4 + $0x1c] sm:$0xf] %vm1243_vm1, %v5079_v28  ;;  %v1091_v13 = vmul.f32 0.125, %v6713_v39 }
 0x1ab   : > { %v966_v18 = vpop.f32.mrf.mxu0 }
 0x1ac   : > { %v5016_v37 = vpack.c.bf16 %v1091_v13, %v1091_v13  ;;  %v5080_v57 = vpack.c.bf16 %v966_v18, %v966_v18  ;;  %1669 = vst.msk [vmem:[#allocation5 + $0x40] sm:$0xff] %vm1660_vm0, %v966_v18 }
 0x1ad   : > { %v6719_v2 = vpop.f32.mrf.mxu0 }
 0x1ae   : > { %1252 = vst.msk [vmem:[#allocation2 + $0x20] sm:$0xf] %vm1243_vm1, %v5016_v37  ;;  %1636 = vst.msk [vmem:[#allocation4 + $0x20] sm:$0xf] %vm1243_vm1, %v5080_v57  ;;  %v1092_v51 = vmul.f32 0.125, %v6719_v2 }
 0x1af   : > { %v970_v22 = vpop.f32.mrf.mxu0 }
 0x1b0   : > { %v5017_v32 = vpack.c.bf16 %v1092_v51, %v1092_v51  ;;  %v5081_v34 = vpack.c.bf16 %v970_v22, %v970_v22  ;;  %1670 = vst.msk [vmem:[#allocation5 + $0x48] sm:$0xff] %vm1660_vm0, %v970_v22 }
 0x1b1   : > { %v6725_v7 = vpop.f32.mrf.mxu0 }
 0x1b2   : > { %1253 = vst.msk [vmem:[#allocation2 + $0x24] sm:$0xf] %vm1243_vm1, %v5017_v32  ;;  %1637 = vst.msk [vmem:[#allocation4 + $0x24] sm:$0xf] %vm1243_vm1, %v5081_v34  ;;  %v1093_v0 = vmul.f32 0.125, %v6725_v7 }
 0x1b3   : > { %v976_v16 = vpop.f32.mrf.mxu0 }
 0x1b4   : > { %v5018_v35 = vpack.c.bf16 %v1093_v0, %v1093_v0  ;;  %v5082_v54 = vpack.c.bf16 %v976_v16, %v976_v16  ;;  %1671 = vst.msk [vmem:[#allocation5 + $0x50] sm:$0xff] %vm1660_vm0, %v976_v16 }
 0x1b5   : > { %v6731_v61 = vpop.f32.mrf.mxu0 }
 0x1b6   : > { %1254 = vst.msk [vmem:[#allocation2 + $0x28] sm:$0xf] %vm1243_vm1, %v5018_v35  ;;  %1638 = vst.msk [vmem:[#allocation4 + $0x28] sm:$0xf] %vm1243_vm1, %v5082_v54  ;;  %v1094_v62 = vmul.f32 0.125, %v6731_v61 }
 0x1b7   : > { %v980_v46 = vpop.f32.mrf.mxu0 }
 0x1b8   : > { %v5019_v47 = vpack.c.bf16 %v1094_v62, %v1094_v62  ;;  %v5083_v44 = vpack.c.bf16 %v980_v46, %v980_v46  ;;  %1672 = vst.msk [vmem:[#allocation5 + $0x58] sm:$0xff] %vm1660_vm0, %v980_v46 }
 0x1b9   : > { %v984_v40 = vpop.f32.mrf.mxu0 }
 0x1ba   : > { %1255 = vst.msk [vmem:[#allocation2 + $0x2c] sm:$0xf] %vm1243_vm1, %v5019_v47  ;;  %1639 = vst.msk [vmem:[#allocation4 + $0x2c] sm:$0xf] %vm1243_vm1, %v5083_v44  ;;  %v1095_v52 = vmul.f32 0.125, %v984_v40  ;;  %v5052_v12 = vpack.c.bf16 %v984_v40, %v984_v40 }
 0x1bb   : > { %v986_v55 = vpop.f32.mrf.mxu0 }
 0x1bc   : > { %v5020_v42 = vpack.c.bf16 %v1095_v52, %v1095_v52  ;;  %v5084_v38 = vpack.c.bf16 %v986_v55, %v986_v55  ;;  %1673 = vst.msk [vmem:[#allocation5 + $0x60] sm:$0xff] %vm1660_vm0, %v986_v55 }
 0x1bd   : > { %v6740_v3 = vpop.f32.mrf.mxu0 }
 0x1be   : > { %1256 = vst.msk [vmem:[#allocation2 + $0x30] sm:$0xf] %vm1243_vm1, %v5020_v42  ;;  %1640 = vst.msk [vmem:[#allocation4 + $0x30] sm:$0xf] %vm1243_vm1, %v5084_v38  ;;  %v1096_v58 = vmul.f32 0.125, %v6740_v3 }
 0x1bf   : > { %v990_v19 = vpop.f32.mrf.mxu0 }
 0x1c0   : > { %v5021_v43 = vpack.c.bf16 %v1096_v58, %v1096_v58  ;;  %v5085_v5 = vpack.c.bf16 %v990_v19, %v990_v19  ;;  %1674 = vst.msk [vmem:[#allocation5 + $0x68] sm:$0xff] %vm1660_vm0, %v990_v19 }
 0x1c1   : > { %v994_v23 = vpop.f32.mrf.mxu0 }
 0x1c2   : > { %1257 = vst.msk [vmem:[#allocation2 + $0x34] sm:$0xf] %vm1243_vm1, %v5021_v43  ;;  %1641 = vst.msk [vmem:[#allocation4 + $0x34] sm:$0xf] %vm1243_vm1, %v5085_v5  ;;  %v1097_v20 = vmul.f32 0.125, %v994_v23  ;;  %v5054_v6 = vpack.c.bf16 %v994_v23, %v994_v23 }
 0x1c3   : > { %v996_v26 = vpop.f32.mrf.mxu0 }
 0x1c4   : > { %v5022_v49 = vpack.c.bf16 %v1097_v20, %v1097_v20  ;;  %v5086_v10 = vpack.c.bf16 %v996_v26, %v996_v26  ;;  %1675 = vst.msk [vmem:[#allocation5 + $0x70] sm:$0xff] %vm1660_vm0, %v996_v26  ;;  %1400 = vrot.lane.b32.xlu0 %v5054_v6, %s6091_s15 }
 0x1c5   : > { %v998_v60 = vpop.f32.mrf.mxu0 }
 0x1c6   : > { %1258 = vst.msk [vmem:[#allocation2 + $0x38] sm:$0xf] %vm1243_vm1, %v5022_v49  ;;  %1642 = vst.msk [vmem:[#allocation4 + $0x38] sm:$0xf] %vm1243_vm1, %v5086_v10  ;;  %v1098_v59 = vmul.f32 0.125, %v998_v60  ;;  %v5055_v24 = vpack.c.bf16 %v998_v60, %v998_v60 }
 0x1c7   : > { %v1000_v21 = vpop.f32.mrf.mxu0 }
 0x1c8   : > { %v5023_v45 = vpack.c.bf16 %v1098_v59, %v1098_v59  ;;  %v5087_v9 = vpack.c.bf16 %v1000_v21, %v1000_v21  ;;  %1676 = vst.msk [vmem:[#allocation5 + $0x78] sm:$0xff] %vm1660_vm0, %v1000_v21  ;;  %1396 = vrot.lane.b32.xlu0 %v5052_v12, %s6091_s15  ;;  %1402 = vrot.lane.b32.xlu1 %v5055_v24, %s6091_s15 }
 0x1c9   : > { %v6755_v4 = vpop.f32.mrf.mxu0 }
 0x1ca   : > { %1259 = vst.msk [vmem:[#allocation2 + $0x3c] sm:$0xf] %vm1243_vm1, %v5023_v45  ;;  %1643 = vst.msk [vmem:[#allocation4 + $0x3c] sm:$0xf] %vm1243_vm1, %v5087_v9  ;;  %v1099_v14 = vmul.f32 0.125, %v6755_v4 }
 0x1cb   : > { %v1006_v50 = vpop.f32.mrf.mxu0 }
 0x1cc   : > { %v5024_v33 = vpack.c.bf16 %v1099_v14, %v1099_v14  ;;  %v5088_v36 = vpack.c.bf16 %v1006_v50, %v1006_v50  ;;  %1677 = vst.msk [vmem:[#allocation5 + $0x80] sm:$0xff] %vm1660_vm0, %v1006_v50 }
 0x1cd   : > { %v6761_v31 = vpop.f32.mrf.mxu0 }
 0x1ce   : > { %1260 = vst.msk [vmem:[#allocation2 + $0x40] sm:$0xf] %vm1243_vm1, %v5024_v33  ;;  %1644 = vst.msk [vmem:[#allocation4 + $0x40] sm:$0xf] %vm1243_vm1, %v5088_v36  ;;  %v1100_v41 = vmul.f32 0.125, %v6761_v31 }
 0x1cf   : > { %v1010_v30 = vpop.f32.mrf.mxu0 }
 0x1d0   : > { %v5025_v63 = vpack.c.bf16 %v1100_v41, %v1100_v41  ;;  %v5089_v27 = vpack.c.bf16 %v1010_v30, %v1010_v30  ;;  %1678 = vst.msk [vmem:[#allocation5 + $0x88] sm:$0xff] %vm1660_vm0, %v1010_v30 }
 0x1d1   : > { %v6767_v29 = vpop.f32.mrf.mxu0 }
 0x1d2   : > { %1261 = vst.msk [vmem:[#allocation2 + $0x44] sm:$0xf] %vm1243_vm1, %v5025_v63  ;;  %1645 = vst.msk [vmem:[#allocation4 + $0x44] sm:$0xf] %vm1243_vm1, %v5089_v27  ;;  %v1101_v15 = vmul.f32 0.125, %v6767_v29 }
 0x1d3   : > { %v1016_v28 = vpop.f32.mrf.mxu0 }
 0x1d4   : > { %v5026_v13 = vpack.c.bf16 %v1101_v15, %v1101_v15  ;;  %v5090_v18 = vpack.c.bf16 %v1016_v28, %v1016_v28  ;;  %1679 = vst.msk [vmem:[#allocation5 + $0x90] sm:$0xff] %vm1660_vm0, %v1016_v28 }
 0x1d5   : > { %v6773_v37 = vpop.f32.mrf.mxu0 }
 0x1d6   : > { %1262 = vst.msk [vmem:[#allocation2 + $0x48] sm:$0xf] %vm1243_vm1, %v5026_v13  ;;  %1646 = vst.msk [vmem:[#allocation4 + $0x48] sm:$0xf] %vm1243_vm1, %v5090_v18  ;;  %v1102_v57 = vmul.f32 0.125, %v6773_v37 }
 0x1d7   : > { %v1020_v51 = vpop.f32.mrf.mxu0 }
 0x1d8   : > { %v5027_v22 = vpack.c.bf16 %v1102_v57, %v1102_v57  ;;  %v5091_v32 = vpack.c.bf16 %v1020_v51, %v1020_v51  ;;  %1680 = vst.msk [vmem:[#allocation5 + $0x98] sm:$0xff] %vm1660_vm0, %v1020_v51 }
 0x1d9   : > { %v6779_v34 = vpop.f32.mrf.mxu0 }
 0x1da   : > { %1263 = vst.msk [vmem:[#allocation2 + $0x4c] sm:$0xf] %vm1243_vm1, %v5027_v22  ;;  %1647 = vst.msk [vmem:[#allocation4 + $0x4c] sm:$0xf] %vm1243_vm1, %v5091_v32  ;;  %v1103_v0 = vmul.f32 0.125, %v6779_v34 }
 0x1db   : > { %v1026_v16 = vpop.f32.mrf.mxu0 }
 0x1dc   : > { %v5028_v35 = vpack.c.bf16 %v1103_v0, %v1103_v0  ;;  %v5092_v54 = vpack.c.bf16 %v1026_v16, %v1026_v16  ;;  %1681 = vst.msk [vmem:[#allocation5 + $0xa0] sm:$0xff] %vm1660_vm0, %v1026_v16  ;;  %v5050_v0 = vpack.c.bf16 %v6725_v7, %v6725_v7 }
 0x1dd   : > { %v6785_v62 = vpop.f32.mrf.mxu0 }
 0x1de   : > { %1264 = vst.msk [vmem:[#allocation2 + $0x50] sm:$0xf] %vm1243_vm1, %v5028_v35  ;;  %1648 = vst.msk [vmem:[#allocation4 + $0x50] sm:$0xf] %vm1243_vm1, %v5092_v54  ;;  %v1104_v46 = vmul.f32 0.125, %v6785_v62 }
 0x1df   : > { %v1030_v47 = vpop.f32.mrf.mxu0 }
 0x1e0   : > { %v5029_v44 = vpack.c.bf16 %v1104_v46, %v1104_v46  ;;  %v5093_v40 = vpack.c.bf16 %v1030_v47, %v1030_v47  ;;  %1682 = vst.msk [vmem:[#allocation5 + $0xa8] sm:$0xff] %vm1660_vm0, %v1030_v47 }
 0x1e1   : > { %v6791_v52 = vpop.f32.mrf.mxu0 }
 0x1e2   : > { %1265 = vst.msk [vmem:[#allocation2 + $0x54] sm:$0xf] %vm1243_vm1, %v5029_v44  ;;  %1649 = vst.msk [vmem:[#allocation4 + $0x54] sm:$0xf] %vm1243_vm1, %v5093_v40  ;;  %v1105_v55 = vmul.f32 0.125, %v6791_v52 }
 0x1e3   : > { %v1036_v42 = vpop.f32.mrf.mxu0 }
 0x1e4   : > { %v5030_v38 = vpack.c.bf16 %v1105_v55, %v1105_v55  ;;  %v5094_v58 = vpack.c.bf16 %v1036_v42, %v1036_v42  ;;  %1683 = vst.msk [vmem:[#allocation5 + $0xb0] sm:$0xff] %vm1660_vm0, %v1036_v42 }
 0x1e5   : > { %v6797_v19 = vpop.f32.mrf.mxu0 }
 0x1e6   : > { %1266 = vst.msk [vmem:[#allocation2 + $0x58] sm:$0xf] %vm1243_vm1, %v5030_v38  ;;  %1650 = vst.msk [vmem:[#allocation4 + $0x58] sm:$0xf] %vm1243_vm1, %v5094_v58  ;;  %v1106_v43 = vmul.f32 0.125, %v6797_v19 }
 0x1e7   : > { %v1040_v5 = vpop.f32.mrf.mxu0 }
 0x1e8   : > { %v5031_v23 = vpack.c.bf16 %v1106_v43, %v1106_v43  ;;  %v5095_v20 = vpack.c.bf16 %v1040_v5, %v1040_v5  ;;  %1684 = vst.msk [vmem:[#allocation5 + $0xb8] sm:$0xff] %vm1660_vm0, %v1040_v5  ;;  %v5048_v43 = vpack.c.bf16 %v6713_v39, %v6713_v39 }
 0x1e9   : > { %v6803_v6 = vpop.f32.mrf.mxu0 }
 0x1ea   : > { %1267 = vst.msk [vmem:[#allocation2 + $0x5c] sm:$0xf] %vm1243_vm1, %v5031_v23  ;;  %1651 = vst.msk [vmem:[#allocation4 + $0x5c] sm:$0xf] %vm1243_vm1, %v5095_v20  ;;  %v1107_v26 = vmul.f32 0.125, %v6803_v6  ;;  %v5064_v39 = vpack.c.bf16 %v6803_v6, %v6803_v6  ;;  %v5051_v6 = vpack.c.bf16 %v6731_v61, %v6731_v61 }
 0x1eb   : > { %v1046_v49 = vpop.f32.mrf.mxu0 }
 0x1ec   : > { %v5032_v10 = vpack.c.bf16 %v1107_v26, %v1107_v26  ;;  %v5096_v60 = vpack.c.bf16 %v1046_v49, %v1046_v49  ;;  %1685 = vst.msk [vmem:[#allocation5 + $0xc0] sm:$0xff] %vm1660_vm0, %v1046_v49 }
 0x1ed   : > { %v6809_v12 = vpop.f32.mrf.mxu0 }
 0x1ee   : > { %1268 = vst.msk [vmem:[#allocation2 + $0x60] sm:$0xf] %vm1243_vm1, %v5032_v10  ;;  %1652 = vst.msk [vmem:[#allocation4 + $0x60] sm:$0xf] %vm1243_vm1, %v5096_v60  ;;  %v1108_v59 = vmul.f32 0.125, %v6809_v12  ;;  %v5053_v10 = vpack.c.bf16 %v6740_v3, %v6740_v3  ;;  %v5046_v60 = vpack.c.bf16 %v6701_v53, %v6701_v53 }
 0x1ef   : > { %v1050_v24 = vpop.f32.mrf.mxu0 }
 0x1f0   : > { %v5033_v21 = vpack.c.bf16 %v1108_v59, %v1108_v59  ;;  %v5097_v45 = vpack.c.bf16 %v1050_v24, %v1050_v24  ;;  %1686 = vst.msk [vmem:[#allocation5 + $0xc8] sm:$0xff] %vm1660_vm0, %v1050_v24  ;;  %v5062_v24 = vpack.c.bf16 %v6791_v52, %v6791_v52  ;;  %v6877_v52 = vld [vmem:[#allocation4 + $0x30] sm:$0xff]  }
 0x1f1   : > { %v1054_v9 = vpop.f32.mrf.mxu0 }
 0x1f2   : > { %1269 = vst.msk [vmem:[#allocation2 + $0x64] sm:$0xf] %vm1243_vm1, %v5033_v21  ;;  %1653 = vst.msk [vmem:[#allocation4 + $0x64] sm:$0xf] %vm1243_vm1, %v5097_v45  ;;  %v1109_v14 = vmul.f32 0.125, %v1054_v9  ;;  %v5066_v44 = vpack.c.bf16 %v1054_v9, %v1054_v9  ;;  %v6865_v21 = vld [vmem:[#allocation4 + $0x38] sm:$0xff]   ;;  %v5044_v45 = vpack.c.bf16 %v6688_v25, %v6688_v25  ;;  %v5060_v25 = vpack.c.bf16 %v6779_v34, %v6779_v34 }
 0x1f3   : > { %v1056_v50 = vpop.f32.mrf.mxu0  ;;  %v6901_v34 = vld [vmem:[#allocation4 + $0x20] sm:$0xff]  }
 0x1f4   : > { %v5034_v33 = vpack.c.bf16 %v1109_v14, %v1109_v14  ;;  %v5098_v36 = vpack.c.bf16 %v1056_v50, %v1056_v50  ;;  %1687 = vst.msk [vmem:[#allocation5 + $0xd0] sm:$0xff] %vm1660_vm0, %v1056_v50  ;;  %v5049_v14 = vpack.c.bf16 %v6719_v2, %v6719_v2  ;;  %v6889_v50 = vld [vmem:[#allocation4 + $0x28] sm:$0xff]   ;;  %v5065_v2 = vpack.c.bf16 %v6809_v12, %v6809_v12  ;;  %v6913_v12 = vld [vmem:[#allocation4 + $0x18] sm:$0xff]  }
 0x1f5   : > { %v6818_v41 = vpop.f32.mrf.mxu0 }
 0x1f6   : > { %1270 = vst.msk [vmem:[#allocation2 + $0x68] sm:$0xf] %vm1243_vm1, %v5034_v33  ;;  %1654 = vst.msk [vmem:[#allocation4 + $0x68] sm:$0xf] %vm1243_vm1, %v5098_v36  ;;  %v1110_v30 = vmul.f32 0.125, %v6818_v41  ;;  %v5067_v61 = vpack.c.bf16 %v6818_v41, %v6818_v41  ;;  %v5042_v36 = vpack.c.bf16 %v6676_v8, %v6676_v8  ;;  %v6905_v41 = vld [vmem:[#allocation4 + $0x58] sm:$0xff]   ;;  %v5058_v8 = vpack.c.bf16 %v6767_v29, %v6767_v29 }
 0x1f7   : > { %v1060_v63 = vpop.f32.mrf.mxu0  ;;  %v6925_v29 = vld [vmem:[#allocation4 + $0x10] sm:$0xff]  }
 0x1f8   : > { %v5035_v27 = vpack.c.bf16 %v1110_v30, %v1110_v30  ;;  %v5099_v15 = vpack.c.bf16 %v1060_v63, %v1060_v63  ;;  %1688 = vst.msk [vmem:[#allocation5 + $0xd8] sm:$0xff] %vm1660_vm0, %v1060_v63  ;;  %v5047_v30 = vpack.c.bf16 %v6707_v17, %v6707_v17  ;;  %v6917_v63 = vld [vmem:[#allocation4 + $0x50] sm:$0xff]   ;;  %v5063_v17 = vpack.c.bf16 %v6797_v19, %v6797_v19  ;;  %v6937_v19 = vld [vmem:[#allocation4 + $0x8] sm:$0xff]  }
 0x1f9   : > { %v1064_v28 = vpop.f32.mrf.mxu0  ;;  %v6893_v33 = vld [vmem:[#allocation4 + $0x60] sm:$0xff]  }
 0x1fa   : > { %1271 = vst.msk [vmem:[#allocation2 + $0x6c] sm:$0xf] %vm1243_vm1, %v5035_v27  ;;  %1655 = vst.msk [vmem:[#allocation4 + $0x6c] sm:$0xf] %vm1243_vm1, %v5099_v15  ;;  %v1111_v13 = vmul.f32 0.125, %v1064_v28  ;;  %v5068_v18 = vpack.c.bf16 %v1064_v28, %v1064_v28  ;;  %v5040_v27 = vpack.c.bf16 %v6666_v56, %v6666_v56  ;;  %v6929_v15 = vld [vmem:[#allocation4 + $0x48] sm:$0xff]   ;;  %v5045_v28 = vpack.c.bf16 %v6695_v1, %v6695_v1 }
 0x1fb   : > { %v1066_v57 = vpop.f32.mrf.mxu0  ;;  %v5056_v56 = vpack.c.bf16 %v6755_v4, %v6755_v4  ;;  %v6947_v1 = vld [vmem:[#allocation4] sm:$0xff]   ;;  %v5043_v4 = vpack.c.bf16 %v6682_v11, %v6682_v11  ;;  %v5057_v11 = vpack.c.bf16 %v6761_v31, %v6761_v31 }
 0x1fc   : > { %v5036_v51 = vpack.c.bf16 %v1111_v13, %v1111_v13  ;;  %v5100_v22 = vpack.c.bf16 %v1066_v57, %v1066_v57  ;;  %1689 = vst.msk [vmem:[#allocation5 + $0xe0] sm:$0xff] %vm1660_vm0, %v1066_v57  ;;  %1428 = vrot.lane.b32.xlu0 %v5068_v18, %s6091_s15  ;;  %v6941_v13 = vld [vmem:[#allocation4 + $0x40] sm:$0xff]   ;;  %v5061_v18 = vpack.c.bf16 %v6785_v62, %v6785_v62 }
 0x1fd   : > { %v1068_v32 = vpop.f32.mrf.mxu0  ;;  %v5059_v57 = vpack.c.bf16 %v6773_v37, %v6773_v37  ;;  %v5041_v62 = vpack.c.bf16 %v6670_v48, %v6670_v48 }
 0x1fe   : > { %1272 = vst.msk [vmem:[#allocation2 + $0x70] sm:$0xf] %vm1243_vm1, %v5036_v51  ;;  %1656 = vst.msk [vmem:[#allocation4 + $0x70] sm:$0xf] %vm1243_vm1, %v5100_v22  ;;  %v1112_v16 = vmul.f32 0.125, %v1068_v32  ;;  %v5069_v59 = vpack.c.bf16 %v1068_v32, %v1068_v32 }
 0x1ff   : > { %v1070_v35 = vpop.f32.mrf.mxu0 }
 0x200   : > { %v5037_v54 = vpack.c.bf16 %v1112_v16, %v1112_v16  ;;  %v5101_v46 = vpack.c.bf16 %v1070_v35, %v1070_v35  ;;  %1690 = vst.msk [vmem:[#allocation5 + $0xe8] sm:$0xff] %vm1660_vm0, %v1070_v35  ;;  %1392 = vrot.lane.b32.xlu0 %v5050_v0, %s6091_s15 }
 0x201   : > { %v1074_v47 = vpop.f32.mrf.mxu0  ;;  %v6881_v9 = vld [vmem:[#allocation4 + $0x68] sm:$0xff]  }
 0x202   : > { %1273 = vst.msk [vmem:[#allocation2 + $0x74] sm:$0xf] %vm1243_vm1, %v5037_v54  ;;  %1657 = vst.msk [vmem:[#allocation4 + $0x74] sm:$0xf] %vm1243_vm1, %v5101_v46  ;;  %v1113_v40 = vmul.f32 0.125, %v1074_v47  ;;  %v5070_v7 = vpack.c.bf16 %v1074_v47, %v1074_v47 }
 0x203   : > { %v1076_v55 = vpop.f32.mrf.mxu0 }
 0x204   : > { %v5038_v42 = vpack.c.bf16 %v1113_v40, %v1113_v40  ;;  %v5102_v38 = vpack.c.bf16 %v1076_v55, %v1076_v55  ;;  %1691 = vst.msk [vmem:[#allocation5 + $0xf0] sm:$0xff] %vm1660_vm0, %v1076_v55  ;;  %1424 = vrot.lane.b32.xlu0 %v5066_v44, %s6091_s15  ;;  %1432 = vrot.lane.b32.xlu1 %v5070_v7, %s6091_s15 }
 0x205   : > { %v1078_v58 = vpop.f32.mrf.mxu0 }
 0x206   : > { %1274 = vst.msk [vmem:[#allocation2 + $0x78] sm:$0xf] %vm1243_vm1, %v5038_v42  ;;  %1658 = vst.msk [vmem:[#allocation4 + $0x78] sm:$0xf] %vm1243_vm1, %v5102_v38  ;;  %v1114_v5 = vmul.f32 0.125, %v1078_v58  ;;  %v5071_v23 = vpack.c.bf16 %v1078_v58, %v1078_v58 }
 0x207   : > { %v1080_v20 = vpop.f32.mrf.mxu0 }
 0x208   : > { %v5039_v26 = vpack.c.bf16 %v1114_v5, %v1114_v5  ;;  %v5103_v49 = vpack.c.bf16 %v1080_v20, %v1080_v20  ;;  %1692 = vst.msk [vmem:[#allocation5 + $0xf8] sm:$0xff] %vm1660_vm0, %v1080_v20  ;;  %1388 = vrot.lane.b32.xlu0 %v5048_v43, %s6091_s15  ;;  %1434 = vrot.lane.b32.xlu1 %v5071_v23, %s6091_s15 }
 0x209   : > { %v6869_v53 = vld [vmem:[#allocation4 + $0x70] sm:$0xff]  }
 0x20a   : > { %1275 = vst.msk [vmem:[#allocation2 + $0x7c] sm:$0xf] %vm1243_vm1, %v5039_v26  ;;  %1659 = vst.msk [vmem:[#allocation4 + $0x7c] sm:$0xf] %vm1243_vm1, %v5103_v49 }
 0x20c   : > { %1420 = vrot.lane.b32.xlu0 %v5064_v39, %s6091_s15  ;;  %1398 = vrot.lane.b32.xlu1 %v5053_v10, %s6091_s15 }
 0x210   : > { %1384 = vrot.lane.b32.xlu0 %v5046_v60, %s6091_s15  ;;  %1430 = vrot.lane.b32.xlu1 %v5069_v59, %s6091_s15 }
 0x211   : > { %v6858_v3 = vld [vmem:[#allocation4 + $0x78] sm:$0xff]  }
 0x212   : > { %5232 = vmatprep.subr.bf16.mxu0 %v6858_v3 }
 0x213   : > { %5233 = vmatpush3.bf16.msra.mxu0 %v6865_v21 }
 0x214   : > { %1416 = vrot.lane.b32.xlu0 %v5062_v24, %s6091_s15  ;;  %1394 = vrot.lane.b32.xlu1 %v5051_v6, %s6091_s15 }
 0x215   : > { %5234 = vmatprep.subr.bf16.mxu0 %v6869_v53 }
 0x217   : > { %5235 = vmatpush3.bf16.msra.mxu0 %v6877_v52 }
 0x218   : > { %1380 = vrot.lane.b32.xlu0 %v5044_v45, %s6091_s15  ;;  %1426 = vrot.lane.b32.xlu1 %v5067_v61, %s6091_s15 }
 0x219   : > { %5236 = vmatprep.subr.bf16.mxu0 %v6881_v9 }
 0x21b   : > { %5237 = vmatpush3.bf16.msra.mxu0 %v6889_v50 }
 0x21c   : > { %1412 = vrot.lane.b32.xlu0 %v5060_v25, %s6091_s15  ;;  %1390 = vrot.lane.b32.xlu1 %v5049_v14, %s6091_s15 }
 0x21d   : > { %5238 = vmatprep.subr.bf16.mxu0 %v6893_v33 }
 0x21f   : > { %5239 = vmatpush3.bf16.msra.mxu0 %v6901_v34 }
 0x220   : > { %1376 = vrot.lane.b32.xlu0 %v5042_v36, %s6091_s15  ;;  %1422 = vrot.lane.b32.xlu1 %v5065_v2, %s6091_s15 }
 0x221   : > { %5240 = vmatprep.subr.bf16.mxu0 %v6905_v41 }
 0x223   : > { %5241 = vmatpush3.bf16.msra.mxu0 %v6913_v12 }
 0x224   : > { %1408 = vrot.lane.b32.xlu0 %v5058_v8, %s6091_s15  ;;  %1386 = vrot.lane.b32.xlu1 %v5047_v30, %s6091_s15 }
 0x225   : > { %5242 = vmatprep.subr.bf16.mxu0 %v6917_v63 }
 0x227   : > { %5243 = vmatpush3.bf16.msra.mxu0 %v6925_v29 }
 0x228   : > { %1372 = vrot.lane.b32.xlu0 %v5040_v27, %s6091_s15  ;;  %1418 = vrot.lane.b32.xlu1 %v5063_v17, %s6091_s15 }
 0x229   : > { %5244 = vmatprep.subr.bf16.mxu0 %v6929_v15 }
 0x22b   : > { %5245 = vmatpush3.bf16.msra.mxu0 %v6937_v19 }
 0x22c   : > { %1404 = vrot.lane.b32.xlu0 %v5056_v56, %s6091_s15  ;;  %1382 = vrot.lane.b32.xlu1 %v5045_v28, %s6091_s15 }
 0x22d   : > { %5246 = vmatprep.subr.bf16.mxu0 %v6941_v13 }
 0x22f   : > { %5247 = vmatpush3.bf16.msra.mxu0 %v6947_v1 }
 0x230   : > { %1414 = vrot.lane.b32.xlu1 %v5061_v18, %s6091_s15 }
 0x234   : > { %1378 = vrot.lane.b32.xlu1 %v5043_v4, %s6091_s15 }
 0x236   : > { %v1401_v51 = vpop.permute.xlu0 %1400 }
 0x237   : > { %1482 = vst.msk [vmem:[#allocation3 + $0x38] sm:$0xf] %vm1243_vm1, %v1401_v51 }
 0x238   : > { %1410 = vrot.lane.b32.xlu1 %v5059_v57, %s6091_s15 }
 0x23a   : > { %v1397_v22 = vpop.permute.xlu0 %1396  ;;  %v1403_v32 = vpop.permute.xlu1 %1402 }
 0x23b   : > { %1480 = vst.msk [vmem:[#allocation3 + $0x30] sm:$0xf] %vm1243_vm1, %v1397_v22  ;;  %1483 = vst.msk [vmem:[#allocation3 + $0x3c] sm:$0xf] %vm1243_vm1, %v1403_v32 }
 0x23c   : > { %1374 = vrot.lane.b32.xlu1 %v5041_v62, %s6091_s15 }
 0x240   : > { %1406 = vrot.lane.b32.xlu1 %v5057_v11, %s6091_s15 }
 0x242   : > { %v5633_v47 = vld [vmem:[#allocation3 + $0x38] sm:$0xff]  }
 0x243   : > { %v1996_v55 = vsel %vm1660_vm0, %v5633_v47, 0 }
 0x26e   : > { %v1429_v37 = vpop.permute.xlu0 %1428 }
 0x26f   : > { %1496 = vst.msk [vmem:[#allocation3 + $0x70] sm:$0xf] %vm1243_vm1, %v1429_v37 }
 0x272   : > { %v1393_v0 = vpop.permute.xlu0 %1392 }
 0x273   : > { %1478 = vst.msk [vmem:[#allocation3 + $0x28] sm:$0xf] %vm1243_vm1, %v1393_v0 }
 0x276   : > { %v1425_v48 = vpop.permute.xlu0 %1424  ;;  %v1433_v16 = vpop.permute.xlu1 %1432 }
 0x277   : > { %1494 = vst.msk [vmem:[#allocation3 + $0x68] sm:$0xf] %vm1243_vm1, %v1425_v48  ;;  %1498 = vst.msk [vmem:[#allocation3 + $0x78] sm:$0xf] %vm1243_vm1, %v1433_v16 }
 0x27a   : > { %v1389_v35 = vpop.permute.xlu0 %1388  ;;  %v1435_v54 = vpop.permute.xlu1 %1434 }
 0x27b   : > { %1476 = vst.msk [vmem:[#allocation3 + $0x20] sm:$0xf] %vm1243_vm1, %v1389_v35  ;;  %1499 = vst.msk [vmem:[#allocation3 + $0x7c] sm:$0xf] %vm1243_vm1, %v1435_v54  ;;  %v5648_v54 = vld [vmem:[#allocation2 + $0x8] sm:$0xff]  }
 0x27e   : > { %v1421_v31 = vpop.permute.xlu0 %1420  ;;  %v1399_v46 = vpop.permute.xlu1 %1398 }
 0x27f   : > { %1492 = vst.msk [vmem:[#allocation3 + $0x60] sm:$0xf] %vm1243_vm1, %v1421_v31  ;;  %1481 = vst.msk [vmem:[#allocation3 + $0x34] sm:$0xf] %vm1243_vm1, %v1399_v46  ;;  %v5995_v31 = vld [vmem:[#allocation2] sm:$0xff]   ;;  %v5649_v46 = vld [vmem:[#allocation2 + $0x10] sm:$0xff]  }
 0x282   : > { %v1385_v44 = vpop.permute.xlu0 %1384  ;;  %v1431_v40 = vpop.permute.xlu1 %1430  ;;  %v5632_v7 = vld [vmem:[#allocation3 + $0x78] sm:$0xff]  }
 0x283   : > { %1474 = vst.msk [vmem:[#allocation3 + $0x18] sm:$0xf] %vm1243_vm1, %v1385_v44  ;;  %1497 = vst.msk [vmem:[#allocation3 + $0x74] sm:$0xf] %vm1243_vm1, %v1431_v40  ;;  %5540 = vmatprep.subr.msk.bf16.mxu1 %vm1660_vm0, %v5632_v7 }
 0x284   : > { %5185 = vmatpush3.bf16.xpose.msra.mxu1 %v1996_v55 }
 0x286   : > { %v1417_v42 = vpop.permute.xlu0 %1416  ;;  %v1395_v38 = vpop.permute.xlu1 %1394  ;;  %v5635_v58 = vld [vmem:[#allocation3 + $0x30] sm:$0xff]  }
 0x287   : > { %1490 = vst.msk [vmem:[#allocation3 + $0x58] sm:$0xf] %vm1243_vm1, %v1417_v42  ;;  %1479 = vst.msk [vmem:[#allocation3 + $0x2c] sm:$0xf] %vm1243_vm1, %v1395_v38  ;;  %v1993_v20 = vsel %vm1660_vm0, %v5635_v58, 0 }
 0x28a   : > { %v1381_v43 = vpop.permute.xlu0 %1380  ;;  %v1427_v5 = vpop.permute.xlu1 %1426  ;;  %v5634_v23 = vld [vmem:[#allocation3 + $0x70] sm:$0xff]  }
 0x28b   : > { %1472 = vst.msk [vmem:[#allocation3 + $0x10] sm:$0xf] %vm1243_vm1, %v1381_v43  ;;  %1495 = vst.msk [vmem:[#allocation3 + $0x6c] sm:$0xf] %vm1243_vm1, %v1427_v5  ;;  %5541 = vmatprep.subr.msk.bf16.mxu1 %vm1660_vm0, %v5634_v23 }
 0x28c   : > { %5187 = vmatpush3.bf16.xpose.msra.mxu1 %v1993_v20 }
 0x28e   : > { %v1413_v26 = vpop.permute.xlu0 %1412  ;;  %v1391_v49 = vpop.permute.xlu1 %1390  ;;  %v5637_v10 = vld [vmem:[#allocation3 + $0x28] sm:$0xff]  }
 0x28f   : > { %1488 = vst.msk [vmem:[#allocation3 + $0x50] sm:$0xf] %vm1243_vm1, %v1413_v26  ;;  %1477 = vst.msk [vmem:[#allocation3 + $0x24] sm:$0xf] %vm1243_vm1, %v1391_v49  ;;  %v1990_v6 = vsel %vm1660_vm0, %v5637_v10, 0 }
 0x292   : > { %v1377_v39 = vpop.permute.xlu0 %1376  ;;  %v1423_v60 = vpop.permute.xlu1 %1422  ;;  %v5636_v59 = vld [vmem:[#allocation3 + $0x68] sm:$0xff]  }
 0x293   : > { %1470 = vst.msk [vmem:[#allocation3 + $0x8] sm:$0xf] %vm1243_vm1, %v1377_v39  ;;  %1493 = vst.msk [vmem:[#allocation3 + $0x64] sm:$0xf] %vm1243_vm1, %v1423_v60  ;;  %5542 = vmatprep.subr.msk.bf16.mxu1 %vm1660_vm0, %v5636_v59 }
 0x294   : > { %5189 = vmatpush3.bf16.xpose.msra.mxu1 %v1990_v6 }
 0x296   : > { %v1409_v24 = vpop.permute.xlu0 %1408  ;;  %v1387_v45 = vpop.permute.xlu1 %1386  ;;  %v5639_v61 = vld [vmem:[#allocation3 + $0x20] sm:$0xff]  }
 0x297   : > { %1486 = vst.msk [vmem:[#allocation3 + $0x48] sm:$0xf] %vm1243_vm1, %v1409_v24  ;;  %1475 = vst.msk [vmem:[#allocation3 + $0x1c] sm:$0xf] %vm1243_vm1, %v1387_v45  ;;  %v1987_v2 = vsel %vm1660_vm0, %v5639_v61, 0 }
 0x29a   : > { %v1373_v14 = vpop.permute.xlu0 %1372  ;;  %v1419_v25 = vpop.permute.xlu1 %1418  ;;  %v5638_v36 = vld [vmem:[#allocation3 + $0x60] sm:$0xff]  }
 0x29b   : > { %1468 = vst.msk [vmem:[#allocation3] sm:$0xf] %vm1243_vm1, %v1373_v14  ;;  %1491 = vst.msk [vmem:[#allocation3 + $0x5c] sm:$0xf] %vm1243_vm1, %v1419_v25  ;;  %5543 = vmatprep.subr.msk.bf16.mxu1 %vm1660_vm0, %v5638_v36 }
 0x29c   : > { %5191 = vmatpush3.bf16.xpose.msra.mxu1 %v1987_v2 }
 0x29e   : > { %v1405_v30 = vpop.permute.xlu0 %1404  ;;  %v1383_v8 = vpop.permute.xlu1 %1382  ;;  %v5641_v27 = vld [vmem:[#allocation3 + $0x18] sm:$0xff]  }
 0x29f   : > { %1484 = vst.msk [vmem:[#allocation3 + $0x40] sm:$0xf] %vm1243_vm1, %v1405_v30  ;;  %1473 = vst.msk [vmem:[#allocation3 + $0x14] sm:$0xf] %vm1243_vm1, %v1383_v8  ;;  %v1984_v56 = vsel %vm1660_vm0, %v5641_v27, 0 }
 0x2a2   : > { %v1415_v17 = vpop.permute.xlu1 %1414  ;;  %v5640_v28 = vld [vmem:[#allocation3 + $0x58] sm:$0xff]  }
 0x2a3   : > { %1489 = vst.msk [vmem:[#allocation3 + $0x54] sm:$0xf] %vm1243_vm1, %v1415_v17  ;;  %5544 = vmatprep.subr.msk.bf16.mxu1 %vm1660_vm0, %v5640_v28 }
 0x2a4   : > { %5193 = vmatpush3.bf16.xpose.msra.mxu1 %v1984_v56 }
 0x2a6   : > { %v1379_v18 = vpop.permute.xlu1 %1378  ;;  %v5643_v4 = vld [vmem:[#allocation3 + $0x10] sm:$0xff]  }
 0x2a7   : > { %1471 = vst.msk [vmem:[#allocation3 + $0xc] sm:$0xf] %vm1243_vm1, %v1379_v18  ;;  %v1981_v62 = vsel %vm1660_vm0, %v5643_v4, 0 }
 0x2aa   : > { %v1411_v57 = vpop.permute.xlu1 %1410  ;;  %v5642_v51 = vld [vmem:[#allocation3 + $0x50] sm:$0xff]  }
 0x2ab   : > { %1487 = vst.msk [vmem:[#allocation3 + $0x4c] sm:$0xf] %vm1243_vm1, %v1411_v57  ;;  %5545 = vmatprep.subr.msk.bf16.mxu1 %vm1660_vm0, %v5642_v51 }
 0x2ac   : > { %5195 = vmatpush3.bf16.xpose.msra.mxu1 %v1981_v62 }
 0x2ae   : > { %v1375_v22 = vpop.permute.xlu1 %1374  ;;  %v5645_v32 = vld [vmem:[#allocation3 + $0x8] sm:$0xff]  }
 0x2af   : > { %1469 = vst.msk [vmem:[#allocation3 + $0x4] sm:$0xf] %vm1243_vm1, %v1375_v22  ;;  %v1978_v0 = vsel %vm1660_vm0, %v5645_v32, 0 }
 0x2b2   : > { %v1407_v11 = vpop.permute.xlu1 %1406  ;;  %v5644_v37 = vld [vmem:[#allocation3 + $0x48] sm:$0xff]  }
 0x2b3   : > { %1485 = vst.msk [vmem:[#allocation3 + $0x44] sm:$0xf] %vm1243_vm1, %v1407_v11  ;;  %5546 = vmatprep.subr.msk.bf16.mxu1 %vm1660_vm0, %v5644_v37 }
 0x2b4   : > { %5197 = vmatpush3.bf16.xpose.msra.mxu1 %v1978_v0 }
 0x2b6   : > { %v5647_v48 = vld [vmem:[#allocation3] sm:$0xff]  }
 0x2b7   : > { %v1975_v35 = vsel %vm1660_vm0, %v5647_v48, 0 }
 0x2ba   : > { %v5646_v16 = vld [vmem:[#allocation3 + $0x40] sm:$0xff]  }
 0x2bb   : > { %5547 = vmatprep.subr.msk.bf16.mxu1 %vm1660_vm0, %v5646_v16 }
 0x2bc   : > { %5199 = vmatpush3.bf16.xpose.msra.mxu1 %v1975_v35 }
 0x2bd   : > { %5524 = vmatprep.subr.bf16.mxu1 %v6858_v3  ;;  %v5650_v3 = vld [vmem:[#allocation2 + $0x18] sm:$0xff]  }
 0x2c3   : > { %5201 = vmatmul.mubr.msk.bf16.vlgmr.msra.gmra.mxu1 %vm1660_vm0, %v5995_v31 }
 0x2c4   : > { %5202 = vmatprep.mubr.msk.bf16.mxu1 %vm1660_vm0, %v5648_v54  ;;  %5532 = vmatpush3.bf16.msra.mxu1 %v6865_v21  ;;  %v5651_v21 = vld [vmem:[#allocation2 + $0x20] sm:$0xff]  }
 0x2c5   : > { %5525 = vmatprep.subr.bf16.mxu1 %v6869_v53  ;;  %v5652_v53 = vld [vmem:[#allocation2 + $0x28] sm:$0xff]  }
 0x2c8   : > { %5533 = vmatpush3.bf16.msra.mxu1 %v6877_v52  ;;  %v5653_v52 = vld [vmem:[#allocation2 + $0x30] sm:$0xff]  }
 0x2c9   : > { %5526 = vmatprep.subr.bf16.mxu1 %v6881_v9  ;;  %v5654_v9 = vld [vmem:[#allocation2 + $0x38] sm:$0xff]  }
 0x2cb   : > { %5203 = vmatmul.mubr.msk.bf16.gmra.mxu1 %vm1660_vm0, %v5648_v54 }
 0x2cc   : > { %5204 = vmatprep.mubr.msk.bf16.mxu1 %vm1660_vm0, %v5649_v46  ;;  %5534 = vmatpush3.bf16.msra.mxu1 %v6889_v50  ;;  %v5655_v50 = vld [vmem:[#allocation2 + $0x40] sm:$0xff]  }
 0x2cd   : > { %5527 = vmatprep.subr.bf16.mxu1 %v6893_v33  ;;  %v5656_v33 = vld [vmem:[#allocation2 + $0x48] sm:$0xff]  }
 0x2d0   : > { %5535 = vmatpush3.bf16.msra.mxu1 %v6901_v34  ;;  %v5657_v34 = vld [vmem:[#allocation2 + $0x50] sm:$0xff]  }
 0x2d1   : > { %5528 = vmatprep.subr.bf16.mxu1 %v6905_v41  ;;  %v5658_v41 = vld [vmem:[#allocation2 + $0x58] sm:$0xff]  }
 0x2d3   : > { %5205 = vmatmul.mubr.msk.bf16.gmra.mxu1 %vm1660_vm0, %v5649_v46 }
 0x2d4   : > { %5206 = vmatprep.mubr.msk.bf16.mxu1 %vm1660_vm0, %v5650_v3  ;;  %5536 = vmatpush3.bf16.msra.mxu1 %v6913_v12  ;;  %v5659_v12 = vld [vmem:[#allocation2 + $0x60] sm:$0xff]  }
 0x2d5   : > { %5529 = vmatprep.subr.bf16.mxu1 %v6917_v63  ;;  %v5660_v63 = vld [vmem:[#allocation2 + $0x68] sm:$0xff]  }
 0x2d8   : > { %5537 = vmatpush3.bf16.msra.mxu1 %v6925_v29  ;;  %v5661_v29 = vld [vmem:[#allocation2 + $0x70] sm:$0xff]  }
 0x2d9   : > { %5530 = vmatprep.subr.bf16.mxu1 %v6929_v15  ;;  %v5662_v15 = vld [vmem:[#allocation2 + $0x78] sm:$0xff]  }
 0x2db   : > { %5207 = vmatmul.mubr.msk.bf16.gmra.mxu1 %vm1660_vm0, %v5650_v3 }
 0x2dc   : > { %5208 = vmatprep.mubr.msk.bf16.mxu1 %vm1660_vm0, %v5651_v21  ;;  %5538 = vmatpush3.bf16.msra.mxu1 %v6937_v19 }
 0x2dd   : > { %5531 = vmatprep.subr.bf16.mxu1 %v6941_v13 }
 0x2e0   : > { %5539 = vmatpush3.bf16.msra.mxu1 %v6947_v1 }
 0x2e3   : > { %5209 = vmatmul.mubr.msk.bf16.gmra.mxu1 %vm1660_vm0, %v5651_v21 }
 0x2e4   : > { %5210 = vmatprep.mubr.msk.bf16.mxu1 %vm1660_vm0, %v5652_v53 }
 0x2eb   : > { %5211 = vmatmul.mubr.msk.bf16.gmra.mxu1 %vm1660_vm0, %v5652_v53 }
 0x2ec   : > { %5212 = vmatprep.mubr.msk.bf16.mxu1 %vm1660_vm0, %v5653_v52 }
 0x2f3   : > { %5213 = vmatmul.mubr.msk.bf16.gmra.mxu1 %vm1660_vm0, %v5653_v52 }
 0x2f4   : > { %5214 = vmatprep.mubr.msk.bf16.mxu1 %vm1660_vm0, %v5654_v9 }
 0x2fb   : > { %5215 = vmatmul.mubr.msk.bf16.gmra.mxu1 %vm1660_vm0, %v5654_v9 }
 0x2fc   : > { %5216 = vmatprep.mubr.msk.bf16.mxu1 %vm1660_vm0, %v5655_v50 }
 0x303   : > { %5217 = vmatmul.mubr.msk.bf16.gmra.mxu1 %vm1660_vm0, %v5655_v50 }
 0x304   : > { %5218 = vmatprep.mubr.msk.bf16.mxu1 %vm1660_vm0, %v5656_v33 }
 0x30b   : > { %5219 = vmatmul.mubr.msk.bf16.gmra.mxu1 %vm1660_vm0, %v5656_v33 }
 0x30c   : > { %5220 = vmatprep.mubr.msk.bf16.mxu1 %vm1660_vm0, %v5657_v34 }
 0x313   : > { %5221 = vmatmul.mubr.msk.bf16.gmra.mxu1 %vm1660_vm0, %v5657_v34 }
 0x314   : > { %5222 = vmatprep.mubr.msk.bf16.mxu1 %vm1660_vm0, %v5658_v41 }
 0x31b   : > { %5223 = vmatmul.mubr.msk.bf16.gmra.mxu1 %vm1660_vm0, %v5658_v41 }
 0x31c   : > { %5224 = vmatprep.mubr.msk.bf16.mxu1 %vm1660_vm0, %v5659_v12 }
 0x323   : > { %5225 = vmatmul.mubr.msk.bf16.gmra.mxu1 %vm1660_vm0, %v5659_v12 }
 0x324   : > { %5226 = vmatprep.mubr.msk.bf16.mxu1 %vm1660_vm0, %v5660_v63 }
 0x32b   : > { %5227 = vmatmul.mubr.msk.bf16.gmra.mxu1 %vm1660_vm0, %v5660_v63 }
 0x32c   : > { %5228 = vmatprep.mubr.msk.bf16.mxu1 %vm1660_vm0, %v5661_v29 }
 0x333   : > { %5229 = vmatmul.mubr.msk.bf16.gmra.mxu1 %vm1660_vm0, %v5661_v29 }
 0x334   : > { %5230 = vmatprep.mubr.msk.bf16.mxu1 %vm1660_vm0, %v5662_v15 }
 0x33b   : > { %5231 = vmatmul.mubr.msk.bf16.gmra.mxu1 %vm1660_vm0, %v5662_v15 }
 0x383   : > { %v7058_v19 = vpop.f32.mrf.mxu1 }
 0x385   : > { %v7060_v13 = vpop.f32.mrf.mxu1 }
 0x386   : > { %v2215_v1 = vmax.f32 %v7058_v19, %v7060_v13 }
 0x387   : > { %v7064_v47 = vpop.f32.mrf.mxu1 }
 0x388   : > { %2216 = vmax.xlane.f32.xlu0 %v2215_v1 }
 0x389   : > { %v7066_v44 = vpop.f32.mrf.mxu1 }
 0x38a   : > { %v2218_v40 = vmax.f32 %v7064_v47, %v7066_v44 }
 0x38b   : > { %v7070_v7 = vpop.f32.mrf.mxu1 }
 0x38c   : > { %2219 = vmax.xlane.f32.xlu1 %v2218_v40 }
 0x38d   : > { %v7072_v55 = vpop.f32.mrf.mxu1 }
 0x38e   : > { %v2221_v42 = vmax.f32 %v7070_v7, %v7072_v55 }
 0x38f   : > { %v7076_v38 = vpop.f32.mrf.mxu1 }
 0x390   : > { %2222 = vmax.xlane.f32.xlu0 %v2221_v42 }
 0x391   : > { %v7078_v58 = vpop.f32.mrf.mxu1 }
 0x392   : > { %v2224_v43 = vmax.f32 %v7076_v38, %v7078_v58 }
 0x393   : > { %v7082_v5 = vpop.f32.mrf.mxu1 }
 0x394   : > { %2225 = vmax.xlane.f32.xlu0 %v2224_v43 }
 0x395   : > { %v7084_v23 = vpop.f32.mrf.mxu1 }
 0x396   : > { %v2227_v20 = vmax.f32 %v7082_v5, %v7084_v23 }
 0x397   : > { %v7088_v26 = vpop.f32.mrf.mxu1 }
 0x398   : > { %2228 = vmax.xlane.f32.xlu0 %v2227_v20 }
 0x399   : > { %v7090_v49 = vpop.f32.mrf.mxu1 }
 0x39a   : > { %v2230_v10 = vmax.f32 %v7088_v26, %v7090_v49 }
 0x39b   : > { %v7094_v39 = vpop.f32.mrf.mxu1 }
 0x39c   : > { %2231 = vmax.xlane.f32.xlu1 %v2230_v10 }
 0x39d   : > { %v7096_v60 = vpop.f32.mrf.mxu1 }
 0x39e   : > { %v2233_v59 = vmax.f32 %v7094_v39, %v7096_v60 }
 0x39f   : > { %v7100_v6 = vpop.f32.mrf.mxu1 }
 0x3a0   : > { %2234 = vmax.xlane.f32.xlu0 %v2233_v59 }
 0x3a1   : > { %v7102_v24 = vpop.f32.mrf.mxu1 }
 0x3a2   : > { %v2236_v45 = vmax.f32 %v7100_v6, %v7102_v24 }
 0x3a3   : > { %v7106_v61 = vpop.f32.mrf.mxu1 }
 0x3a4   : > { %2237 = vmax.xlane.f32.xlu1 %v2236_v45 }
 0x3a5   : > { %v7108_v14 = vpop.f32.mrf.mxu1 }
 0x3a6   : > { %v2239_v25 = vmax.f32 %v7106_v61, %v7108_v14 }
 0x3a7   : > { %v7112_v36 = vpop.f32.mrf.mxu1 }
 0x3a8   : > { %2240 = vmax.xlane.f32.xlu0 %v2239_v25 }
 0x3a9   : > { %v7114_v2 = vpop.f32.mrf.mxu1 }
 0x3aa   : > { %v2242_v30 = vmax.f32 %v7112_v36, %v7114_v2 }
 0x3ab   : > { %v7118_v8 = vpop.f32.mrf.mxu1 }
 0x3ac   : > { %2243 = vmax.xlane.f32.xlu1 %v2242_v30 }
 0x3ad   : > { %v7120_v27 = vpop.f32.mrf.mxu1 }
 0x3ae   : > { %v2245_v17 = vmax.f32 %v7118_v8, %v7120_v27 }
 0x3af   : > { %v7124_v28 = vpop.f32.mrf.mxu1 }
 0x3b0   : > { %2246 = vmax.xlane.f32.xlu0 %v2245_v17 }
 0x3b1   : > { %v7126_v56 = vpop.f32.mrf.mxu1 }
 0x3b2   : > { %v2248_v18 = vmax.f32 %v7124_v28, %v7126_v56 }
 0x3b3   : > { %v7130_v4 = vpop.f32.mrf.mxu1 }
 0x3b4   : > { %2249 = vmax.xlane.f32.xlu1 %v2248_v18 }
 0x3b5   : > { %v7132_v57 = vpop.f32.mrf.mxu1 }
 0x3b6   : > { %v2251_v51 = vmax.f32 %v7130_v4, %v7132_v57 }
 0x3b7   : > { %v7136_v62 = vpop.f32.mrf.mxu1 }
 0x3b8   : > { %2252 = vmax.xlane.f32.xlu0 %v2251_v51 }
 0x3b9   : > { %v7138_v22 = vpop.f32.mrf.mxu1 }
 0x3ba   : > { %v2254_v32 = vmax.f32 %v7136_v62, %v7138_v22 }
 0x3bb   : > { %v7142_v11 = vpop.f32.mrf.mxu1 }
 0x3bc   : > { %2255 = vmax.xlane.f32.xlu1 %v2254_v32 }
 0x3bd   : > { %v7144_v37 = vpop.f32.mrf.mxu1 }
 0x3be   : > { %v2257_v0 = vmax.f32 %v7142_v11, %v7144_v37 }
 0x3bf   : > { %v7148_v48 = vpop.f32.mrf.mxu1 }
 0x3c0   : > { %2258 = vmax.xlane.f32.xlu0 %v2257_v0 }
 0x3c1   : > { %v7150_v16 = vpop.f32.mrf.mxu1 }
 0x3c2   : > { %v2260_v35 = vmax.f32 %v7148_v48, %v7150_v16 }
 0x3c3   : > { %v7154_v54 = vpop.f32.mrf.mxu1 }
 0x3c4   : > { %2261 = vmax.xlane.f32.xlu1 %v2260_v35 }
 0x3c5   : > { %v7156_v31 = vpop.f32.mrf.mxu1 }
 0x3c6   : > { %v2263_v46 = vmax.f32 %v7154_v54, %v7156_v31 }
 0x3c7   : > { %v7160_v3 = vpop.f32.mrf.mxu1 }
 0x3c8   : > { %2264 = vmax.xlane.f32.xlu0 %v2263_v46 }
 0x3c9   : > { %v7162_v21 = vpop.f32.mrf.mxu1 }
 0x3ca   : > { %v2266_v53 = vmax.f32 %v7160_v3, %v7162_v21 }
 0x3cb   : > { %v7166_v52 = vpop.f32.mrf.mxu1 }
 0x3cc   : > { %2267 = vmax.xlane.f32.xlu1 %v2266_v53 }
 0x3cd   : > { %v7168_v9 = vpop.f32.mrf.mxu1 }
 0x3ce   : > { %v2269_v50 = vmax.f32 %v7166_v52, %v7168_v9 }
 0x3cf   : > { %v7172_v33 = vpop.f32.mrf.mxu1 }
 0x3d0   : > { %2270 = vmax.xlane.f32.xlu0 %v2269_v50 }
 0x3d1   : > { %v7174_v34 = vpop.f32.mrf.mxu1 }
 0x3d2   : > { %v2272_v41 = vmax.f32 %v7172_v33, %v7174_v34 }
 0x3d3   : > { %v7178_v12 = vpop.f32.mrf.mxu1 }
 0x3d4   : > { %2273 = vmax.xlane.f32.xlu1 %v2272_v41 }
 0x3d5   : > { %v7180_v63 = vpop.f32.mrf.mxu1 }
 0x3d6   : > { %v2275_v29 = vmax.f32 %v7178_v12, %v7180_v63 }
 0x3d7   : > { %v7184_v15 = vpop.f32.mrf.mxu1 }
 0x3d8   : > { %2276 = vmax.xlane.f32.xlu0 %v2275_v29 }
 0x3d9   : > { %v7186_v1 = vpop.f32.mrf.mxu1 }
 0x3da   : > { %v2278_v40 = vmax.f32 %v7184_v15, %v7186_v1 }
 0x3db   : > { %v7190_v42 = vpop.f32.mrf.mxu1 }
 0x3dc   : > { %2279 = vmax.xlane.f32.xlu1 %v2278_v40 }
 0x3dd   : > { %v7192_v43 = vpop.f32.mrf.mxu1 }
 0x3de   : > { %v2281_v20 = vmax.f32 %v7190_v42, %v7192_v43 }
 0x3df   : > { %v7196_v10 = vpop.f32.mrf.mxu1 }
 0x3e0   : > { %2282 = vmax.xlane.f32.xlu0 %v2281_v20 }
 0x3e1   : > { %v7198_v59 = vpop.f32.mrf.mxu1 }
 0x3e2   : > { %v2284_v45 = vmax.f32 %v7196_v10, %v7198_v59 }
 0x3e3   : > { %v7202_v25 = vpop.f32.mrf.mxu1 }
 0x3e4   : > { %2285 = vmax.xlane.f32.xlu1 %v2284_v45 }
 0x3e5   : > { %v7204_v30 = vpop.f32.mrf.mxu1 }
 0x3e6   : > { %8182 = vst [vmem:[#allocation9_spill] sm:$0xff] %v7204_v30  ;;  %v2287_v17 = vmax.f32 %v7202_v25, %v7204_v30 }
 0x3e7   : > { %v7208_v18 = vpop.f32.mrf.mxu1 }
 0x3e8   : > { %8183 = vst [vmem:[#allocation10_spill] sm:$0xff] %v7208_v18  ;;  %2288 = vmax.xlane.f32.xlu0 %v2287_v17 }
 0x3e9   : > { %v7210_v51 = vpop.f32.mrf.mxu1 }
 0x3ea   : > { %8184 = vst [vmem:[#allocation11_spill] sm:$0xff] %v7210_v51  ;;  %v2290_v32 = vmax.f32 %v7208_v18, %v7210_v51 }
 0x3eb   : > { %v7214_v0 = vpop.f32.mrf.mxu1 }
 0x3ec   : > { %8185 = vst [vmem:[#allocation12_spill] sm:$0xff] %v7214_v0  ;;  %2291 = vmax.xlane.f32.xlu1 %v2290_v32 }
 0x3ed   : > { %v7216_v35 = vpop.f32.mrf.mxu1 }
 0x3ee   : > { %8186 = vst [vmem:[#allocation13_spill] sm:$0xff] %v7216_v35  ;;  %v2293_v46 = vmax.f32 %v7214_v0, %v7216_v35 }
 0x3ef   : > { %v7220_v53 = vpop.f32.mrf.mxu1 }
 0x3f0   : > { %8187 = vst [vmem:[#allocation14_spill] sm:$0xff] %v7220_v53  ;;  %2294 = vmax.xlane.f32.xlu0 %v2293_v46 }
 0x3f1   : > { %v7222_v50 = vpop.f32.mrf.mxu1 }
 0x3f2   : > { %8188 = vst [vmem:[#allocation15_spill] sm:$0xff] %v7222_v50  ;;  %v2296_v41 = vmax.f32 %v7220_v53, %v7222_v50 }
 0x3f3   : > { %v7226_v29 = vpop.f32.mrf.mxu1 }
 0x3f4   : > { %8189 = vst [vmem:[#allocation16_spill] sm:$0xff] %v7226_v29  ;;  %2297 = vmax.xlane.f32.xlu1 %v2296_v41 }
 0x3f5   : > { %v7228_v40 = vpop.f32.mrf.mxu1 }
 0x3f6   : > { %8190 = vst [vmem:[#allocation17_spill] sm:$0xff] %v7228_v40  ;;  %v2299_v20 = vmax.f32 %v7226_v29, %v7228_v40 }
 0x3f7   : > { %v7232_v45 = vpop.f32.mrf.mxu1 }
 0x3f8   : > { %8191 = vst [vmem:[#allocation18_spill] sm:$0xff] %v7232_v45  ;;  %2300 = vmax.xlane.f32.xlu0 %v2299_v20 }
 0x3f9   : > { %v7234_v17 = vpop.f32.mrf.mxu1 }
 0x3fa   : > { %8192 = vst [vmem:[#allocation19_spill] sm:$0xff] %v7234_v17  ;;  %v2302_v32 = vmax.f32 %v7232_v45, %v7234_v17 }
 0x3fb   : > { %v7238_v46 = vpop.f32.mrf.mxu1 }
 0x3fc   : > { %8193 = vst [vmem:[#allocation20_spill] sm:$0xff] %v7238_v46  ;;  %2303 = vmax.xlane.f32.xlu1 %v2302_v32 }
 0x3fd   : > { %v7240_v50 = vpop.f32.mrf.mxu1 }
 0x3fe   : > { %8194 = vst [vmem:[#allocation21_spill] sm:$0xff] %v7240_v50  ;;  %v2305_v41 = vmax.f32 %v7238_v46, %v7240_v50 }
 0x3ff   : > { %v7244_v53 = vpop.f32.mrf.mxu1 }
 0x400   : > { %8195 = vst [vmem:[#allocation22_spill] sm:$0xff] %v7244_v53  ;;  %2306 = vmax.xlane.f32.xlu0 %v2305_v41 }
 0x401   : > { %v7246_v40 = vpop.f32.mrf.mxu1 }
 0x402   : > { %8196 = vst [vmem:[#allocation23_spill] sm:$0xff] %v7246_v40  ;;  %v2308_v20 = vmax.f32 %v7244_v53, %v7246_v40 }
 0x404   : > { %2309 = vmax.xlane.f32.xlu1 %v2308_v20 }
 0x411   : > { %v2217_v29 = vpop.xlane.xlu0 %2216 }
 0x412   : > { %v2311_v17 = vsub.f32 %v7058_v19, %v2217_v29  ;;  %v2312_v32 = vsub.f32 %v7060_v13, %v2217_v29 }
 0x415   : > { %v2220_v35 = vpop.xlane.xlu1 %2219 }
 0x416   : > { %v2313_v45 = vsub.f32 %v7064_v47, %v2220_v35  ;;  %v2314_v0 = vsub.f32 %v7066_v44, %v2220_v35 }
 0x418   : > { %v2375_v50 = vpack.c.bf16 %v2313_v45, %v2311_v17  ;;  %v2376_v46 = vpack.c.bf16 %v2314_v0, %v2312_v32 }
 0x419   : > { %v2223_v51 = vpop.xlane.xlu0 %2222 }
 0x41a   : > { %v2408_v41 = vmul.bf16 1069105081, %v2375_v50  ;;  %v2411_v18 = vmul.bf16 1069105081, %v2376_v46  ;;  %v2315_v20 = vsub.f32 %v7070_v7, %v2223_v51  ;;  %v2316_v40 = vsub.f32 %v7072_v55, %v2223_v51 }
 0x41c   : > { %5739 = vpow.bf16 %v2408_v41 }
 0x41d   : > { %5741 = vpow.bf16 %v2411_v18  ;;  %v2226_v30 = vpop.xlane.xlu0 %2225 }
 0x41e   : > { %v2317_v19 = vsub.f32 %v7076_v38, %v2226_v30  ;;  %v2318_v13 = vsub.f32 %v7078_v58, %v2226_v30 }
 0x420   : > { %v2377_v29 = vpack.c.bf16 %v2317_v19, %v2315_v20  ;;  %v2378_v47 = vpack.c.bf16 %v2318_v13, %v2316_v40 }
 0x421   : > { %v2229_v35 = vpop.xlane.xlu0 %2228 }
 0x422   : > { %v2414_v53 = vmul.bf16 1069105081, %v2377_v29  ;;  %v2417_v44 = vmul.bf16 1069105081, %v2378_v47  ;;  %v2319_v50 = vsub.f32 %v7082_v5, %v2229_v35  ;;  %v2320_v18 = vsub.f32 %v7084_v23, %v2229_v35 }
 0x424   : > { %5743 = vpow.bf16 %v2414_v53 }
 0x425   : > { %5745 = vpow.bf16 %v2417_v44  ;;  %v2232_v0 = vpop.xlane.xlu1 %2231 }
 0x426   : > { %v2321_v7 = vsub.f32 %v7088_v26, %v2232_v0  ;;  %v2322_v55 = vsub.f32 %v7090_v49, %v2232_v0 }
 0x428   : > { %v2379_v51 = vpack.c.bf16 %v2321_v7, %v2319_v50  ;;  %v2380_v38 = vpack.c.bf16 %v2322_v55, %v2320_v18 }
 0x429   : > { %v2235_v40 = vpop.xlane.xlu0 %2234 }
 0x42a   : > { %v5740_v45 = vpop.eup %5739  ;;  %v2420_v58 = vmul.bf16 1069105081, %v2379_v51  ;;  %v2423_v30 = vmul.bf16 1069105081, %v2380_v38  ;;  %v2323_v5 = vsub.f32 %v7094_v39, %v2235_v40  ;;  %v2324_v23 = vsub.f32 %v7096_v60, %v2235_v40 }
 0x42b   : > { %v5742_v17 = vpop.eup %5741  ;;  %v2503_v46 = vunpack.c.l.bf16 %v5740_v45  ;;  %v2505_v32 = vunpack.c.h.bf16 %v5740_v45 }
 0x42c   : > { %5747 = vpow.bf16 %v2420_v58  ;;  %2855 = vmatprep.mubr.bf16.mxu0 %v5742_v17  ;;  %v2504_v53 = vunpack.c.l.bf16 %v5742_v17  ;;  %v2506_v41 = vunpack.c.h.bf16 %v5742_v17 }
 0x42d   : > { %5749 = vpow.bf16 %v2423_v30  ;;  %2856 = vmatmul.mubr.bf16.vlgmr.msra.gmra.mxu0 %v5740_v45  ;;  %v2238_v26 = vpop.xlane.xlu1 %2237 }
 0x42e   : > { %v2325_v49 = vsub.f32 %v7100_v6, %v2238_v26  ;;  %v2326_v20 = vsub.f32 %v7102_v24, %v2238_v26  ;;  %v2567_v19 = vadd.f32 %v2504_v53, %v2503_v46  ;;  %v2570_v13 = vadd.f32 %v2506_v41, %v2505_v32 }
 0x430   : > { %v2381_v29 = vpack.c.bf16 %v2325_v49, %v2323_v5  ;;  %v2382_v47 = vpack.c.bf16 %v2326_v20, %v2324_v23  ;;  %2568 = vadd.xlane.f32.xlu0 %v2567_v19  ;;  %2571 = vadd.xlane.f32.xlu1 %v2570_v13 }
 0x431   : > { %v2241_v50 = vpop.xlane.xlu0 %2240 }
 0x432   : > { %v5744_v44 = vpop.eup %5743  ;;  %v2426_v35 = vmul.bf16 1069105081, %v2381_v29  ;;  %v2429_v0 = vmul.bf16 1069105081, %v2382_v47  ;;  %v2327_v6 = vsub.f32 %v7106_v61, %v2241_v50  ;;  %v2328_v24 = vsub.f32 %v7108_v14, %v2241_v50 }
 0x433   : > { %v5746_v18 = vpop.eup %5745  ;;  %v2507_v39 = vunpack.c.l.bf16 %v5744_v44  ;;  %v2509_v7 = vunpack.c.h.bf16 %v5744_v44 }
 0x434   : > { %5751 = vpow.bf16 %v2426_v35  ;;  %2863 = vmatprep.mubr.bf16.mxu0 %v5746_v18  ;;  %v2508_v60 = vunpack.c.l.bf16 %v5746_v18  ;;  %v2510_v55 = vunpack.c.h.bf16 %v5746_v18 }
 0x435   : > { %5753 = vpow.bf16 %v2429_v0  ;;  %2864 = vmatmul.mubr.bf16.gmra.mxu0 %v5744_v44  ;;  %v2244_v51 = vpop.xlane.xlu1 %2243 }
 0x436   : > { %v2329_v38 = vsub.f32 %v7112_v36, %v2244_v51  ;;  %v2330_v45 = vsub.f32 %v7114_v2, %v2244_v51  ;;  %v2573_v58 = vadd.f32 %v2508_v60, %v2507_v39  ;;  %v2576_v30 = vadd.f32 %v2510_v55, %v2509_v7 }
 0x438   : > { %v2383_v40 = vpack.c.bf16 %v2329_v38, %v2327_v6  ;;  %v2384_v17 = vpack.c.bf16 %v2330_v45, %v2328_v24  ;;  %2574 = vadd.xlane.f32.xlu0 %v2573_v58  ;;  %2577 = vadd.xlane.f32.xlu1 %v2576_v30 }
 0x439   : > { %v2247_v41 = vpop.xlane.xlu0 %2246 }
 0x43a   : > { %v5748_v46 = vpop.eup %5747  ;;  %v2432_v32 = vmul.bf16 1069105081, %v2383_v40  ;;  %v2435_v53 = vmul.bf16 1069105081, %v2384_v17  ;;  %v2331_v36 = vsub.f32 %v7118_v8, %v2247_v41  ;;  %v2332_v2 = vsub.f32 %v7120_v27, %v2247_v41 }
 0x43b   : > { %v5750_v5 = vpop.eup %5749  ;;  %v2511_v61 = vunpack.c.l.bf16 %v5748_v46  ;;  %v2513_v23 = vunpack.c.h.bf16 %v5748_v46 }
 0x43c   : > { %5755 = vpow.bf16 %v2432_v32  ;;  %2871 = vmatprep.mubr.bf16.mxu0 %v5750_v5  ;;  %v2512_v14 = vunpack.c.l.bf16 %v5750_v5  ;;  %v2514_v26 = vunpack.c.h.bf16 %v5750_v5 }
 0x43d   : > { %5757 = vpow.bf16 %v2435_v53  ;;  %2872 = vmatmul.mubr.bf16.gmra.mxu0 %v5748_v46  ;;  %v2250_v49 = vpop.xlane.xlu1 %2249 }
 0x43e   : > { %v2333_v20 = vsub.f32 %v7124_v28, %v2250_v49  ;;  %v2334_v19 = vsub.f32 %v7126_v56, %v2250_v49  ;;  %v2579_v13 = vadd.f32 %v2512_v14, %v2511_v61  ;;  %v2582_v29 = vadd.f32 %v2514_v26, %v2513_v23 }
 0x440   : > { %v2385_v47 = vpack.c.bf16 %v2333_v20, %v2331_v36  ;;  %v2386_v44 = vpack.c.bf16 %v2334_v19, %v2332_v2  ;;  %2580 = vadd.xlane.f32.xlu0 %v2579_v13  ;;  %2583 = vadd.xlane.f32.xlu1 %v2582_v29 }
 0x441   : > { %v2253_v18 = vpop.xlane.xlu0 %2252 }
 0x442   : > { %v5752_v35 = vpop.eup %5751  ;;  %v2438_v0 = vmul.bf16 1069105081, %v2385_v47  ;;  %v2441_v50 = vmul.bf16 1069105081, %v2386_v44  ;;  %v2335_v28 = vsub.f32 %v7130_v4, %v2253_v18  ;;  %v2336_v56 = vsub.f32 %v7132_v57, %v2253_v18 }
 0x443   : > { %v5754_v39 = vpop.eup %5753  ;;  %v2515_v8 = vunpack.c.l.bf16 %v5752_v35  ;;  %v2517_v7 = vunpack.c.h.bf16 %v5752_v35 }
 0x444   : > { %5759 = vpow.bf16 %v2438_v0  ;;  %2879 = vmatprep.mubr.bf16.mxu0 %v5754_v39  ;;  %v2516_v27 = vunpack.c.l.bf16 %v5754_v39  ;;  %v2518_v60 = vunpack.c.h.bf16 %v5754_v39 }
 0x445   : > { %5761 = vpow.bf16 %v2441_v50  ;;  %2880 = vmatmul.mubr.bf16.gmra.mxu0 %v5752_v35  ;;  %v2256_v55 = vpop.xlane.xlu1 %2255 }
 0x446   : > { %v2337_v6 = vsub.f32 %v7136_v62, %v2256_v55  ;;  %v2338_v24 = vsub.f32 %v7138_v22, %v2256_v55  ;;  %v2585_v51 = vadd.f32 %v2516_v27, %v2515_v8  ;;  %v2588_v38 = vadd.f32 %v2518_v60, %v2517_v7 }
 0x448   : > { %v2387_v45 = vpack.c.bf16 %v2337_v6, %v2335_v28  ;;  %v2388_v58 = vpack.c.bf16 %v2338_v24, %v2336_v56  ;;  %2586 = vadd.xlane.f32.xlu0 %v2585_v51  ;;  %2589 = vadd.xlane.f32.xlu1 %v2588_v38 }
 0x449   : > { %v2259_v46 = vpop.xlane.xlu0 %2258 }
 0x44a   : > { %v5756_v30 = vpop.eup %5755  ;;  %v2444_v40 = vmul.bf16 1069105081, %v2387_v45  ;;  %v2447_v17 = vmul.bf16 1069105081, %v2388_v58  ;;  %v2339_v62 = vsub.f32 %v7142_v11, %v2259_v46  ;;  %v2340_v22 = vsub.f32 %v7144_v37, %v2259_v46 }
 0x44b   : > { %v5758_v32 = vpop.eup %5757  ;;  %v2519_v4 = vunpack.c.l.bf16 %v5756_v30  ;;  %v2521_v53 = vunpack.c.h.bf16 %v5756_v30 }
 0x44c   : > { %5763 = vpow.bf16 %v2444_v40  ;;  %2887 = vmatprep.mubr.bf16.mxu0 %v5758_v32  ;;  %v2520_v57 = vunpack.c.l.bf16 %v5758_v32  ;;  %v2522_v41 = vunpack.c.h.bf16 %v5758_v32 }
 0x44d   : > { %5765 = vpow.bf16 %v2447_v17  ;;  %2888 = vmatmul.mubr.bf16.gmra.mxu0 %v5756_v30  ;;  %v2262_v5 = vpop.xlane.xlu1 %2261 }
 0x44e   : > { %v2341_v61 = vsub.f32 %v7148_v48, %v2262_v5  ;;  %v2342_v23 = vsub.f32 %v7150_v16, %v2262_v5  ;;  %v2591_v14 = vadd.f32 %v2520_v57, %v2519_v4  ;;  %v2594_v26 = vadd.f32 %v2522_v41, %v2521_v53 }
 0x450   : > { %v2389_v36 = vpack.c.bf16 %v2341_v61, %v2339_v62  ;;  %v2390_v2 = vpack.c.bf16 %v2342_v23, %v2340_v22  ;;  %2592 = vadd.xlane.f32.xlu0 %v2591_v14  ;;  %2595 = vadd.xlane.f32.xlu1 %v2594_v26 }
 0x451   : > { %v2265_v13 = vpop.xlane.xlu0 %2264 }
 0x452   : > { %v5760_v49 = vpop.eup %5759  ;;  %v2450_v20 = vmul.bf16 1069105081, %v2389_v36  ;;  %v2453_v19 = vmul.bf16 1069105081, %v2390_v2  ;;  %v2343_v48 = vsub.f32 %v7154_v54, %v2265_v13  ;;  %v2344_v16 = vsub.f32 %v7156_v31, %v2265_v13 }
 0x453   : > { %v5762_v29 = vpop.eup %5761  ;;  %v2523_v11 = vunpack.c.l.bf16 %v5760_v49  ;;  %v2525_v47 = vunpack.c.h.bf16 %v5760_v49 }
 0x454   : > { %5767 = vpow.bf16 %v2450_v20  ;;  %2895 = vmatprep.mubr.bf16.mxu0 %v5762_v29  ;;  %v2524_v37 = vunpack.c.l.bf16 %v5762_v29  ;;  %v2526_v44 = vunpack.c.h.bf16 %v5762_v29 }
 0x455   : > { %5769 = vpow.bf16 %v2453_v19  ;;  %2896 = vmatmul.mubr.bf16.gmra.mxu0 %v5760_v49  ;;  %v2268_v35 = vpop.xlane.xlu1 %2267 }
 0x456   : > { %v2345_v0 = vsub.f32 %v7160_v3, %v2268_v35  ;;  %v2346_v50 = vsub.f32 %v7162_v21, %v2268_v35  ;;  %v2597_v18 = vadd.f32 %v2524_v37, %v2523_v11  ;;  %v2600_v39 = vadd.f32 %v2526_v44, %v2525_v47 }
 0x458   : > { %v2391_v8 = vpack.c.bf16 %v2345_v0, %v2343_v48  ;;  %v2392_v7 = vpack.c.bf16 %v2346_v50, %v2344_v16  ;;  %2598 = vadd.xlane.f32.xlu0 %v2597_v18  ;;  %2601 = vadd.xlane.f32.xlu1 %v2600_v39  ;;  %v7301_v50 = vld [vmem:[%s8163_s4 + $0x30] ss:$8 sps:$4 sm:$0xff]  }
 0x459   : > { %v2271_v56 = vpop.xlane.xlu0 %2270  ;;  %5404 = vmatprep.subr.bf16.mxu1 %v7301_v50 }
 0x45a   : > { %v5764_v27 = vpop.eup %5763  ;;  %v2456_v60 = vmul.bf16 1069105081, %v2391_v8  ;;  %v2459_v28 = vmul.bf16 1069105081, %v2392_v7  ;;  %v2347_v3 = vsub.f32 %v7166_v52, %v2271_v56  ;;  %v2348_v21 = vsub.f32 %v7168_v9, %v2271_v56 }
 0x45b   : > { %v5766_v55 = vpop.eup %5765  ;;  %v2527_v54 = vunpack.c.l.bf16 %v5764_v27  ;;  %v2529_v6 = vunpack.c.h.bf16 %v5764_v27 }
 0x45c   : > { %5771 = vpow.bf16 %v2456_v60  ;;  %2903 = vmatprep.mubr.bf16.mxu0 %v5766_v55  ;;  %v2528_v31 = vunpack.c.l.bf16 %v5766_v55  ;;  %v2530_v24 = vunpack.c.h.bf16 %v5766_v55 }
 0x45d   : > { %5773 = vpow.bf16 %v2459_v28  ;;  %2904 = vmatmul.mubr.bf16.gmra.mxu0 %v5764_v27  ;;  %v2274_v51 = vpop.xlane.xlu1 %2273  ;;  %v8197_v28 = vld [vmem:[#allocation9_spill] sm:$0xff] }
 0x45e   : > { %v2349_v38 = vsub.f32 %v7172_v33, %v2274_v51  ;;  %v2350_v45 = vsub.f32 %v7174_v34, %v2274_v51  ;;  %v2603_v58 = vadd.f32 %v2528_v31, %v2527_v54  ;;  %v2606_v30 = vadd.f32 %v2530_v24, %v2529_v6  ;;  %v8198_v54 = vld [vmem:[#allocation10_spill] sm:$0xff]  ;;  %v8199_v31 = vld [vmem:[#allocation11_spill] sm:$0xff] }
 0x460   : > { %v2393_v40 = vpack.c.bf16 %v2349_v38, %v2347_v3  ;;  %v2394_v17 = vpack.c.bf16 %v2350_v45, %v2348_v21  ;;  %2604 = vadd.xlane.f32.xlu0 %v2603_v58  ;;  %2607 = vadd.xlane.f32.xlu1 %v2606_v30 }
 0x461   : > { %v2277_v53 = vpop.xlane.xlu0 %2276 }
 0x462   : > { %v5768_v46 = vpop.eup %5767  ;;  %v2462_v32 = vmul.bf16 1069105081, %v2393_v40  ;;  %v2465_v4 = vmul.bf16 1069105081, %v2394_v17  ;;  %v2351_v33 = vsub.f32 %v7178_v12, %v2277_v53  ;;  %v2352_v34 = vsub.f32 %v7180_v63, %v2277_v53  ;;  %v8200_v53 = vld [vmem:[#allocation12_spill] sm:$0xff] }
 0x463   : > { %v5770_v57 = vpop.eup %5769  ;;  %v2531_v52 = vunpack.c.l.bf16 %v5768_v46  ;;  %v2533_v41 = vunpack.c.h.bf16 %v5768_v46 }
 0x464   : > { %5775 = vpow.bf16 %v2462_v32  ;;  %2911 = vmatprep.mubr.bf16.mxu0 %v5770_v57  ;;  %v2532_v9 = vunpack.c.l.bf16 %v5770_v57  ;;  %v2534_v62 = vunpack.c.h.bf16 %v5770_v57 }
 0x465   : > { %5777 = vpow.bf16 %v2465_v4  ;;  %2912 = vmatmul.mubr.bf16.gmra.mxu0 %v5768_v46  ;;  %v2280_v22 = vpop.xlane.xlu1 %2279 }
 0x466   : > { %v2353_v5 = vsub.f32 %v7184_v15, %v2280_v22  ;;  %v2354_v61 = vsub.f32 %v7186_v1, %v2280_v22  ;;  %v2609_v23 = vadd.f32 %v2532_v9, %v2531_v52  ;;  %v2612_v14 = vadd.f32 %v2534_v62, %v2533_v41  ;;  %v8201_v52 = vld [vmem:[#allocation13_spill] sm:$0xff]  ;;  %v8202_v62 = vld [vmem:[#allocation14_spill] sm:$0xff] }
 0x468   : > { %v2395_v26 = vpack.c.bf16 %v2353_v5, %v2351_v33  ;;  %v2396_v36 = vpack.c.bf16 %v2354_v61, %v2352_v34  ;;  %2610 = vadd.xlane.f32.xlu0 %v2609_v23  ;;  %2613 = vadd.xlane.f32.xlu1 %v2612_v14  ;;  %v8203_v34 = vld [vmem:[#allocation15_spill] sm:$0xff] }
 0x469   : > { %v2283_v19 = vpop.xlane.xlu0 %2282 }
 0x46a   : > { %v5772_v2 = vpop.eup %5771  ;;  %v2468_v49 = vmul.bf16 1069105081, %v2395_v26  ;;  %v2471_v20 = vmul.bf16 1069105081, %v2396_v36  ;;  %v2355_v15 = vsub.f32 %v7190_v42, %v2283_v19  ;;  %v2356_v1 = vsub.f32 %v7192_v43, %v2283_v19 }
 0x46b   : > { %v5774_v13 = vpop.eup %5773  ;;  %v2535_v12 = vunpack.c.l.bf16 %v5772_v2  ;;  %v2537_v29 = vunpack.c.h.bf16 %v5772_v2 }
 0x46c   : > { %5779 = vpow.bf16 %v2468_v49  ;;  %2919 = vmatprep.mubr.bf16.mxu0 %v5774_v13  ;;  %v2536_v63 = vunpack.c.l.bf16 %v5774_v13  ;;  %v2538_v11 = vunpack.c.h.bf16 %v5774_v13 }
 0x46d   : > { %5781 = vpow.bf16 %v2471_v20  ;;  %2920 = vmatmul.mubr.bf16.gmra.mxu0 %v5772_v2  ;;  %v2286_v47 = vpop.xlane.xlu1 %2285 }
 0x46e   : > { %v2357_v37 = vsub.f32 %v7196_v10, %v2286_v47  ;;  %v2358_v44 = vsub.f32 %v7198_v59, %v2286_v47  ;;  %v2615_v48 = vadd.f32 %v2536_v63, %v2535_v12  ;;  %v2618_v16 = vadd.f32 %v2538_v11, %v2537_v29  ;;  %v8204_v63 = vld [vmem:[#allocation16_spill] sm:$0xff] }
 0x470   : > { %v2397_v35 = vpack.c.bf16 %v2357_v37, %v2355_v15  ;;  %v2398_v0 = vpack.c.bf16 %v2358_v44, %v2356_v1  ;;  %2616 = vadd.xlane.f32.xlu0 %v2615_v48  ;;  %2619 = vadd.xlane.f32.xlu1 %v2618_v16  ;;  %v8205_v15 = vld [vmem:[#allocation17_spill] sm:$0xff]  ;;  %v8206_v37 = vld [vmem:[#allocation18_spill] sm:$0xff]  ;;  %v8207_v48 = vld [vmem:[#allocation19_spill] sm:$0xff] }
 0x471   : > { %v2289_v39 = vpop.xlane.xlu0 %2288 }
 0x472   : > { %v5776_v42 = vpop.eup %5775  ;;  %v2474_v18 = vmul.bf16 1069105081, %v2397_v35  ;;  %v2477_v43 = vmul.bf16 1069105081, %v2398_v0  ;;  %v2359_v60 = vsub.f32 %v7202_v25, %v2289_v39  ;;  %v2360_v56 = vsub.f32 %v8197_v28, %v2289_v39 }
 0x473   : > { %v5778_v8 = vpop.eup %5777  ;;  %v2539_v7 = vunpack.c.l.bf16 %v5776_v42  ;;  %v2541_v10 = vunpack.c.h.bf16 %v5776_v42 }
 0x474   : > { %5783 = vpow.bf16 %v2474_v18  ;;  %2927 = vmatprep.mubr.bf16.mxu0 %v5778_v8  ;;  %v2540_v59 = vunpack.c.l.bf16 %v5778_v8  ;;  %v2542_v27 = vunpack.c.h.bf16 %v5778_v8 }
 0x475   : > { %5785 = vpow.bf16 %v2477_v43  ;;  %2928 = vmatmul.mubr.bf16.gmra.mxu0 %v5776_v42  ;;  %v2292_v55 = vpop.xlane.xlu1 %2291 }
 0x476   : > { %v2361_v6 = vsub.f32 %v8198_v54, %v2292_v55  ;;  %v2362_v24 = vsub.f32 %v8199_v31, %v2292_v55  ;;  %v2621_v3 = vadd.f32 %v2540_v59, %v2539_v7  ;;  %v2624_v21 = vadd.f32 %v2542_v27, %v2541_v10  ;;  %v8209_v54 = vld [vmem:[#allocation21_spill] sm:$0xff] }
 0x478   : > { %v2399_v51 = vpack.c.bf16 %v2361_v6, %v2359_v60  ;;  %v2400_v38 = vpack.c.bf16 %v2362_v24, %v2360_v56  ;;  %2622 = vadd.xlane.f32.xlu0 %v2621_v3  ;;  %2625 = vadd.xlane.f32.xlu1 %v2624_v21  ;;  %v8208_v56 = vld [vmem:[#allocation20_spill] sm:$0xff]  ;;  %v8210_v24 = vld [vmem:[#allocation22_spill] sm:$0xff]  ;;  %v8211_v21 = vld [vmem:[#allocation23_spill] sm:$0xff] }
 0x479   : > { %v2295_v40 = vpop.xlane.xlu0 %2294 }
 0x47a   : > { %v5780_v45 = vpop.eup %5779  ;;  %v2480_v58 = vmul.bf16 1069105081, %v2399_v51  ;;  %v2483_v30 = vmul.bf16 1069105081, %v2400_v38  ;;  %v2363_v57 = vsub.f32 %v8200_v53, %v2295_v40  ;;  %v2364_v41 = vsub.f32 %v8201_v52, %v2295_v40 }
 0x47b   : > { %v5782_v17 = vpop.eup %5781  ;;  %v2543_v25 = vunpack.c.l.bf16 %v5780_v45  ;;  %v2545_v46 = vunpack.c.h.bf16 %v5780_v45 }
 0x47c   : > { %5787 = vpow.bf16 %v2480_v58  ;;  %2935 = vmatprep.mubr.bf16.mxu0 %v5782_v17  ;;  %v2544_v32 = vunpack.c.l.bf16 %v5782_v17  ;;  %v2546_v4 = vunpack.c.h.bf16 %v5782_v17 }
 0x47d   : > { %5789 = vpow.bf16 %v2483_v30  ;;  %2936 = vmatmul.mubr.bf16.gmra.mxu0 %v5780_v45  ;;  %v2298_v9 = vpop.xlane.xlu1 %2297 }
 0x47e   : > { %v2365_v33 = vsub.f32 %v8202_v62, %v2298_v9  ;;  %v2366_v22 = vsub.f32 %v8203_v34, %v2298_v9  ;;  %v2627_v5 = vadd.f32 %v2544_v32, %v2543_v25  ;;  %v2630_v61 = vadd.f32 %v2546_v4, %v2545_v46 }
 0x480   : > { %v2401_v23 = vpack.c.bf16 %v2365_v33, %v2363_v57  ;;  %v2402_v14 = vpack.c.bf16 %v2366_v22, %v2364_v41  ;;  %2628 = vadd.xlane.f32.xlu0 %v2627_v5  ;;  %2631 = vadd.xlane.f32.xlu1 %v2630_v61  ;;  %v5664_v22 = vld [vmem:[%s8163_s4 + $0x20] ss:$8 sps:$4 sm:$0xff]  }
 0x481   : > { %v2301_v49 = vpop.xlane.xlu0 %2300 }
 0x482   : > { %v5784_v26 = vpop.eup %5783  ;;  %v2486_v36 = vmul.bf16 1069105081, %v2401_v23  ;;  %v2489_v2 = vmul.bf16 1069105081, %v2402_v14  ;;  %v2367_v11 = vsub.f32 %v8204_v63, %v2301_v49  ;;  %v2368_v1 = vsub.f32 %v8205_v15, %v2301_v49 }
 0x483   : > { %v5786_v20 = vpop.eup %5785  ;;  %v2547_v19 = vunpack.c.l.bf16 %v5784_v26  ;;  %v2549_v13 = vunpack.c.h.bf16 %v5784_v26 }
 0x484   : > { %5791 = vpow.bf16 %v2486_v36  ;;  %2943 = vmatprep.mubr.bf16.mxu0 %v5786_v20  ;;  %v2548_v12 = vunpack.c.l.bf16 %v5786_v20  ;;  %v2550_v29 = vunpack.c.h.bf16 %v5786_v20 }
 0x485   : > { %5793 = vpow.bf16 %v2489_v2  ;;  %2944 = vmatmul.mubr.bf16.gmra.mxu0 %v5784_v26  ;;  %v2304_v47 = vpop.xlane.xlu1 %2303  ;;  %v5665_v26 = vld [vmem:[%s8163_s4 + $0x10] ss:$8 sps:$4 sm:$0xff]  }
 0x486   : > { %v2369_v44 = vsub.f32 %v8206_v37, %v2304_v47  ;;  %v2370_v16 = vsub.f32 %v8207_v48, %v2304_v47  ;;  %v2633_v35 = vadd.f32 %v2548_v12, %v2547_v19  ;;  %v2636_v0 = vadd.f32 %v2550_v29, %v2549_v13  ;;  %v5666_v19 = vld [vmem:[%s8163_s4] ss:$8 sps:$4 sm:$0xff]  }
 0x488   : > { %v2403_v42 = vpack.c.bf16 %v2369_v44, %v2367_v11  ;;  %v2404_v18 = vpack.c.bf16 %v2370_v16, %v2368_v1  ;;  %2634 = vadd.xlane.f32.xlu0 %v2633_v35  ;;  %2637 = vadd.xlane.f32.xlu1 %v2636_v0  ;;  %v5667_v16 = vld [vmem:[%s8163_s4 + $0x30] ss:$8 sps:$4 sm:$0xff]   ;;  %v5668_v35 = vld [vmem:[%s8163_s4 + $0x20] ss:$8 sps:$4 sm:$0xff]  }
 0x489   : > { %v2307_v7 = vpop.xlane.xlu0 %2306 }
 0x48a   : > { %v5788_v43 = vpop.eup %5787  ;;  %v2492_v39 = vmul.bf16 1069105081, %v2403_v42  ;;  %v2495_v8 = vmul.bf16 1069105081, %v2404_v18  ;;  %v2371_v55 = vsub.f32 %v8208_v56, %v2307_v7  ;;  %v2372_v6 = vsub.f32 %v8209_v54, %v2307_v7 }
 0x48b   : > { %v5790_v10 = vpop.eup %5789  ;;  %v2551_v59 = vunpack.c.l.bf16 %v5788_v43  ;;  %v2553_v27 = vunpack.c.h.bf16 %v5788_v43 }
 0x48c   : > { %5795 = vpow.bf16 %v2492_v39  ;;  %2951 = vmatprep.mubr.bf16.mxu0 %v5790_v10  ;;  %v2552_v60 = vunpack.c.l.bf16 %v5790_v10  ;;  %v2554_v28 = vunpack.c.h.bf16 %v5790_v10  ;;  %v5669_v39 = vld [vmem:[%s8163_s4 + $0x10] ss:$8 sps:$4 sm:$0xff]  }
 0x48d   : > { %5797 = vpow.bf16 %v2495_v8  ;;  %2952 = vmatmul.mubr.bf16.gmra.mxu0 %v5788_v43  ;;  %v2310_v31 = vpop.xlane.xlu1 %2309 }
 0x48e   : > { %v2373_v3 = vsub.f32 %v8210_v24, %v2310_v31  ;;  %v2374_v51 = vsub.f32 %v8211_v21, %v2310_v31  ;;  %v2639_v38 = vadd.f32 %v2552_v60, %v2551_v59  ;;  %v2642_v45 = vadd.f32 %v2554_v28, %v2553_v27 }
 0x490   : > { %v2405_v58 = vpack.c.bf16 %v2373_v3, %v2371_v55  ;;  %v2406_v30 = vpack.c.bf16 %v2374_v51, %v2372_v6  ;;  %2640 = vadd.xlane.f32.xlu0 %v2639_v38  ;;  %2643 = vadd.xlane.f32.xlu1 %v2642_v45 }
 0x492   : > { %v5792_v40 = vpop.eup %5791  ;;  %v2498_v17 = vmul.bf16 1069105081, %v2405_v58  ;;  %v2501_v25 = vmul.bf16 1069105081, %v2406_v30 }
 0x493   : > { %v5794_v46 = vpop.eup %5793  ;;  %v2555_v32 = vunpack.c.l.bf16 %v5792_v40  ;;  %v2557_v4 = vunpack.c.h.bf16 %v5792_v40 }
 0x494   : > { %5799 = vpow.bf16 %v2498_v17  ;;  %2959 = vmatprep.mubr.bf16.mxu0 %v5794_v46  ;;  %v2556_v53 = vunpack.c.l.bf16 %v5794_v46  ;;  %v2558_v57 = vunpack.c.h.bf16 %v5794_v46 }
 0x495   : > { %5801 = vpow.bf16 %v2501_v25  ;;  %2960 = vmatmul.mubr.bf16.gmra.mxu0 %v5792_v40 }
 0x496   : > { %v2645_v52 = vadd.f32 %v2556_v53, %v2555_v32  ;;  %v2648_v41 = vadd.f32 %v2558_v57, %v2557_v4 }
 0x498   : > { %2646 = vadd.xlane.f32.xlu0 %v2645_v52  ;;  %2649 = vadd.xlane.f32.xlu1 %v2648_v41 }
 0x49a   : > { %v5796_v9 = vpop.eup %5795 }
 0x49b   : > { %v5798_v62 = vpop.eup %5797  ;;  %v2559_v33 = vunpack.c.l.bf16 %v5796_v9  ;;  %v2561_v34 = vunpack.c.h.bf16 %v5796_v9 }
 0x49c   : > { %2967 = vmatprep.mubr.bf16.mxu1 %v5798_v62  ;;  %v2560_v5 = vunpack.c.l.bf16 %v5798_v62  ;;  %v2562_v61 = vunpack.c.h.bf16 %v5798_v62 }
 0x49d   : > { %2968 = vmatmul.mubr.bf16.vlgmr.msra.gmra.mxu1 %v5796_v9 }
 0x49e   : > { %v2651_v23 = vadd.f32 %v2560_v5, %v2559_v33  ;;  %v2654_v14 = vadd.f32 %v2562_v61, %v2561_v34  ;;  %5405 = vmatpush3.bf16.msra.mxu1 %v7301_v50 }
 0x49f   : > { %5406 = vmatprep.subr.bf16.mxu1 %v5664_v22 }
 0x4a0   : > { %2652 = vadd.xlane.f32.xlu0 %v2651_v23  ;;  %2655 = vadd.xlane.f32.xlu1 %v2654_v14 }
 0x4a2   : > { %v5800_v36 = vpop.eup %5799  ;;  %5407 = vmatpush3.bf16.msra.mxu1 %v5664_v22 }
 0x4a3   : > { %v5802_v2 = vpop.eup %5801  ;;  %v2565_v49 = vunpack.c.h.bf16 %v5800_v36  ;;  %v2563_v20 = vunpack.c.l.bf16 %v5800_v36  ;;  %5408 = vmatprep.subr.bf16.mxu1 %v5665_v26 }
 0x4a4   : > { %2975 = vmatprep.mubr.bf16.mxu1 %v5802_v2  ;;  %v2566_v13 = vunpack.c.h.bf16 %v5802_v2  ;;  %v2564_v50 = vunpack.c.l.bf16 %v5802_v2 }
 0x4a5   : > { %2976 = vmatmul.mubr.bf16.gmra.mxu1 %v5800_v36 }
 0x4a6   : > { %v2660_v12 = vadd.f32 %v2566_v13, %v2565_v49  ;;  %v2657_v29 = vadd.f32 %v2564_v50, %v2563_v20  ;;  %5409 = vmatpush3.bf16.msra.mxu1 %v5665_v26 }
 0x4a7   : > { %5410 = vmatprep.subr.bf16.mxu1 %v5666_v19 }
 0x4a8   : > { %2661 = vadd.xlane.f32.xlu1 %v2660_v12  ;;  %2658 = vadd.xlane.f32.xlu0 %v2657_v29 }
 0x4aa   : > { %5411 = vmatpush3.bf16.msra.mxu1 %v5666_v19 }
 0x4b9   : > { %v2569_v63 = vpop.xlane.xlu0 %2568  ;;  %v2572_v11 = vpop.xlane.xlu1 %2571  ;;  %3982 = vrot.lane.b32.xlu1 %v5668_v35, %s6091_s15 }
 0x4ba   : > { %5803 = vrcp.f32 %v2569_v63 }
 0x4bb   : > { %5805 = vrcp.f32 %v2572_v11 }
 0x4be   : > { %3984 = vrot.lane.b32.xlu0 %v5667_v16, %s6091_s15 }
 0x4c1   : > { %v2575_v15 = vpop.xlane.xlu0 %2574  ;;  %v2578_v1 = vpop.xlane.xlu1 %2577 }
 0x4c2   : > { %5807 = vrcp.f32 %v2575_v15  ;;  %3980 = vrot.lane.b32.xlu0 %v5669_v39, %s6091_s15 }
 0x4c3   : > { %5809 = vrcp.f32 %v2578_v1 }
 0x4c7   : > { %v5804_v42 = vpop.eup %5803 }
 0x4c8   : > { %v5806_v8 = vpop.eup %5805 }
 0x4c9   : > { %v2581_v18 = vpop.xlane.xlu0 %2580  ;;  %v2584_v7 = vpop.xlane.xlu1 %2583 }
 0x4ca   : > { %5811 = vrcp.f32 %v2581_v18 }
 0x4cb   : > { %5813 = vrcp.f32 %v2584_v7 }
 0x4cf   : > { %v5808_v6 = vpop.eup %5807 }
 0x4d0   : > { %v5810_v3 = vpop.eup %5809 }
 0x4d1   : > { %v2587_v31 = vpop.xlane.xlu0 %2586  ;;  %v2590_v21 = vpop.xlane.xlu1 %2589 }
 0x4d2   : > { %5815 = vrcp.f32 %v2587_v31 }
 0x4d3   : > { %5817 = vrcp.f32 %v2590_v21 }
 0x4d7   : > { %v5812_v46 = vpop.eup %5811 }
 0x4d8   : > { %v5814_v53 = vpop.eup %5813 }
 0x4d9   : > { %v2593_v32 = vpop.xlane.xlu0 %2592  ;;  %v2596_v57 = vpop.xlane.xlu1 %2595 }
 0x4da   : > { %5819 = vrcp.f32 %v2593_v32 }
 0x4db   : > { %5821 = vrcp.f32 %v2596_v57 }
 0x4df   : > { %v5816_v61 = vpop.eup %5815 }
 0x4e0   : > { %v5818_v26 = vpop.eup %5817 }
 0x4e1   : > { %v2599_v23 = vpop.xlane.xlu0 %2598  ;;  %v2602_v36 = vpop.xlane.xlu1 %2601 }
 0x4e2   : > { %5823 = vrcp.f32 %v2599_v23 }
 0x4e3   : > { %5825 = vrcp.f32 %v2602_v36 }
 0x4e7   : > { %v5820_v63 = vpop.eup %5819 }
 0x4e8   : > { %v5822_v1 = vpop.eup %5821 }
 0x4e9   : > { %v2605_v11 = vpop.xlane.xlu0 %2604 }
 0x4ea   : > { %5827 = vrcp.f32 %v2605_v11 }
 0x4ed   : > { %v5248_v47 = vpop.f32.mrf.mxu0 }
 0x4ef   : > { %v5249_v37 = vpop.f32.mrf.mxu0 }
 0x4f0   : > { %v5250_v48 = vadd.f32 %v5249_v37, %v5248_v47  ;;  %v2608_v47 = vpop.xlane.xlu1 %2607 }
 0x4f1   : > { %v5251_v44 = vpop.f32.mrf.mxu0  ;;  %5829 = vrcp.f32 %v2608_v47  ;;  %v2611_v39 = vpop.xlane.xlu0 %2610 }
 0x4f2   : > { %v2984_v59 = vmul.f32 %v5804_v42, %v5250_v48  ;;  %5831 = vrcp.f32 %v2611_v39 }
 0x4f3   : > { %v5252_v0 = vpop.f32.mrf.mxu0 }
 0x4f4   : > { %v5253_v43 = vadd.f32 %v5252_v0, %v5251_v44 }
 0x4f5   : > { %v5254_v10 = vpop.f32.mrf.mxu0 }
 0x4f6   : > { %v2985_v27 = vmul.f32 %v5806_v8, %v5253_v43  ;;  %v5824_v43 = vpop.eup %5823 }
 0x4f7   : > { %v5255_v60 = vpop.f32.mrf.mxu0  ;;  %v5826_v7 = vpop.eup %5825 }
 0x4f8   : > { %v3016_v28 = vpack.c.bf16 %v2985_v27, %v2984_v59  ;;  %v5256_v55 = vadd.f32 %v5255_v60, %v5254_v10  ;;  %v2614_v10 = vpop.xlane.xlu1 %2613  ;;  %v5828_v31 = vpop.eup %5827 }
 0x4f9   : > { %v5257_v56 = vpop.f32.mrf.mxu0  ;;  %5833 = vrcp.f32 %v2614_v10 }
 0x4fa   : > { %5412 = vmatprep.mubr.msk.bf16.mxu1 %vm1660_vm0, %v3016_v28  ;;  %v2986_v38 = vmul.f32 %v5808_v6, %v5256_v55 }
 0x4fb   : > { %v5258_v54 = vpop.f32.mrf.mxu0 }
 0x4fc   : > { %v5259_v24 = vadd.f32 %v5258_v54, %v5257_v56 }
 0x4fd   : > { %v5260_v51 = vpop.f32.mrf.mxu0 }
 0x4fe   : > { %v2987_v45 = vmul.f32 %v5810_v3, %v5259_v24  ;;  %v2617_v24 = vpop.xlane.xlu0 %2616  ;;  %v5830_v21 = vpop.eup %5829 }
 0x4ff   : > { %v5261_v58 = vpop.f32.mrf.mxu0  ;;  %5835 = vrcp.f32 %v2617_v24  ;;  %v5832_v32 = vpop.eup %5831 }
 0x500   : > { %v3017_v30 = vpack.c.bf16 %v2987_v45, %v2986_v38  ;;  %v5262_v17 = vadd.f32 %v5261_v58, %v5260_v51  ;;  %v2620_v51 = vpop.xlane.xlu1 %2619 }
 0x501   : > { %v5263_v40 = vpop.f32.mrf.mxu0  ;;  %5837 = vrcp.f32 %v2620_v51 }
 0x502   : > { %5413 = vmatmul.mubr.msk.bf16.vlgmr.msra.gmra.mxu1 %vm1660_vm0, %v3017_v30  ;;  %v2988_v41 = vmul.f32 %v5812_v46, %v5262_v17 }
 0x503   : > { %v5264_v25 = vpop.f32.mrf.mxu0 }
 0x504   : > { %v5265_v4 = vadd.f32 %v5264_v25, %v5263_v40 }
 0x505   : > { %v5266_v52 = vpop.f32.mrf.mxu0 }
 0x506   : > { %v2989_v9 = vmul.f32 %v5814_v53, %v5265_v4  ;;  %v2623_v4 = vpop.xlane.xlu0 %2622  ;;  %v5834_v57 = vpop.eup %5833 }
 0x507   : > { %v5267_v62 = vpop.f32.mrf.mxu0  ;;  %5839 = vrcp.f32 %v2623_v4 }
 0x508   : > { %v3018_v33 = vpack.c.bf16 %v2989_v9, %v2988_v41  ;;  %v5268_v22 = vadd.f32 %v5267_v62, %v5266_v52  ;;  %v2626_v52 = vpop.xlane.xlu1 %2625 }
 0x509   : > { %v5269_v34 = vpop.f32.mrf.mxu0  ;;  %5841 = vrcp.f32 %v2626_v52 }
 0x50a   : > { %5416 = vmatprep.mubr.msk.bf16.mxu1 %vm1660_vm0, %v3018_v33  ;;  %v2990_v49 = vmul.f32 %v5816_v61, %v5268_v22 }
 0x50b   : > { %v5270_v5 = vpop.f32.mrf.mxu0 }
 0x50c   : > { %v5271_v14 = vadd.f32 %v5270_v5, %v5269_v34  ;;  %v5836_v23 = vpop.eup %5835 }
 0x50d   : > { %v5272_v2 = vpop.f32.mrf.mxu0 }
 0x50e   : > { %v2991_v20 = vmul.f32 %v5818_v26, %v5271_v14  ;;  %v2629_v14 = vpop.xlane.xlu0 %2628  ;;  %v5838_v36 = vpop.eup %5837 }
 0x50f   : > { %v5273_v19 = vpop.f32.mrf.mxu0  ;;  %5843 = vrcp.f32 %v2629_v14 }
 0x510   : > { %v3019_v13 = vpack.c.bf16 %v2991_v20, %v2990_v49  ;;  %v5274_v12 = vadd.f32 %v5273_v19, %v5272_v2  ;;  %v2632_v2 = vpop.xlane.xlu1 %2631 }
 0x511   : > { %v5275_v50 = vpop.f32.mrf.mxu0  ;;  %5845 = vrcp.f32 %v2632_v2 }
 0x512   : > { %5417 = vmatmul.mubr.msk.bf16.gmra.mxu1 %vm1660_vm0, %v3019_v13  ;;  %v2992_v44 = vmul.f32 %v5820_v63, %v5274_v12 }
 0x513   : > { %v5276_v29 = vpop.f32.mrf.mxu0 }
 0x514   : > { %v5277_v15 = vadd.f32 %v5276_v29, %v5275_v50  ;;  %v5840_v11 = vpop.eup %5839 }
 0x515   : > { %v5278_v37 = vpop.f32.mrf.mxu0 }
 0x516   : > { %v2993_v48 = vmul.f32 %v5822_v1, %v5277_v15  ;;  %v2635_v15 = vpop.xlane.xlu0 %2634  ;;  %v5842_v47 = vpop.eup %5841 }
 0x517   : > { %v5279_v16 = vpop.f32.mrf.mxu0  ;;  %5847 = vrcp.f32 %v2635_v15 }
 0x518   : > { %v3020_v35 = vpack.c.bf16 %v2993_v48, %v2992_v44  ;;  %v5280_v42 = vadd.f32 %v5279_v16, %v5278_v37  ;;  %v2638_v37 = vpop.xlane.xlu1 %2637 }
 0x519   : > { %v5281_v0 = vpop.f32.mrf.mxu0  ;;  %5849 = vrcp.f32 %v2638_v37 }
 0x51a   : > { %5420 = vmatprep.mubr.msk.bf16.mxu1 %vm1660_vm0, %v3020_v35  ;;  %v2994_v27 = vmul.f32 %v5824_v43, %v5280_v42 }
 0x51b   : > { %v5282_v18 = vpop.f32.mrf.mxu0 }
 0x51c   : > { %v5283_v8 = vadd.f32 %v5282_v18, %v5281_v0  ;;  %v5844_v39 = vpop.eup %5843 }
 0x51d   : > { %v5284_v59 = vpop.f32.mrf.mxu0 }
 0x51e   : > { %v2995_v60 = vmul.f32 %v5826_v7, %v5283_v8  ;;  %v2641_v8 = vpop.xlane.xlu0 %2640  ;;  %v5846_v10 = vpop.eup %5845 }
 0x51f   : > { %v5285_v28 = vpop.f32.mrf.mxu0  ;;  %5851 = vrcp.f32 %v2641_v8 }
 0x520   : > { %v3021_v56 = vpack.c.bf16 %v2995_v60, %v2994_v27  ;;  %v5286_v54 = vadd.f32 %v5285_v28, %v5284_v59  ;;  %v2644_v59 = vpop.xlane.xlu1 %2643 }
 0x521   : > { %v5287_v55 = vpop.f32.mrf.mxu0  ;;  %5853 = vrcp.f32 %v2644_v59 }
 0x522   : > { %5421 = vmatmul.mubr.msk.bf16.gmra.mxu1 %vm1660_vm0, %v3021_v56  ;;  %v2996_v45 = vmul.f32 %v5828_v31, %v5286_v54 }
 0x523   : > { %v5288_v6 = vpop.f32.mrf.mxu0 }
 0x524   : > { %v5289_v3 = vadd.f32 %v5288_v6, %v5287_v55  ;;  %v5848_v24 = vpop.eup %5847 }
 0x525   : > { %v5290_v38 = vpop.f32.mrf.mxu0 }
 0x526   : > { %v2997_v58 = vmul.f32 %v5830_v21, %v5289_v3  ;;  %v2647_v3 = vpop.xlane.xlu0 %2646  ;;  %v5850_v51 = vpop.eup %5849 }
 0x527   : > { %v5291_v30 = vpop.f32.mrf.mxu0  ;;  %5855 = vrcp.f32 %v2647_v3 }
 0x528   : > { %v3022_v40 = vpack.c.bf16 %v2997_v58, %v2996_v45  ;;  %v5292_v25 = vadd.f32 %v5291_v30, %v5290_v38  ;;  %v2650_v38 = vpop.xlane.xlu1 %2649 }
 0x529   : > { %v5293_v17 = vpop.f32.mrf.mxu0  ;;  %5857 = vrcp.f32 %v2650_v38  ;;  %v3268_v38 = vld [vmem:[#allocation5 + $0x18] sm:$0xff] }
 0x52a   : > { %5424 = vmatprep.mubr.msk.bf16.mxu1 %vm1660_vm0, %v3022_v40  ;;  %v2998_v9 = vmul.f32 %v5832_v32, %v5292_v25 }
 0x52b   : > { %v5294_v46 = vpop.f32.mrf.mxu0 }
 0x52c   : > { %v5295_v53 = vadd.f32 %v5294_v46, %v5293_v17  ;;  %v5852_v4 = vpop.eup %5851 }
 0x52d   : > { %v5296_v41 = vpop.f32.mrf.mxu0 }
 0x52e   : > { %v2999_v62 = vmul.f32 %v5834_v57, %v5295_v53  ;;  %v2653_v53 = vpop.xlane.xlu0 %2652  ;;  %v5854_v52 = vpop.eup %5853 }
 0x52f   : > { %v5297_v33 = vpop.f32.mrf.mxu0  ;;  %5859 = vrcp.f32 %v2653_v53 }
 0x530   : > { %v3023_v34 = vpack.c.bf16 %v2999_v62, %v2998_v9  ;;  %v5298_v5 = vadd.f32 %v5297_v33, %v5296_v41  ;;  %v2656_v41 = vpop.xlane.xlu1 %2655 }
 0x531   : > { %v5299_v22 = vpop.f32.mrf.mxu0  ;;  %5861 = vrcp.f32 %v2656_v41 }
 0x532   : > { %5425 = vmatmul.mubr.msk.bf16.gmra.mxu1 %vm1660_vm0, %v3023_v34  ;;  %v3000_v20 = vmul.f32 %v5836_v23, %v5298_v5 }
 0x533   : > { %v5300_v61 = vpop.f32.mrf.mxu0 }
 0x534   : > { %v5301_v26 = vadd.f32 %v5300_v61, %v5299_v22  ;;  %v5856_v14 = vpop.eup %5855 }
 0x535   : > { %v5302_v49 = vpop.f32.mrf.mxu0 }
 0x536   : > { %v3001_v19 = vmul.f32 %v5838_v36, %v5301_v26  ;;  %v2659_v26 = vpop.xlane.xlu0 %2658  ;;  %v5858_v2 = vpop.eup %5857 }
 0x537   : > { %v5303_v13 = vpop.f32.mrf.mxu0  ;;  %5863 = vrcp.f32 %v2659_v26  ;;  %v3272_v26 = vld [vmem:[#allocation5 + $0x38] sm:$0xff] }
 0x538   : > { %v3024_v50 = vpack.c.bf16 %v3001_v19, %v3000_v20  ;;  %v5304_v29 = vadd.f32 %v5303_v13, %v5302_v49  ;;  %v2662_v49 = vpop.xlane.xlu1 %2661 }
 0x539   : > { %v5305_v12 = vpop.f32.mrf.mxu0  ;;  %5865 = vrcp.f32 %v2662_v49 }
 0x53a   : > { %5428 = vmatprep.mubr.msk.bf16.mxu1 %vm1660_vm0, %v3024_v50  ;;  %v3002_v48 = vmul.f32 %v5840_v11, %v5304_v29 }
 0x53b   : > { %v5306_v63 = vpop.f32.mrf.mxu0 }
 0x53c   : > { %v5307_v1 = vadd.f32 %v5306_v63, %v5305_v12  ;;  %v5860_v15 = vpop.eup %5859 }
 0x53d   : > { %v5308_v44 = vpop.f32.mrf.mxu0 }
 0x53e   : > { %v3003_v16 = vmul.f32 %v5842_v47, %v5307_v1  ;;  %v5862_v47 = vpop.eup %5861 }
 0x53f   : > { %v5309_v35 = vpop.f32.mrf.mxu0 }
 0x540   : > { %v3025_v0 = vpack.c.bf16 %v3003_v16, %v3002_v48  ;;  %v5310_v18 = vadd.f32 %v5309_v35, %v5308_v44 }
 0x541   : > { %v5311_v42 = vpop.f32.mrf.mxu0 }
 0x542   : > { %5429 = vmatmul.mubr.msk.bf16.gmra.mxu1 %vm1660_vm0, %v3025_v0  ;;  %v3004_v60 = vmul.f32 %v5844_v39, %v5310_v18 }
 0x543   : > { %v5312_v43 = vpop.f32.mrf.mxu0 }
 0x544   : > { %v5313_v7 = vadd.f32 %v5312_v43, %v5311_v42  ;;  %v5864_v43 = vpop.eup %5863 }
 0x545   : > { %v5314_v27 = vpop.f32.mrf.mxu0 }
 0x546   : > { %v3005_v28 = vmul.f32 %v5846_v10, %v5313_v7  ;;  %v5866_v8 = vpop.eup %5865 }
 0x547   : > { %v5315_v56 = vpop.f32.mrf.mxu0 }
 0x548   : > { %v3026_v55 = vpack.c.bf16 %v3005_v28, %v3004_v60  ;;  %v5316_v6 = vadd.f32 %v5315_v56, %v5314_v27  ;;  %v3985_v27 = vpop.permute.xlu0 %3984  ;;  %v3983_v60 = vpop.permute.xlu1 %3982  ;;  %v7361_v56 = vld [vmem:[%s8161_s2] ss:$0 sm:$0xff] }
 0x549   : > { %v5317_v54 = vpop.f32.mrf.mxu0  ;;  %5444 = vmatprep.subr.bf16.mxu1 %v3985_v27 }
 0x54a   : > { %5432 = vmatprep.mubr.msk.bf16.mxu1 %vm1660_vm0, %v3026_v55  ;;  %v3006_v58 = vmul.f32 %v5848_v24, %v5316_v6  ;;  %5445 = vmatpush3.bf16.msra.mxu1 %v3985_v27  ;;  %v3265_v24 = vld [vmem:[#allocation5] sm:$0xff]  ;;  %v3274_v27 = vld [vmem:[#allocation5 + $0x48] sm:$0xff] }
 0x54b   : > { %v5318_v31 = vpop.f32.mrf.mxu0  ;;  %5446 = vmatprep.subr.bf16.mxu1 %v3983_v60 }
 0x54c   : > { %v5319_v21 = vadd.f32 %v5318_v31, %v5317_v54  ;;  %v3981_v28 = vpop.permute.xlu0 %3980  ;;  %v3267_v54 = vld [vmem:[#allocation5 + $0x10] sm:$0xff] }
 0x54d   : > { %v5320_v45 = vpop.f32.mrf.mxu0 }
 0x54e   : > { %v3007_v30 = vmul.f32 %v5850_v51, %v5319_v21  ;;  %5447 = vmatpush3.bf16.msra.mxu1 %v3983_v60 }
 0x54f   : > { %v5321_v40 = vpop.f32.mrf.mxu0  ;;  %5448 = vmatprep.subr.bf16.mxu1 %v3981_v28 }
 0x550   : > { %v3027_v17 = vpack.c.bf16 %v3007_v30, %v3006_v58  ;;  %v5322_v46 = vadd.f32 %v5321_v40, %v5320_v45  ;;  %v3266_v40 = vld [vmem:[#allocation5 + $0x8] sm:$0xff] }
 0x551   : > { %v5323_v25 = vpop.f32.mrf.mxu0 }
 0x552   : > { %5433 = vmatmul.mubr.msk.bf16.gmra.mxu1 %vm1660_vm0, %v3027_v17  ;;  %v3008_v62 = vmul.f32 %v5852_v4, %v5322_v46 }
 0x553   : > { %v5324_v32 = vpop.f32.mrf.mxu0  ;;  %5449 = vmatpush3.bf16.msra.mxu1 %v3981_v28 }
 0x554   : > { %v5325_v57 = vadd.f32 %v5324_v32, %v5323_v25 }
 0x555   : > { %v5326_v9 = vpop.f32.mrf.mxu0 }
 0x556   : > { %v3009_v33 = vmul.f32 %v5854_v52, %v5325_v57  ;;  %v3271_v52 = vld [vmem:[#allocation5 + $0x30] sm:$0xff] }
 0x557   : > { %v5327_v34 = vpop.f32.mrf.mxu0 }
 0x558   : > { %v3028_v22 = vpack.c.bf16 %v3009_v33, %v3008_v62  ;;  %v5328_v61 = vadd.f32 %v5327_v34, %v5326_v9 }
 0x559   : > { %v5329_v5 = vpop.f32.mrf.mxu0 }
 0x55a   : > { %5436 = vmatprep.mubr.msk.bf16.mxu1 %vm1660_vm0, %v3028_v22  ;;  %v3010_v19 = vmul.f32 %v5856_v14, %v5328_v61  ;;  %v3269_v22 = vld [vmem:[#allocation5 + $0x20] sm:$0xff] }
 0x55b   : > { %v5330_v23 = vpop.f32.mrf.mxu0 }
 0x55c   : > { %v5331_v36 = vadd.f32 %v5330_v23, %v5329_v5 }
 0x55d   : > { %v5332_v20 = vpop.f32.mrf.mxu1 }
 0x55e   : > { %v3011_v13 = vmul.f32 %v5858_v2, %v5331_v36 }
 0x55f   : > { %v5333_v50 = vpop.f32.mrf.mxu1 }
 0x560   : > { %v3029_v12 = vpack.c.bf16 %v3011_v13, %v3010_v19  ;;  %v5334_v63 = vadd.f32 %v5333_v50, %v5332_v20  ;;  %v3270_v19 = vld [vmem:[#allocation5 + $0x28] sm:$0xff] }
 0x561   : > { %v5335_v29 = vpop.f32.mrf.mxu1 }
 0x562   : > { %5437 = vmatmul.mubr.msk.bf16.gmra.mxu1 %vm1660_vm0, %v3029_v12  ;;  %v3012_v44 = vmul.f32 %v5860_v15, %v5334_v63 }
 0x563   : > { %v5336_v11 = vpop.f32.mrf.mxu1 }
 0x564   : > { %v5337_v1 = vadd.f32 %v5336_v11, %v5335_v29 }
 0x565   : > { %v5338_v37 = vpop.f32.mrf.mxu1 }
 0x566   : > { %v3013_v48 = vmul.f32 %v5862_v47, %v5337_v1  ;;  %v3275_v1 = vld [vmem:[#allocation5 + $0x50] sm:$0xff] }
 0x567   : > { %v5339_v16 = vpop.f32.mrf.mxu1 }
 0x568   : > { %v3030_v35 = vpack.c.bf16 %v3013_v48, %v3012_v44  ;;  %v5340_v42 = vadd.f32 %v5339_v16, %v5338_v37 }
 0x569   : > { %v5341_v0 = vpop.f32.mrf.mxu1 }
 0x56a   : > { %5440 = vmatprep.mubr.msk.bf16.mxu1 %vm1660_vm0, %v3030_v35  ;;  %v3014_v7 = vmul.f32 %v5864_v43, %v5340_v42  ;;  %v3273_v35 = vld [vmem:[#allocation5 + $0x40] sm:$0xff] }
 0x56b   : > { %v5342_v18 = vpop.f32.mrf.mxu1 }
 0x56c   : > { %v5343_v39 = vadd.f32 %v5342_v18, %v5341_v0 }
 0x56e   : > { %v3015_v10 = vmul.f32 %v5866_v8, %v5343_v39  ;;  %v3276_v39 = vld [vmem:[#allocation5 + $0x58] sm:$0xff] }
 0x570   : > { %v3031_v59 = vpack.c.bf16 %v3015_v10, %v3014_v7 }
 0x572   : > { %5441 = vmatmul.mubr.msk.bf16.gmra.mxu1 %vm1660_vm0, %v3031_v59 }
 0x5c2   : > { %v5414_v55 = vpop.f32.mrf.mxu1 }
 0x5c3   : > { %v3299_v6 = vadd.f32 %v5414_v55, %v3267_v54 }
 0x5c4   : > { %v3138_v31 = vpop.f32.mrf.mxu1 }
 0x5c5   : > { %v3335_v3 = vadd.f32 %v7361_v56, %v3299_v6  ;;  %v3297_v21 = vadd.f32 %v3265_v24, %v3138_v31 }
 0x5c6   : > { %v5415_v51 = vpop.f32.mrf.mxu1 }
 0x5c7   : > { %3367 = vst.msk [vmem:[#allocation5 + $0x10] sm:$0xff] %vm1660_vm0, %v3335_v3  ;;  %v3333_v45 = vadd.f32 %v7361_v56, %v3297_v21  ;;  %v3300_v58 = vadd.f32 %v5415_v51, %v3268_v38  ;;  %v3279_v3 = vld [vmem:[#allocation5 + $0x70] sm:$0xff] }
 0x5c8   : > { %v3141_v30 = vpop.f32.mrf.mxu1 }
 0x5c9   : > { %3365 = vst.msk [vmem:[#allocation5] sm:$0xff] %vm1660_vm0, %v3333_v45  ;;  %v3336_v17 = vadd.f32 %v7361_v56, %v3300_v58  ;;  %v3298_v25 = vadd.f32 %v3266_v40, %v3141_v30  ;;  %v3277_v30 = vld [vmem:[#allocation5 + $0x60] sm:$0xff] }
 0x5cb   : > { %3368 = vst.msk [vmem:[#allocation5 + $0x18] sm:$0xff] %vm1660_vm0, %v3336_v17  ;;  %v3334_v46 = vadd.f32 %v7361_v56, %v3298_v25 }
 0x5cd   : > { %3366 = vst.msk [vmem:[#allocation5 + $0x8] sm:$0xff] %vm1660_vm0, %v3334_v46 }
 0x5ce   : > { %v7371_v32 = vld [vmem:[#allocation5 + $0x10] sm:$0xff] }
 0x5cf   : > { %v3455_v4 = vsel %vm1660_vm0, %v7371_v32, 0.0 }
 0x5d0   : > { %3456 = vadd.xlane.f32.xlu0 %v3455_v4  ;;  %v7375_v53 = vld [vmem:[#allocation5] sm:$0xff]  ;;  %v3280_v4 = vld [vmem:[#allocation5 + $0x78] sm:$0xff] }
 0x5d1   : > { %v3449_v62 = vsel %vm1660_vm0, %v7375_v53, 0.0 }
 0x5d2   : > { %v5418_v57 = vpop.f32.mrf.mxu1  ;;  %v7377_v41 = vld [vmem:[#allocation5 + $0x18] sm:$0xff] }
 0x5d3   : > { %v3303_v9 = vadd.f32 %v5418_v57, %v3271_v52  ;;  %v3458_v33 = vsel %vm1660_vm0, %v7377_v41, 0.0 }
 0x5d4   : > { %3450 = vadd.xlane.f32.xlu0 %v3449_v62  ;;  %3459 = vadd.xlane.f32.xlu1 %v3458_v33  ;;  %v3154_v34 = vpop.f32.mrf.mxu1  ;;  %v7383_v5 = vld [vmem:[#allocation5 + $0x8] sm:$0xff] }
 0x5d5   : > { %v3339_v61 = vadd.f32 %v7361_v56, %v3303_v9  ;;  %v3301_v23 = vadd.f32 %v3269_v22, %v3154_v34  ;;  %v3452_v49 = vsel %vm1660_vm0, %v7383_v5, 0.0  ;;  %v3278_v33 = vld [vmem:[#allocation5 + $0x68] sm:$0xff] }
 0x5d6   : > { %v5419_v14 = vpop.f32.mrf.mxu1 }
 0x5d7   : > { %3371 = vst.msk [vmem:[#allocation5 + $0x30] sm:$0xff] %vm1660_vm0, %v3339_v61  ;;  %v3337_v36 = vadd.f32 %v7361_v56, %v3301_v23  ;;  %v3304_v2 = vadd.f32 %v5419_v14, %v3272_v26 }
 0x5d8   : > { %3453 = vadd.xlane.f32.xlu1 %v3452_v49  ;;  %v3157_v20 = vpop.f32.mrf.mxu1 }
 0x5d9   : > { %3369 = vst.msk [vmem:[#allocation5 + $0x20] sm:$0xff] %vm1660_vm0, %v3337_v36  ;;  %v3340_v13 = vadd.f32 %v7361_v56, %v3304_v2  ;;  %v3302_v50 = vadd.f32 %v3270_v19, %v3157_v20  ;;  %v3283_v2 = vld [vmem:[#allocation5 + $0x90] sm:$0xff] }
 0x5db   : > { %3372 = vst.msk [vmem:[#allocation5 + $0x38] sm:$0xff] %vm1660_vm0, %v3340_v13  ;;  %v3338_v12 = vadd.f32 %v7361_v56, %v3302_v50 }
 0x5dd   : > { %3370 = vst.msk [vmem:[#allocation5 + $0x28] sm:$0xff] %vm1660_vm0, %v3338_v12  ;;  %v3281_v12 = vld [vmem:[#allocation5 + $0x80] sm:$0xff] }
 0x5de   : > { %v7395_v29 = vld [vmem:[#allocation5 + $0x30] sm:$0xff] }
 0x5df   : > { %v3467_v63 = vsel %vm1660_vm0, %v7395_v29, 0.0 }
 0x5e0   : > { %3468 = vadd.xlane.f32.xlu0 %v3467_v63  ;;  %v7399_v11 = vld [vmem:[#allocation5 + $0x20] sm:$0xff] }
 0x5e1   : > { %v3461_v44 = vsel %vm1660_vm0, %v7399_v11, 0.0 }
 0x5e2   : > { %v5422_v15 = vpop.f32.mrf.mxu1  ;;  %v7401_v47 = vld [vmem:[#allocation5 + $0x38] sm:$0xff] }
 0x5e3   : > { %v3307_v37 = vadd.f32 %v5422_v15, %v3275_v1  ;;  %v3470_v48 = vsel %vm1660_vm0, %v7401_v47, 0.0 }
 0x5e4   : > { %3462 = vadd.xlane.f32.xlu0 %v3461_v44  ;;  %3471 = vadd.xlane.f32.xlu1 %v3470_v48  ;;  %v3170_v16 = vpop.f32.mrf.mxu1  ;;  %v7407_v0 = vld [vmem:[#allocation5 + $0x28] sm:$0xff]  ;;  %v3284_v44 = vld [vmem:[#allocation5 + $0x98] sm:$0xff] }
 0x5e5   : > { %v3343_v42 = vadd.f32 %v7361_v56, %v3307_v37  ;;  %v3305_v18 = vadd.f32 %v3273_v35, %v3170_v16  ;;  %v3464_v10 = vsel %vm1660_vm0, %v7407_v0, 0.0 }
 0x5e6   : > { %v5423_v43 = vpop.f32.mrf.mxu1 }
 0x5e7   : > { %3375 = vst.msk [vmem:[#allocation5 + $0x50] sm:$0xff] %vm1660_vm0, %v3343_v42  ;;  %v3341_v8 = vadd.f32 %v7361_v56, %v3305_v18  ;;  %v3308_v7 = vadd.f32 %v5423_v43, %v3276_v39  ;;  %v3282_v18 = vld [vmem:[#allocation5 + $0x88] sm:$0xff] }
 0x5e8   : > { %3465 = vadd.xlane.f32.xlu1 %v3464_v10  ;;  %v3173_v59 = vpop.f32.mrf.mxu1 }
 0x5e9   : > { %3373 = vst.msk [vmem:[#allocation5 + $0x40] sm:$0xff] %vm1660_vm0, %v3341_v8  ;;  %v3344_v60 = vadd.f32 %v7361_v56, %v3308_v7  ;;  %v3306_v28 = vadd.f32 %v3274_v27, %v3173_v59 }
 0x5eb   : > { %3376 = vst.msk [vmem:[#allocation5 + $0x58] sm:$0xff] %vm1660_vm0, %v3344_v60  ;;  %v3342_v55 = vadd.f32 %v7361_v56, %v3306_v28  ;;  %v3287_v60 = vld [vmem:[#allocation5 + $0xb0] sm:$0xff] }
 0x5ed   : > { %3374 = vst.msk [vmem:[#allocation5 + $0x48] sm:$0xff] %vm1660_vm0, %v3342_v55 }
 0x5ee   : > { %v7419_v54 = vld [vmem:[#allocation5 + $0x50] sm:$0xff] }
 0x5ef   : > { %v3479_v6 = vsel %vm1660_vm0, %v7419_v54, 0.0 }
 0x5f0   : > { %3480 = vadd.xlane.f32.xlu0 %v3479_v6  ;;  %v7423_v31 = vld [vmem:[#allocation5 + $0x40] sm:$0xff] }
 0x5f1   : > { %v3473_v38 = vsel %vm1660_vm0, %v7423_v31, 0.0 }
 0x5f2   : > { %v5426_v24 = vpop.f32.mrf.mxu1  ;;  %v7425_v21 = vld [vmem:[#allocation5 + $0x58] sm:$0xff] }
 0x5f3   : > { %v3311_v51 = vadd.f32 %v5426_v24, %v3279_v3  ;;  %v3482_v45 = vsel %vm1660_vm0, %v7425_v21, 0.0 }
 0x5f4   : > { %3474 = vadd.xlane.f32.xlu0 %v3473_v38  ;;  %3483 = vadd.xlane.f32.xlu1 %v3482_v45  ;;  %v3186_v58 = vpop.f32.mrf.mxu1  ;;  %v7431_v40 = vld [vmem:[#allocation5 + $0x48] sm:$0xff] }
 0x5f5   : > { %v3347_v17 = vadd.f32 %v7361_v56, %v3311_v51  ;;  %v3309_v25 = vadd.f32 %v3277_v30, %v3186_v58  ;;  %v3476_v9 = vsel %vm1660_vm0, %v7431_v40, 0.0  ;;  %v3285_v51 = vld [vmem:[#allocation5 + $0xa0] sm:$0xff] }
 0x5f6   : > { %v5427_v46 = vpop.f32.mrf.mxu1 }
 0x5f7   : > { %3379 = vst.msk [vmem:[#allocation5 + $0x70] sm:$0xff] %vm1660_vm0, %v3347_v17  ;;  %v3345_v57 = vadd.f32 %v7361_v56, %v3309_v25  ;;  %v3312_v52 = vadd.f32 %v5427_v46, %v3280_v4  ;;  %v3288_v17 = vld [vmem:[#allocation5 + $0xb8] sm:$0xff] }
 0x5f8   : > { %3477 = vadd.xlane.f32.xlu1 %v3476_v9  ;;  %v3189_v62 = vpop.f32.mrf.mxu1 }
 0x5f9   : > { %3377 = vst.msk [vmem:[#allocation5 + $0x60] sm:$0xff] %vm1660_vm0, %v3345_v57  ;;  %v3348_v34 = vadd.f32 %v7361_v56, %v3312_v52  ;;  %v3310_v22 = vadd.f32 %v3278_v33, %v3189_v62  ;;  %v3286_v52 = vld [vmem:[#allocation5 + $0xa8] sm:$0xff] }
 0x5fb   : > { %3380 = vst.msk [vmem:[#allocation5 + $0x78] sm:$0xff] %vm1660_vm0, %v3348_v34  ;;  %v3346_v61 = vadd.f32 %v7361_v56, %v3310_v22 }
 0x5fd   : > { %3378 = vst.msk [vmem:[#allocation5 + $0x68] sm:$0xff] %vm1660_vm0, %v3346_v61 }
 0x5fe   : > { %v7443_v23 = vld [vmem:[#allocation5 + $0x70] sm:$0xff] }
 0x5ff   : > { %v3491_v14 = vsel %vm1660_vm0, %v7443_v23, 0.0 }
 0x600   : > { %3492 = vadd.xlane.f32.xlu0 %v3491_v14  ;;  %v7447_v26 = vld [vmem:[#allocation5 + $0x60] sm:$0xff] }
 0x601   : > { %v3485_v19 = vsel %vm1660_vm0, %v7447_v26, 0.0 }
 0x602   : > { %v5430_v36 = vpop.f32.mrf.mxu1  ;;  %v7449_v49 = vld [vmem:[#allocation5 + $0x78] sm:$0xff] }
 0x603   : > { %v3315_v20 = vadd.f32 %v5430_v36, %v3283_v2  ;;  %v3494_v13 = vsel %vm1660_vm0, %v7449_v49, 0.0  ;;  %v3291_v36 = vld [vmem:[#allocation5 + $0xd0] sm:$0xff] }
 0x604   : > { %3486 = vadd.xlane.f32.xlu0 %v3485_v19  ;;  %3495 = vadd.xlane.f32.xlu1 %v3494_v13  ;;  %v3202_v50 = vpop.f32.mrf.mxu1  ;;  %v7455_v63 = vld [vmem:[#allocation5 + $0x68] sm:$0xff] }
 0x605   : > { %v3351_v15 = vadd.f32 %v7361_v56, %v3315_v20  ;;  %v3313_v1 = vadd.f32 %v3281_v12, %v3202_v50  ;;  %v3488_v35 = vsel %vm1660_vm0, %v7455_v63, 0.0  ;;  %v3289_v12 = vld [vmem:[#allocation5 + $0xc0] sm:$0xff] }
 0x606   : > { %v5431_v37 = vpop.f32.mrf.mxu1 }
 0x607   : > { %3383 = vst.msk [vmem:[#allocation5 + $0x90] sm:$0xff] %vm1660_vm0, %v3351_v15  ;;  %v3349_v48 = vadd.f32 %v7361_v56, %v3313_v1  ;;  %v3316_v16 = vadd.f32 %v5431_v37, %v3284_v44 }
 0x608   : > { %3489 = vadd.xlane.f32.xlu1 %v3488_v35  ;;  %v3205_v42 = vpop.f32.mrf.mxu1 }
 0x609   : > { %3381 = vst.msk [vmem:[#allocation5 + $0x80] sm:$0xff] %vm1660_vm0, %v3349_v48  ;;  %v3352_v43 = vadd.f32 %v7361_v56, %v3316_v16  ;;  %v3314_v39 = vadd.f32 %v3282_v18, %v3205_v42  ;;  %v3292_v48 = vld [vmem:[#allocation5 + $0xd8] sm:$0xff] }
 0x60b   : > { %3384 = vst.msk [vmem:[#allocation5 + $0x98] sm:$0xff] %vm1660_vm0, %v3352_v43  ;;  %v3350_v8 = vadd.f32 %v7361_v56, %v3314_v39  ;;  %v3290_v43 = vld [vmem:[#allocation5 + $0xc8] sm:$0xff] }
 0x60d   : > { %3382 = vst.msk [vmem:[#allocation5 + $0x88] sm:$0xff] %vm1660_vm0, %v3350_v8 }
 0x60e   : > { %v7467_v7 = vld [vmem:[#allocation5 + $0x90] sm:$0xff] }
 0x60f   : > { %v3503_v10 = vsel %vm1660_vm0, %v7467_v7, 0.0 }
 0x610   : > { %3504 = vadd.xlane.f32.xlu0 %v3503_v10  ;;  %v7471_v59 = vld [vmem:[#allocation5 + $0x80] sm:$0xff] }
 0x611   : > { %v3497_v6 = vsel %vm1660_vm0, %v7471_v59, 0.0 }
 0x612   : > { %v5434_v27 = vpop.f32.mrf.mxu1  ;;  %v7473_v28 = vld [vmem:[#allocation5 + $0x98] sm:$0xff] }
 0x613   : > { %v3319_v55 = vadd.f32 %v5434_v27, %v3287_v60  ;;  %v3506_v24 = vsel %vm1660_vm0, %v7473_v28, 0.0 }
 0x614   : > { %3498 = vadd.xlane.f32.xlu0 %v3497_v6  ;;  %3507 = vadd.xlane.f32.xlu1 %v3506_v24  ;;  %v3218_v3 = vpop.f32.mrf.mxu1  ;;  %v7479_v38 = vld [vmem:[#allocation5 + $0x88] sm:$0xff]  ;;  %v3295_v24 = vld [vmem:[#allocation5 + $0xf0] sm:$0xff] }
 0x615   : > { %v3355_v45 = vadd.f32 %v7361_v56, %v3319_v55  ;;  %v3317_v58 = vadd.f32 %v3285_v51, %v3218_v3  ;;  %v3500_v4 = vsel %vm1660_vm0, %v7479_v38, 0.0 }
 0x616   : > { %v5435_v30 = vpop.f32.mrf.mxu1 }
 0x617   : > { %3387 = vst.msk [vmem:[#allocation5 + $0xb0] sm:$0xff] %vm1660_vm0, %v3355_v45  ;;  %v3353_v25 = vadd.f32 %v7361_v56, %v3317_v58  ;;  %v3320_v46 = vadd.f32 %v5435_v30, %v3288_v17  ;;  %v3293_v17 = vld [vmem:[#allocation5 + $0xe0] sm:$0xff] }
 0x618   : > { %3501 = vadd.xlane.f32.xlu1 %v3500_v4  ;;  %v3221_v57 = vpop.f32.mrf.mxu1 }
 0x619   : > { %3385 = vst.msk [vmem:[#allocation5 + $0xa0] sm:$0xff] %vm1660_vm0, %v3353_v25  ;;  %v3356_v9 = vadd.f32 %v7361_v56, %v3320_v46  ;;  %v3318_v62 = vadd.f32 %v3286_v52, %v3221_v57  ;;  %v3296_v52 = vld [vmem:[#allocation5 + $0xf8] sm:$0xff] }
 0x61b   : > { %3388 = vst.msk [vmem:[#allocation5 + $0xb8] sm:$0xff] %vm1660_vm0, %v3356_v9  ;;  %v3354_v33 = vadd.f32 %v7361_v56, %v3318_v62 }
 0x61d   : > { %3386 = vst.msk [vmem:[#allocation5 + $0xa8] sm:$0xff] %vm1660_vm0, %v3354_v33 }
 0x61e   : > { %v7491_v34 = vld [vmem:[#allocation5 + $0xb0] sm:$0xff] }
 0x61f   : > { %v3515_v22 = vsel %vm1660_vm0, %v7491_v34, 0.0 }
 0x620   : > { %3516 = vadd.xlane.f32.xlu0 %v3515_v22  ;;  %v7495_v61 = vld [vmem:[#allocation5 + $0xa0] sm:$0xff] }
 0x621   : > { %v3509_v19 = vsel %vm1660_vm0, %v7495_v61, 0.0 }
 0x622   : > { %v5438_v14 = vpop.f32.mrf.mxu1  ;;  %v7497_v2 = vld [vmem:[#allocation5 + $0xb8] sm:$0xff] }
 0x623   : > { %v3323_v20 = vadd.f32 %v5438_v14, %v3291_v36  ;;  %v3518_v13 = vsel %vm1660_vm0, %v7497_v2, 0.0  ;;  %v3294_v14 = vld [vmem:[#allocation5 + $0xe8] sm:$0xff] }
 0x624   : > { %3510 = vadd.xlane.f32.xlu0 %v3509_v19  ;;  %3519 = vadd.xlane.f32.xlu1 %v3518_v13  ;;  %v3234_v50 = vpop.f32.mrf.mxu1  ;;  %v7503_v15 = vld [vmem:[#allocation5 + $0xa8] sm:$0xff] }
 0x625   : > { %v3359_v1 = vadd.f32 %v7361_v56, %v3323_v20  ;;  %v3321_v37 = vadd.f32 %v3289_v12, %v3234_v50  ;;  %v3512_v42 = vsel %vm1660_vm0, %v7503_v15, 0.0 }
 0x626   : > { %v5439_v44 = vpop.f32.mrf.mxu1 }
 0x627   : > { %3391 = vst.msk [vmem:[#allocation5 + $0xd0] sm:$0xff] %vm1660_vm0, %v3359_v1  ;;  %v3357_v16 = vadd.f32 %v7361_v56, %v3321_v37  ;;  %v3324_v35 = vadd.f32 %v5439_v44, %v3292_v48 }
 0x628   : > { %3513 = vadd.xlane.f32.xlu1 %v3512_v42  ;;  %v3237_v18 = vpop.f32.mrf.mxu1 }
 0x629   : > { %3389 = vst.msk [vmem:[#allocation5 + $0xc0] sm:$0xff] %vm1660_vm0, %v3357_v16  ;;  %v3360_v39 = vadd.f32 %v7361_v56, %v3324_v35  ;;  %v3322_v8 = vadd.f32 %v3290_v43, %v3237_v18 }
 0x62b   : > { %3392 = vst.msk [vmem:[#allocation5 + $0xd8] sm:$0xff] %vm1660_vm0, %v3360_v39  ;;  %v3358_v10 = vadd.f32 %v7361_v56, %v3322_v8 }
 0x62d   : > { %3390 = vst.msk [vmem:[#allocation5 + $0xc8] sm:$0xff] %vm1660_vm0, %v3358_v10 }
 0x62e   : > { %v7515_v27 = vld [vmem:[#allocation5 + $0xd0] sm:$0xff] }
 0x62f   : > { %v3527_v60 = vsel %vm1660_vm0, %v7515_v27, 0.0 }
 0x630   : > { %3528 = vadd.xlane.f32.xlu0 %v3527_v60  ;;  %v7519_v55 = vld [vmem:[#allocation5 + $0xc0] sm:$0xff] }
 0x631   : > { %v3521_v45 = vsel %vm1660_vm0, %v7519_v55, 0.0 }
 0x632   : > { %v5442_v6 = vpop.f32.mrf.mxu1  ;;  %v7521_v3 = vld [vmem:[#allocation5 + $0xd8] sm:$0xff] }
 0x633   : > { %v3327_v51 = vadd.f32 %v5442_v6, %v3295_v24  ;;  %v3530_v58 = vsel %vm1660_vm0, %v7521_v3, 0.0 }
 0x634   : > { %3522 = vadd.xlane.f32.xlu0 %v3521_v45  ;;  %3531 = vadd.xlane.f32.xlu1 %v3530_v58  ;;  %v3250_v30 = vpop.f32.mrf.mxu1  ;;  %v7527_v25 = vld [vmem:[#allocation5 + $0xc8] sm:$0xff] }
 0x635   : > { %v3363_v46 = vadd.f32 %v7361_v56, %v3327_v51  ;;  %v3325_v4 = vadd.f32 %v3293_v17, %v3250_v30  ;;  %v3524_v33 = vsel %vm1660_vm0, %v7527_v25, 0.0 }
 0x636   : > { %v5443_v57 = vpop.f32.mrf.mxu1 }
 0x637   : > { %3395 = vst.msk [vmem:[#allocation5 + $0xf0] sm:$0xff] %vm1660_vm0, %v3363_v46  ;;  %v3361_v9 = vadd.f32 %v7361_v56, %v3325_v4  ;;  %v3328_v62 = vadd.f32 %v5443_v57, %v3296_v52 }
 0x638   : > { %3525 = vadd.xlane.f32.xlu1 %v3524_v33  ;;  %v3253_v22 = vpop.f32.mrf.mxu1 }
 0x639   : > { %3393 = vst.msk [vmem:[#allocation5 + $0xe0] sm:$0xff] %vm1660_vm0, %v3361_v9  ;;  %v3364_v36 = vadd.f32 %v7361_v56, %v3328_v62  ;;  %v3326_v20 = vadd.f32 %v3294_v14, %v3253_v22 }
 0x63b   : > { %3396 = vst.msk [vmem:[#allocation5 + $0xf8] sm:$0xff] %vm1660_vm0, %v3364_v36  ;;  %v3362_v19 = vadd.f32 %v7361_v56, %v3326_v20 }
 0x63d   : > { %3394 = vst.msk [vmem:[#allocation5 + $0xe8] sm:$0xff] %vm1660_vm0, %v3362_v19 }
 0x63e   : > { %v7539_v13 = vld [vmem:[#allocation5 + $0xf0] sm:$0xff] }
 0x63f   : > { %v3539_v50 = vsel %vm1660_vm0, %v7539_v13, 0.0 }
 0x640   : > { %3540 = vadd.xlane.f32.xlu0 %v3539_v50  ;;  %v7543_v12 = vld [vmem:[#allocation5 + $0xe0] sm:$0xff] }
 0x641   : > { %v3533_v37 = vsel %vm1660_vm0, %v7543_v12, 0.0 }
 0x642   : > { %v7545_v1 = vld [vmem:[#allocation5 + $0xf8] sm:$0xff] }
 0x643   : > { %v3542_v44 = vsel %vm1660_vm0, %v7545_v1, 0.0 }
 0x644   : > { %3534 = vadd.xlane.f32.xlu0 %v3533_v37  ;;  %3543 = vadd.xlane.f32.xlu1 %v3542_v44  ;;  %v7551_v56 = vld [vmem:[#allocation5 + $0xe8] sm:$0xff] }
 0x645   : > { %v3536_v48 = vsel %vm1660_vm0, %v7551_v56, 0.0 }
 0x648   : > { %3537 = vadd.xlane.f32.xlu1 %v3536_v48 }
 0x659   : > { %v3457_v16 = vpop.xlane.xlu0 %3456 }
 0x65a   : > { %v3548_v35 = vmul.f32 0.015625, %v3457_v16 }
 0x65c   : > { %v7556_v42 = vsub.f32 %v7371_v32, %v3548_v35 }
 0x65d   : > { %v3451_v18 = vpop.xlane.xlu0 %3450  ;;  %v3460_v43 = vpop.xlane.xlu1 %3459 }
 0x65e   : > { %v3546_v39 = vmul.f32 0.015625, %v3451_v18  ;;  %v3549_v8 = vmul.f32 0.015625, %v3460_v43  ;;  %v3612_v10 = vmul.f32 %v7556_v42, %v7556_v42 }
 0x660   : > { %v7561_v60 = vsub.f32 %v7375_v53, %v3546_v39  ;;  %v7564_v6 = vsub.f32 %v7377_v41, %v3549_v8  ;;  %v3648_v24 = vsel %vm1660_vm0, %v3612_v10, 0.0 }
 0x661   : > { %3649 = vadd.xlane.f32.xlu0 %v3648_v24  ;;  %v3454_v51 = vpop.xlane.xlu1 %3453 }
 0x662   : > { %v3547_v45 = vmul.f32 0.015625, %v3454_v51  ;;  %v3610_v32 = vmul.f32 %v7561_v60, %v7561_v60  ;;  %v3613_v58 = vmul.f32 %v7564_v6, %v7564_v6 }
 0x664   : > { %v7572_v30 = vsub.f32 %v7383_v5, %v3547_v45  ;;  %v3642_v53 = vsel %vm1660_vm0, %v3610_v32, 0.0  ;;  %v3651_v17 = vsel %vm1660_vm0, %v3613_v58, 0.0 }
 0x665   : > { %3643 = vadd.xlane.f32.xlu0 %v3642_v53  ;;  %3652 = vadd.xlane.f32.xlu1 %v3651_v17 }
 0x666   : > { %v3611_v41 = vmul.f32 %v7572_v30, %v7572_v30 }
 0x668   : > { %v3645_v46 = vsel %vm1660_vm0, %v3611_v41, 0.0 }
 0x669   : > { %v3469_v4 = vpop.xlane.xlu0 %3468  ;;  %3646 = vadd.xlane.f32.xlu1 %v3645_v46 }
 0x66a   : > { %v3552_v57 = vmul.f32 0.015625, %v3469_v4 }
 0x66c   : > { %v7580_v52 = vsub.f32 %v7395_v29, %v3552_v57 }
 0x66d   : > { %v3463_v9 = vpop.xlane.xlu0 %3462  ;;  %v3472_v5 = vpop.xlane.xlu1 %3471 }
 0x66e   : > { %v3550_v62 = vmul.f32 0.015625, %v3463_v9  ;;  %v3553_v33 = vmul.f32 0.015625, %v3472_v5  ;;  %v3616_v22 = vmul.f32 %v7580_v52, %v7580_v52 }
 0x670   : > { %v7585_v14 = vsub.f32 %v7399_v11, %v3550_v62  ;;  %v7588_v36 = vsub.f32 %v7401_v47, %v3553_v33  ;;  %v3660_v20 = vsel %vm1660_vm0, %v3616_v22, 0.0 }
 0x671   : > { %3661 = vadd.xlane.f32.xlu0 %v3660_v20  ;;  %v3466_v19 = vpop.xlane.xlu1 %3465 }
 0x672   : > { %v3551_v50 = vmul.f32 0.015625, %v3466_v19  ;;  %v3614_v29 = vmul.f32 %v7585_v14, %v7585_v14  ;;  %v3617_v37 = vmul.f32 %v7588_v36, %v7588_v36 }
 0x674   : > { %v7596_v44 = vsub.f32 %v7407_v0, %v3551_v50  ;;  %v3654_v11 = vsel %vm1660_vm0, %v3614_v29, 0.0  ;;  %v3663_v48 = vsel %vm1660_vm0, %v3617_v37, 0.0 }
 0x675   : > { %3655 = vadd.xlane.f32.xlu0 %v3654_v11  ;;  %3664 = vadd.xlane.f32.xlu1 %v3663_v48 }
 0x676   : > { %v3615_v47 = vmul.f32 %v7596_v44, %v7596_v44 }
 0x678   : > { %v3657_v16 = vsel %vm1660_vm0, %v3615_v47, 0.0 }
 0x679   : > { %v3481_v35 = vpop.xlane.xlu0 %3480  ;;  %3658 = vadd.xlane.f32.xlu1 %v3657_v16 }
 0x67a   : > { %v3556_v18 = vmul.f32 0.015625, %v3481_v35 }
 0x67c   : > { %v7604_v43 = vsub.f32 %v7419_v54, %v3556_v18 }
 0x67d   : > { %v3475_v39 = vpop.xlane.xlu0 %3474  ;;  %v3484_v0 = vpop.xlane.xlu1 %3483 }
 0x67e   : > { %v3554_v8 = vmul.f32 0.015625, %v3475_v39  ;;  %v3557_v10 = vmul.f32 0.015625, %v3484_v0  ;;  %v3620_v24 = vmul.f32 %v7604_v43, %v7604_v43 }
 0x680   : > { %v7609_v51 = vsub.f32 %v7423_v31, %v3554_v8  ;;  %v7612_v45 = vsub.f32 %v7425_v21, %v3557_v10  ;;  %v3672_v32 = vsel %vm1660_vm0, %v3620_v24, 0.0 }
 0x681   : > { %3673 = vadd.xlane.f32.xlu0 %v3672_v32  ;;  %v3478_v58 = vpop.xlane.xlu1 %3477 }
 0x682   : > { %v3555_v53 = vmul.f32 0.015625, %v3478_v58  ;;  %v3618_v54 = vmul.f32 %v7609_v51, %v7609_v51  ;;  %v3621_v17 = vmul.f32 %v7612_v45, %v7612_v45 }
 0x684   : > { %v7620_v41 = vsub.f32 %v7431_v40, %v3555_v53  ;;  %v3666_v31 = vsel %vm1660_vm0, %v3618_v54, 0.0  ;;  %v3675_v46 = vsel %vm1660_vm0, %v3621_v17, 0.0 }
 0x685   : > { %3667 = vadd.xlane.f32.xlu0 %v3666_v31  ;;  %3676 = vadd.xlane.f32.xlu1 %v3675_v46 }
 0x686   : > { %v3619_v21 = vmul.f32 %v7620_v41, %v7620_v41 }
 0x688   : > { %v3669_v4 = vsel %vm1660_vm0, %v3619_v21, 0.0 }
 0x689   : > { %v3493_v57 = vpop.xlane.xlu0 %3492  ;;  %3670 = vadd.xlane.f32.xlu1 %v3669_v4 }
 0x68a   : > { %v3560_v9 = vmul.f32 0.015625, %v3493_v57 }
 0x68c   : > { %v7628_v5 = vsub.f32 %v7443_v23, %v3560_v9 }
 0x68d   : > { %v3487_v62 = vpop.xlane.xlu0 %3486  ;;  %v3496_v40 = vpop.xlane.xlu1 %3495 }
 0x68e   : > { %v3558_v33 = vmul.f32 0.015625, %v3487_v62  ;;  %v3561_v22 = vmul.f32 0.015625, %v3496_v40  ;;  %v3624_v20 = vmul.f32 %v7628_v5, %v7628_v5 }
 0x690   : > { %v7633_v19 = vsub.f32 %v7447_v26, %v3558_v33  ;;  %v7636_v50 = vsub.f32 %v7449_v49, %v3561_v22  ;;  %v3684_v29 = vsel %vm1660_vm0, %v3624_v20, 0.0 }
 0x691   : > { %3685 = vadd.xlane.f32.xlu1 %v3684_v29  ;;  %v3490_v37 = vpop.xlane.xlu1 %3489 }
 0x692   : > { %v3559_v11 = vmul.f32 0.015625, %v3490_v37  ;;  %v3622_v23 = vmul.f32 %v7633_v19, %v7633_v19  ;;  %v3625_v26 = vmul.f32 %v7636_v50, %v7636_v50 }
 0x694   : > { %v7642_v48 = vsub.f32 %v7455_v63, %v3559_v11  ;;  %v3678_v47 = vsel %vm1660_vm0, %v3622_v23, 0.0  ;;  %v3687_v49 = vsel %vm1660_vm0, %v3625_v26, 0.0 }
 0x695   : > { %3679 = vadd.xlane.f32.xlu1 %v3678_v47 }
 0x696   : > { %v3623_v16 = vmul.f32 %v7642_v48, %v7642_v48 }
 0x698   : > { %v3681_v63 = vsel %vm1660_vm0, %v3623_v16, 0.0 }
 0x699   : > { %v3505_v35 = vpop.xlane.xlu0 %3504  ;;  %3688 = vadd.xlane.f32.xlu1 %v3687_v49 }
 0x69a   : > { %v3564_v18 = vmul.f32 0.015625, %v3505_v35 }
 0x69c   : > { %v7651_v39 = vsub.f32 %v7467_v7, %v3564_v18 }
 0x69d   : > { %v3499_v0 = vpop.xlane.xlu0 %3498  ;;  %3682 = vadd.xlane.f32.xlu1 %v3681_v63  ;;  %v3508_v8 = vpop.xlane.xlu1 %3507  ;;  %v5670_v63 = vld [vmem:[%s8163_s4] ss:$8 sps:$4 sm:$0xff]  }
 0x69e   : > { %v3562_v10 = vmul.f32 0.015625, %v3499_v0  ;;  %v3565_v24 = vmul.f32 0.015625, %v3508_v8  ;;  %v3628_v32 = vmul.f32 %v7651_v39, %v7651_v39 }
 0x6a0   : > { %v7657_v58 = vsub.f32 %v7471_v59, %v3562_v10  ;;  %v7660_v53 = vsub.f32 %v7473_v28, %v3565_v24  ;;  %v3696_v54 = vsel %vm1660_vm0, %v3628_v32, 0.0 }
 0x6a1   : > { %3697 = vadd.xlane.f32.xlu0 %v3696_v54  ;;  %v3502_v7 = vpop.xlane.xlu1 %3501 }
 0x6a2   : > { %v3563_v17 = vmul.f32 0.015625, %v3502_v7  ;;  %v3626_v31 = vmul.f32 %v7657_v58, %v7657_v58  ;;  %v3629_v59 = vmul.f32 %v7660_v53, %v7660_v53 }
 0x6a4   : > { %v7666_v46 = vsub.f32 %v7479_v38, %v3563_v17  ;;  %v3690_v21 = vsel %vm1660_vm0, %v3626_v31, 0.0  ;;  %v3699_v4 = vsel %vm1660_vm0, %v3629_v59, 0.0 }
 0x6a5   : > { %3691 = vadd.xlane.f32.xlu0 %v3690_v21 }
 0x6a6   : > { %v3627_v28 = vmul.f32 %v7666_v46, %v7666_v46 }
 0x6a8   : > { %v3693_v57 = vsel %vm1660_vm0, %v3627_v28, 0.0 }
 0x6a9   : > { %v3517_v9 = vpop.xlane.xlu0 %3516  ;;  %3700 = vadd.xlane.f32.xlu0 %v3699_v4  ;;  %3694 = vadd.xlane.f32.xlu1 %v3693_v57 }
 0x6aa   : > { %v3568_v62 = vmul.f32 0.015625, %v3517_v9 }
 0x6ac   : > { %v7676_v38 = vsub.f32 %v7491_v34, %v3568_v62 }
 0x6ad   : > { %v3511_v40 = vpop.xlane.xlu0 %3510  ;;  %v3520_v33 = vpop.xlane.xlu1 %3519 }
 0x6ae   : > { %v3566_v22 = vmul.f32 0.015625, %v3511_v40  ;;  %v3569_v20 = vmul.f32 0.015625, %v3520_v33  ;;  %v3632_v29 = vmul.f32 %v7676_v38, %v7676_v38 }
 0x6b0   : > { %v7681_v37 = vsub.f32 %v7495_v61, %v3566_v22  ;;  %v7684_v11 = vsub.f32 %v7497_v2, %v3569_v20  ;;  %v3708_v23 = vsel %vm1660_vm0, %v3632_v29, 0.0 }
 0x6b1   : > { %3709 = vadd.xlane.f32.xlu1 %v3708_v23  ;;  %v3514_v47 = vpop.xlane.xlu1 %3513 }
 0x6b2   : > { %v3567_v26 = vmul.f32 0.015625, %v3514_v47  ;;  %v3630_v34 = vmul.f32 %v7681_v37, %v7681_v37  ;;  %v3633_v61 = vmul.f32 %v7684_v11, %v7684_v11 }
 0x6b4   : > { %v7690_v49 = vsub.f32 %v7503_v15, %v3567_v26  ;;  %v3702_v16 = vsel %vm1660_vm0, %v3630_v34, 0.0  ;;  %v3711_v2 = vsel %vm1660_vm0, %v3633_v61, 0.0 }
 0x6b5   : > { %3703 = vadd.xlane.f32.xlu1 %v3702_v16 }
 0x6b6   : > { %v3631_v35 = vmul.f32 %v7690_v49, %v7690_v49 }
 0x6b8   : > { %v3705_v15 = vsel %vm1660_vm0, %v3631_v35, 0.0 }
 0x6b9   : > { %v3529_v18 = vpop.xlane.xlu0 %3528  ;;  %3712 = vadd.xlane.f32.xlu1 %v3711_v2 }
 0x6ba   : > { %v3572_v0 = vmul.f32 0.015625, %v3529_v18 }
 0x6bc   : > { %v7704_v32 = vsub.f32 %v7515_v27, %v3572_v0 }
 0x6bd   : > { %v3523_v8 = vpop.xlane.xlu0 %3522  ;;  %3706 = vadd.xlane.f32.xlu1 %v3705_v15  ;;  %v3532_v10 = vpop.xlane.xlu1 %3531 }
 0x6be   : > { %v3570_v24 = vmul.f32 0.015625, %v3523_v8  ;;  %v3573_v7 = vmul.f32 0.015625, %v3532_v10  ;;  %v3636_v59 = vmul.f32 %v7704_v32, %v7704_v32 }
 0x6bf   : > { %3978 = vrot.lane.b32.xlu0 %v5670_v63, %s6091_s15 }
 0x6c0   : > { %v7707_v54 = vsub.f32 %v7519_v55, %v3570_v24  ;;  %v7712_v31 = vsub.f32 %v7521_v3, %v3573_v7  ;;  %v3720_v28 = vsel %vm1660_vm0, %v3636_v59, 0.0 }
 0x6c1   : > { %v3526_v55 = vpop.xlane.xlu1 %3525 }
 0x6c2   : > { %v3634_v17 = vmul.f32 %v7707_v54, %v7707_v54  ;;  %v3637_v27 = vmul.f32 %v7712_v31, %v7712_v31  ;;  %v3571_v47 = vmul.f32 0.015625, %v3526_v55  ;;  %v7755_v55 = vld [vmem:[%s8161_s2 + $0x1] ss:$0 sm:$0xff] }
 0x6c4   : > { %v3714_v21 = vsel %vm1660_vm0, %v3634_v17, 0.0  ;;  %v3723_v3 = vsel %vm1660_vm0, %v3637_v27, 0.0 }
 0x6c5   : > { %3715 = vadd.xlane.f32.xlu1 %v3714_v21 }
 0x6c9   : > { %v3541_v4 = vpop.xlane.xlu0 %3540  ;;  %3721 = vadd.xlane.f32.xlu1 %v3720_v28 }
 0x6ca   : > { %v3576_v57 = vmul.f32 0.015625, %v3541_v4 }
 0x6cc   : > { %v7721_v9 = vsub.f32 %v7539_v13, %v3576_v57 }
 0x6cd   : > { %v3535_v62 = vpop.xlane.xlu0 %3534  ;;  %3724 = vadd.xlane.f32.xlu1 %v3723_v3  ;;  %v3544_v40 = vpop.xlane.xlu1 %3543 }
 0x6ce   : > { %v3574_v33 = vmul.f32 0.015625, %v3535_v62  ;;  %v3640_v22 = vmul.f32 %v7721_v9, %v7721_v9  ;;  %v3577_v29 = vmul.f32 0.015625, %v3544_v40  ;;  %v7763_v40 = vld [vmem:[%s8161_s2 + $0x2] ss:$0 sm:$0xff] }
 0x6d0   : > { %v7727_v20 = vsub.f32 %v7543_v12, %v3574_v33  ;;  %v3732_v23 = vsel %vm1660_vm0, %v3640_v22, 0.0  ;;  %v7733_v16 = vsub.f32 %v7545_v1, %v3577_v29  ;;  %v7740_v12 = vsub.f32 %v7527_v25, %v3571_v47  ;;  %v5671_v29 = vld [vmem:[%s8163_s4 + $0x34] ss:$8 sps:$4 sm:$0xff]  }
 0x6d1   : > { %3733 = vadd.xlane.f32.xlu1 %v3732_v23  ;;  %v3538_v26 = vpop.xlane.xlu1 %3537  ;;  %5484 = vmatprep.subr.bf16.mxu0 %v5671_v29 }
 0x6d2   : > { %v3575_v13 = vmul.f32 0.015625, %v3538_v26  ;;  %v3638_v34 = vmul.f32 %v7727_v20, %v7727_v20  ;;  %v3641_v63 = vmul.f32 %v7733_v16, %v7733_v16  ;;  %v3635_v1 = vmul.f32 %v7740_v12, %v7740_v12  ;;  %5485 = vmatpush3.bf16.msra.mxu0 %v5671_v29  ;;  %v5673_v26 = vld [vmem:[%s8163_s4 + $0x14] ss:$8 sps:$4 sm:$0xff]  }
 0x6d4   : > { %v7736_v61 = vsub.f32 %v7551_v56, %v3575_v13  ;;  %v3726_v2 = vsel %vm1660_vm0, %v3638_v34, 0.0  ;;  %v3735_v56 = vsel %vm1660_vm0, %v3641_v63, 0.0  ;;  %v3717_v0 = vsel %vm1660_vm0, %v3635_v1, 0.0 }
 0x6d5   : > { %3727 = vadd.xlane.f32.xlu1 %v3726_v2 }
 0x6d6   : > { %v3639_v35 = vmul.f32 %v7736_v61, %v7736_v61 }
 0x6d8   : > { %v3729_v18 = vsel %vm1660_vm0, %v3639_v35, 0.0 }
 0x6d9   : > { %3730 = vadd.xlane.f32.xlu1 %v3729_v18 }
 0x6dd   : > { %3736 = vadd.xlane.f32.xlu1 %v3735_v56 }
 0x6de   : > { %3718 = vadd.xlane.f32.xlu0 %v3717_v0 }
 0x6ea   : > { %v3650_v25 = vpop.xlane.xlu0 %3649 }
 0x6eb   : > { %v3740_v63 = vmul.f32 0.015625, %v3650_v25 }
 0x6ee   : > { %v3644_v15 = vpop.xlane.xlu0 %3643  ;;  %v3653_v8 = vpop.xlane.xlu1 %3652 }
 0x6ef   : > { %v3738_v10 = vmul.f32 0.015625, %v3644_v15  ;;  %v3741_v2 = vmul.f32 0.015625, %v3653_v8 }
 0x6f1   : > { %v3770_v24 = vadd.f32 1e-05, %v3738_v10  ;;  %v3773_v56 = vadd.f32 1e-05, %v3741_v2 }
 0x6f2   : > { %v3647_v7 = vpop.xlane.xlu1 %3646 }
 0x6f3   : > { %5867 = vrsqrt.f32 %v3770_v24  ;;  %v3739_v17 = vmul.f32 0.015625, %v3647_v7  ;;  %v3772_v24 = vadd.f32 1e-05, %v3740_v63 }
 0x6f5   : > { %v3771_v21 = vadd.f32 1e-05, %v3739_v17 }
 0x6f7   : > { %5869 = vrsqrt.f32 %v3771_v21 }
 0x6f8   : > { %5871 = vrsqrt.f32 %v3773_v56 }
 0x6fa   : > { %v3662_v47 = vpop.xlane.xlu0 %3661 }
 0x6fe   : > { %v3665_v3 = vpop.xlane.xlu1 %3664  ;;  %v3656_v34 = vpop.xlane.xlu0 %3655 }
 0x6ff   : > { %v3742_v0 = vmul.f32 0.015625, %v3656_v34  ;;  %v3745_v17 = vmul.f32 0.015625, %v3665_v3 }
 0x700   : > { %v5868_v59 = vpop.eup %5867 }
 0x701   : > { %v3834_v28 = vmul.f32 %v5868_v59, %v7561_v60  ;;  %v3774_v7 = vadd.f32 1e-05, %v3742_v0 }
 0x702   : > { %v3659_v23 = vpop.xlane.xlu1 %3658 }
 0x703   : > { %v3870_v57 = vmul.f32 %v7755_v55, %v3834_v28  ;;  %v3743_v35 = vmul.f32 0.015625, %v3659_v23 }
 0x704   : > { %v5870_v27 = vpop.eup %5869 }
 0x705   : > { %v3835_v4 = vmul.f32 %v5870_v27, %v7572_v30  ;;  %v3906_v60 = vadd.f32 %v7763_v40, %v3870_v57  ;;  %v5672_v30 = vld [vmem:[%s8163_s4 + $0x24] ss:$8 sps:$4 sm:$0xff]   ;;  %v3775_v15 = vadd.f32 1e-05, %v3743_v35  ;;  %v3744_v27 = vmul.f32 0.015625, %v3662_v47  ;;  %v5872_v23 = vpop.eup %5871 }
 0x706   : > { %5486 = vmatprep.subr.bf16.mxu0 %v5672_v30  ;;  %v3837_v63 = vmul.f32 %v5872_v23, %v7564_v6 }
 0x707   : > { %v3871_v62 = vmul.f32 %v7755_v55, %v3835_v4  ;;  %5487 = vmatpush3.bf16.msra.mxu0 %v5672_v30  ;;  %5873 = vrsqrt.f32 %v3775_v15  ;;  %v3777_v4 = vadd.f32 1e-05, %v3745_v17 }
 0x708   : > { %5488 = vmatprep.subr.bf16.mxu0 %v5673_v26  ;;  %5875 = vrsqrt.f32 %v3772_v24 }
 0x709   : > { %v3907_v33 = vadd.f32 %v7763_v40, %v3871_v62  ;;  %5877 = vrsqrt.f32 %v3774_v7  ;;  %v3776_v62 = vadd.f32 1e-05, %v3744_v27 }
 0x70a   : > { %v3674_v1 = vpop.xlane.xlu0 %3673  ;;  %5879 = vrsqrt.f32 %v3777_v4 }
 0x70b   : > { %v3938_v22 = vpack.c.bf16 %v3907_v33, %v3906_v60  ;;  %5489 = vmatpush3.bf16.msra.mxu0 %v5673_v26  ;;  %v3748_v29 = vmul.f32 0.015625, %v3674_v1 }
 0x70d   : > { %5452 = vmatprep.mubr.msk.bf16.mxu1 %vm1660_vm0, %v3938_v22  ;;  %v3780_v35 = vadd.f32 1e-05, %v3748_v29 }
 0x70e   : > { %v3677_v13 = vpop.xlane.xlu1 %3676  ;;  %v3668_v21 = vpop.xlane.xlu0 %3667 }
 0x70f   : > { %v3746_v8 = vmul.f32 0.015625, %v3668_v21  ;;  %v3749_v33 = vmul.f32 0.015625, %v3677_v13  ;;  %v3873_v21 = vmul.f32 %v7755_v55, %v3837_v63 }
 0x711   : > { %v3778_v60 = vadd.f32 1e-05, %v3746_v8  ;;  %v3781_v26 = vadd.f32 1e-05, %v3749_v33 }
 0x712   : > { %v3671_v18 = vpop.xlane.xlu1 %3670 }
 0x713   : > { %v3747_v59 = vmul.f32 0.015625, %v3671_v18 }
 0x714   : > { %v5874_v2 = vpop.eup %5873 }
 0x715   : > { %v3779_v57 = vadd.f32 1e-05, %v3747_v59  ;;  %v5876_v18 = vpop.eup %5875  ;;  %v3839_v1 = vmul.f32 %v5874_v2, %v7596_v44 }
 0x716   : > { %v5878_v0 = vpop.eup %5877  ;;  %v3836_v7 = vmul.f32 %v5876_v18, %v7556_v42 }
 0x717   : > { %5881 = vrsqrt.f32 %v3779_v57  ;;  %v3838_v59 = vmul.f32 %v5878_v0, %v7585_v14  ;;  %v5880_v6 = vpop.eup %5879 }
 0x718   : > { %5883 = vrsqrt.f32 %v3776_v62 }
 0x719   : > { %5885 = vrsqrt.f32 %v3778_v60  ;;  %v3909_v60 = vadd.f32 %v7763_v40, %v3873_v21  ;;  %v3874_v33 = vmul.f32 %v7755_v55, %v3838_v59 }
 0x71a   : > { %v3686_v10 = vpop.xlane.xlu1 %3685  ;;  %5887 = vrsqrt.f32 %v3781_v26 }
 0x71b   : > { %v3752_v15 = vmul.f32 0.015625, %v3686_v10  ;;  %v3875_v10 = vmul.f32 %v7755_v55, %v3839_v1  ;;  %v3910_v18 = vadd.f32 %v7763_v40, %v3874_v33 }
 0x71d   : > { %v3784_v27 = vadd.f32 1e-05, %v3752_v15  ;;  %v3911_v23 = vadd.f32 %v7763_v40, %v3875_v10 }
 0x71e   : > { %v3680_v28 = vpop.xlane.xlu1 %3679 }
 0x71f   : > { %v3750_v30 = vmul.f32 0.015625, %v3680_v28 }
 0x721   : > { %v3782_v56 = vadd.f32 1e-05, %v3750_v30 }
 0x722   : > { %v3689_v25 = vpop.xlane.xlu1 %3688 }
 0x723   : > { %v3753_v13 = vmul.f32 0.015625, %v3689_v25  ;;  %v3872_v25 = vmul.f32 %v7755_v55, %v3836_v7 }
 0x724   : > { %v5882_v57 = vpop.eup %5881 }
 0x725   : > { %v3785_v28 = vadd.f32 1e-05, %v3753_v13  ;;  %v5884_v42 = vpop.eup %5883  ;;  %v3843_v26 = vmul.f32 %v5882_v57, %v7620_v41  ;;  %v3908_v2 = vadd.f32 %v7763_v40, %v3872_v25  ;;  %v3940_v41 = vpack.c.bf16 %v3911_v23, %v3910_v18 }
 0x726   : > { %v3683_v22 = vpop.xlane.xlu1 %3682 }
 0x727   : > { %v3751_v3 = vmul.f32 0.015625, %v3683_v22  ;;  %v5886_v22 = vpop.eup %5885 }
 0x728   : > { %v3842_v63 = vmul.f32 %v5886_v22, %v7609_v51  ;;  %v5888_v13 = vpop.eup %5887 }
 0x729   : > { %v3783_v34 = vadd.f32 1e-05, %v3751_v3  ;;  %v3841_v3 = vmul.f32 %v5880_v6, %v7588_v36  ;;  %v3845_v21 = vmul.f32 %v5888_v13, %v7612_v45 }
 0x72a   : > { %v3698_v47 = vpop.xlane.xlu0 %3697  ;;  %v3878_v51 = vmul.f32 %v7755_v55, %v3842_v63 }
 0x72b   : > { %5889 = vrsqrt.f32 %v3783_v34  ;;  %v3756_v34 = vmul.f32 0.015625, %v3698_v47  ;;  %v3877_v0 = vmul.f32 %v7755_v55, %v3841_v3  ;;  %v3879_v47 = vmul.f32 %v7755_v55, %v3843_v26 }
 0x72c   : > { %5891 = vrsqrt.f32 %v3780_v35  ;;  %v3840_v35 = vmul.f32 %v5884_v42, %v7580_v52  ;;  %v3914_v25 = vadd.f32 %v7763_v40, %v3878_v51  ;;  %v3881_v42 = vmul.f32 %v7755_v55, %v3845_v21 }
 0x72d   : > { %5893 = vrsqrt.f32 %v3782_v56  ;;  %v3939_v56 = vpack.c.bf16 %v3909_v60, %v3908_v2  ;;  %v3788_v1 = vadd.f32 1e-05, %v3756_v34  ;;  %v3913_v59 = vadd.f32 %v7763_v40, %v3877_v0 }
 0x72e   : > { %v3692_v24 = vpop.xlane.xlu0 %3691  ;;  %5895 = vrsqrt.f32 %v3785_v28  ;;  %v3876_v52 = vmul.f32 %v7755_v55, %v3840_v35  ;;  %v3917_v2 = vadd.f32 %v7763_v40, %v3881_v42 }
 0x72f   : > { %v3754_v17 = vmul.f32 0.015625, %v3692_v24  ;;  %5897 = vrsqrt.f32 %v3784_v27  ;;  %v3915_v27 = vadd.f32 %v7763_v40, %v3879_v47 }
 0x730   : > { %v3912_v57 = vadd.f32 %v7763_v40, %v3876_v52 }
 0x731   : > { %v3786_v44 = vadd.f32 1e-05, %v3754_v17 }
 0x732   : > { %v3701_v8 = vpop.xlane.xlu0 %3700  ;;  %v3695_v4 = vpop.xlane.xlu1 %3694 }
 0x733   : > { %v3755_v62 = vmul.f32 0.015625, %v3695_v4  ;;  %v3757_v14 = vmul.f32 0.015625, %v3701_v8  ;;  %5899 = vrsqrt.f32 %v3786_v44 }
 0x735   : > { %v3787_v29 = vadd.f32 1e-05, %v3755_v62  ;;  %v3789_v36 = vadd.f32 1e-05, %v3757_v14  ;;  %v3941_v62 = vpack.c.bf16 %v3913_v59, %v3912_v57  ;;  %v3942_v14 = vpack.c.bf16 %v3915_v27, %v3914_v25 }
 0x736   : > { %v3979_v30 = vpop.permute.xlu0 %3978 }
 0x737   : > { %5450 = vmatprep.subr.bf16.mxu1 %v3979_v30  ;;  %5901 = vrsqrt.f32 %v3787_v29 }
 0x738   : > { %5451 = vmatpush3.bf16.msra.mxu1 %v3979_v30  ;;  %v5890_v24 = vpop.eup %5889  ;;  %5903 = vrsqrt.f32 %v3789_v36 }
 0x739   : > { %v5892_v7 = vpop.eup %5891  ;;  %v3847_v8 = vmul.f32 %v5890_v24, %v7642_v48  ;;  %5905 = vrsqrt.f32 %v3788_v1 }
 0x73a   : > { %v3710_v15 = vpop.xlane.xlu1 %3709  ;;  %v5894_v17 = vpop.eup %5893  ;;  %v3844_v4 = vmul.f32 %v5892_v7, %v7604_v43 }
 0x73b   : > { %5453 = vmatmul.mubr.msk.bf16.vlgmr.msra.gmra.mxu1 %vm1660_vm0, %v3939_v56  ;;  %v3760_v28 = vmul.f32 0.015625, %v3710_v15  ;;  %v3846_v44 = vmul.f32 %v5894_v17, %v7633_v19  ;;  %v5896_v60 = vpop.eup %5895  ;;  %v3883_v48 = vmul.f32 %v7755_v55, %v3847_v8 }
 0x73c   : > { %5456 = vmatprep.mubr.msk.bf16.mxu1 %vm1660_vm0, %v3940_v41  ;;  %v5898_v29 = vpop.eup %5897  ;;  %v3880_v3 = vmul.f32 %v7755_v55, %v3844_v4  ;;  %v3849_v26 = vmul.f32 %v5896_v60, %v7636_v50 }
 0x73d   : > { %v3792_v33 = vadd.f32 1e-05, %v3760_v28  ;;  %v3882_v19 = vmul.f32 %v7755_v55, %v3846_v44  ;;  %v3919_v18 = vadd.f32 %v7763_v40, %v3883_v48  ;;  %v3848_v36 = vmul.f32 %v5898_v29, %v7628_v5 }
 0x73e   : > { %v3704_v6 = vpop.xlane.xlu1 %3703  ;;  %v3916_v0 = vadd.f32 %v7763_v40, %v3880_v3  ;;  %v3885_v47 = vmul.f32 %v7755_v55, %v3849_v26 }
 0x73f   : > { %v3758_v10 = vmul.f32 0.015625, %v3704_v6  ;;  %v3918_v13 = vadd.f32 %v7763_v40, %v3882_v19  ;;  %v3884_v5 = vmul.f32 %v7755_v55, %v3848_v36 }
 0x740   : > { %v5900_v30 = vpop.eup %5899  ;;  %v3943_v41 = vpack.c.bf16 %v3917_v2, %v3916_v0  ;;  %v3921_v51 = vadd.f32 %v7763_v40, %v3885_v47 }
 0x741   : > { %v3790_v45 = vadd.f32 1e-05, %v3758_v10  ;;  %v3850_v50 = vmul.f32 %v5900_v30, %v7657_v58  ;;  %v3944_v1 = vpack.c.bf16 %v3919_v18, %v3918_v13  ;;  %v3920_v28 = vadd.f32 %v7763_v40, %v3884_v5 }
 0x742   : > { %v3713_v22 = vpop.xlane.xlu1 %3712 }
 0x743   : > { %v3761_v43 = vmul.f32 0.015625, %v3713_v22  ;;  %5457 = vmatmul.mubr.msk.bf16.gmra.mxu1 %vm1660_vm0, %v3941_v62  ;;  %5907 = vrsqrt.f32 %v3790_v45  ;;  %v3886_v7 = vmul.f32 %v7755_v55, %v3850_v50  ;;  %v3945_v27 = vpack.c.bf16 %v3921_v51, %v3920_v28 }
 0x744   : > { %5460 = vmatprep.mubr.msk.bf16.mxu1 %vm1660_vm0, %v3942_v14  ;;  %v5902_v23 = vpop.eup %5901  ;;  %5909 = vrsqrt.f32 %v3792_v33 }
 0x745   : > { %v3793_v34 = vadd.f32 1e-05, %v3761_v43  ;;  %v3851_v63 = vmul.f32 %v5902_v23, %v7666_v46  ;;  %v5904_v24 = vpop.eup %5903  ;;  %v3922_v6 = vadd.f32 %v7763_v40, %v3886_v7 }
 0x746   : > { %v3707_v35 = vpop.xlane.xlu1 %3706  ;;  %v5906_v46 = vpop.eup %5905  ;;  %v3853_v58 = vmul.f32 %v5904_v24, %v7660_v53 }
 0x747   : > { %5911 = vrsqrt.f32 %v3793_v34  ;;  %v3759_v56 = vmul.f32 0.015625, %v3707_v35  ;;  %v3887_v52 = vmul.f32 %v7755_v55, %v3851_v63  ;;  %v3852_v59 = vmul.f32 %v5906_v46, %v7651_v39 }
 0x748   : > { %v3889_v8 = vmul.f32 %v7755_v55, %v3853_v58 }
 0x749   : > { %v3791_v15 = vadd.f32 1e-05, %v3759_v56  ;;  %v3923_v21 = vadd.f32 %v7763_v40, %v3887_v52  ;;  %v3888_v53 = vmul.f32 %v7755_v55, %v3852_v59 }
 0x74a   : > { %v3925_v45 = vadd.f32 %v7763_v40, %v3889_v8 }
 0x74b   : > { %5913 = vrsqrt.f32 %v3791_v15  ;;  %5461 = vmatmul.mubr.msk.bf16.gmra.mxu1 %vm1660_vm0, %v3943_v41  ;;  %v3946_v57 = vpack.c.bf16 %v3923_v21, %v3922_v6  ;;  %v3924_v33 = vadd.f32 %v7763_v40, %v3888_v53 }
 0x74c   : > { %5464 = vmatprep.mubr.msk.bf16.mxu1 %vm1660_vm0, %v3944_v1 }
 0x74d   : > { %v3947_v14 = vpack.c.bf16 %v3925_v45, %v3924_v33 }
 0x74e   : > { %v3716_v17 = vpop.xlane.xlu1 %3715 }
 0x74f   : > { %v3762_v30 = vmul.f32 0.015625, %v3716_v17 }
 0x750   : > { %v5908_v4 = vpop.eup %5907 }
 0x751   : > { %v5910_v25 = vpop.eup %5909  ;;  %v3854_v62 = vmul.f32 %v5908_v4, %v7681_v37  ;;  %v3794_v18 = vadd.f32 1e-05, %v3762_v30  ;;  %v5674_v30 = vld [vmem:[%s8163_s4 + $0x4] ss:$8 sps:$4 sm:$0xff]  }
 0x752   : > { %v3722_v10 = vpop.xlane.xlu1 %3721  ;;  %v3856_v60 = vmul.f32 %v5910_v25, %v7676_v38  ;;  %5490 = vmatprep.subr.bf16.mxu0 %v5674_v30 }
 0x753   : > { %5465 = vmatmul.mubr.msk.bf16.gmra.mxu1 %vm1660_vm0, %v3945_v27  ;;  %v3890_v29 = vmul.f32 %v7755_v55, %v3854_v62  ;;  %5915 = vrsqrt.f32 %v3794_v18  ;;  %5491 = vmatpush3.bf16.msra.mxu0 %v5674_v30 }
 0x754   : > { %v5912_v44 = vpop.eup %5911  ;;  %5468 = vmatprep.mubr.msk.bf16.mxu1 %vm1660_vm0, %v3946_v57  ;;  %v3892_v37 = vmul.f32 %v7755_v55, %v3856_v60 }
 0x755   : > { %v3857_v39 = vmul.f32 %v5912_v44, %v7684_v11  ;;  %v3926_v38 = vadd.f32 %v7763_v40, %v3890_v29 }
 0x756   : > { %v3725_v42 = vpop.xlane.xlu1 %3724  ;;  %v3928_v35 = vadd.f32 %v7763_v40, %v3892_v37 }
 0x757   : > { %v3893_v43 = vmul.f32 %v7755_v55, %v3857_v39  ;;  %v3765_v19 = vmul.f32 0.015625, %v3725_v42 }
 0x758   : > { %v5914_v22 = vpop.eup %5913 }
 0x759   : > { %v3855_v48 = vmul.f32 %v5914_v22, %v7690_v49  ;;  %v3929_v26 = vadd.f32 %v7763_v40, %v3893_v43  ;;  %v3764_v49 = vmul.f32 0.015625, %v3722_v10  ;;  %v3797_v36 = vadd.f32 1e-05, %v3765_v19  ;;  %v7888_v19 = vld [vmem:[%s8161_s2 + $0x3] ss:$0 sm:$0xff] }
 0x75a   : > { %v3734_v3 = vpop.xlane.xlu1 %3733 }
 0x75b   : > { %5469 = vmatmul.mubr.msk.bf16.gmra.mxu1 %vm1660_vm0, %v3947_v14  ;;  %v3891_v11 = vmul.f32 %v7755_v55, %v3855_v48  ;;  %v3949_v56 = vpack.c.bf16 %v3929_v26, %v3928_v35  ;;  %v3796_v0 = vadd.f32 1e-05, %v3764_v49  ;;  %5917 = vrsqrt.f32 %v3797_v36 }
 0x75c   : > { %v3768_v24 = vmul.f32 0.015625, %v3734_v3 }
 0x75d   : > { %v3927_v23 = vadd.f32 %v7763_v40, %v3891_v11  ;;  %5919 = vrsqrt.f32 %v3796_v0 }
 0x75e   : > { %v3728_v34 = vpop.xlane.xlu1 %3727  ;;  %v3800_v58 = vadd.f32 1e-05, %v3768_v24 }
 0x75f   : > { %v3948_v2 = vpack.c.bf16 %v3927_v23, %v3926_v38  ;;  %v3766_v63 = vmul.f32 0.015625, %v3728_v34 }
 0x760   : > { %v5916_v51 = vpop.eup %5915 }
 0x761   : > { %5472 = vmatprep.mubr.msk.bf16.mxu1 %vm1660_vm0, %v3948_v2  ;;  %v3798_v15 = vadd.f32 1e-05, %v3766_v63  ;;  %v3858_v27 = vmul.f32 %v5916_v51, %v7707_v54 }
 0x762   : > { %v3731_v13 = vpop.xlane.xlu1 %3730 }
 0x763   : > { %v3767_v50 = vmul.f32 0.015625, %v3731_v13  ;;  %5473 = vmatmul.mubr.msk.bf16.gmra.mxu1 %vm1660_vm0, %v3949_v56  ;;  %v3894_v39 = vmul.f32 %v7755_v55, %v3858_v27 }
 0x765   : > { %v3799_v41 = vadd.f32 1e-05, %v3767_v50  ;;  %v3930_v42 = vadd.f32 %v7763_v40, %v3894_v39 }
 0x766   : > { %v3737_v47 = vpop.xlane.xlu1 %3736 }
 0x767   : > { %5921 = vrsqrt.f32 %v3799_v41  ;;  %v3769_v1 = vmul.f32 0.015625, %v3737_v47  ;;  %v3719_v52 = vpop.xlane.xlu0 %3718 }
 0x768   : > { %5923 = vrsqrt.f32 %v3798_v15  ;;  %v3763_v5 = vmul.f32 0.015625, %v3719_v52  ;;  %v5918_v17 = vpop.eup %5917 }
 0x769   : > { %v3801_v46 = vadd.f32 1e-05, %v3769_v1  ;;  %v3861_v6 = vmul.f32 %v5918_v17, %v7712_v31 }
 0x76a   : > { %v3795_v7 = vadd.f32 1e-05, %v3763_v5  ;;  %v5920_v21 = vpop.eup %5919 }
 0x76b   : > { %v3860_v4 = vmul.f32 %v5920_v21, %v7704_v32  ;;  %v3897_v25 = vmul.f32 %v7755_v55, %v3861_v6 }
 0x76c   : > { %5925 = vrsqrt.f32 %v3795_v7 }
 0x76d   : > { %5927 = vrsqrt.f32 %v3801_v46  ;;  %v3896_v31 = vmul.f32 %v7755_v55, %v3860_v4 }
 0x76e   : > { %5929 = vrsqrt.f32 %v3800_v58 }
 0x76f   : > { %v3932_v22 = vadd.f32 %v7763_v40, %v3896_v31 }
 0x774   : > { %v5922_v59 = vpop.eup %5921 }
 0x775   : > { %v5924_v28 = vpop.eup %5923  ;;  %v3863_v8 = vmul.f32 %v5922_v59, %v7736_v61 }
 0x776   : > { %v3862_v10 = vmul.f32 %v5924_v28, %v7727_v20  ;;  %v3933_v20 = vadd.f32 %v7763_v40, %v3897_v25 }
 0x777   : > { %v3899_v45 = vmul.f32 %v7755_v55, %v3863_v8 }
 0x778   : > { %v3898_v61 = vmul.f32 %v7755_v55, %v3862_v10  ;;  %v3951_v29 = vpack.c.bf16 %v3933_v20, %v3932_v22 }
 0x779   : > { %v5926_v57 = vpop.eup %5925 }
 0x77a   : > { %v5928_v53 = vpop.eup %5927  ;;  %v3859_v44 = vmul.f32 %v5926_v57, %v7740_v12  ;;  %v3935_v12 = vadd.f32 %v7763_v40, %v3899_v45  ;;  %v3934_v48 = vadd.f32 %v7763_v40, %v3898_v61 }
 0x77b   : > { %v5930_v62 = vpop.eup %5929  ;;  %v3865_v32 = vmul.f32 %v5928_v53, %v7733_v16 }
 0x77c   : > { %v3895_v54 = vmul.f32 %v7755_v55, %v3859_v44  ;;  %v3864_v33 = vmul.f32 %v5930_v62, %v7721_v9  ;;  %v3952_v16 = vpack.c.bf16 %v3935_v12, %v3934_v48 }
 0x77d   : > { %v3901_v43 = vmul.f32 %v7755_v55, %v3865_v32 }
 0x77e   : > { %v3931_v60 = vadd.f32 %v7763_v40, %v3895_v54  ;;  %v3900_v3 = vmul.f32 %v7755_v55, %v3864_v33 }
 0x77f   : > { %v3937_v11 = vadd.f32 %v7763_v40, %v3901_v43 }
 0x780   : > { %v3950_v14 = vpack.c.bf16 %v3931_v60, %v3930_v42  ;;  %v3936_v9 = vadd.f32 %v7763_v40, %v3900_v3 }
 0x782   : > { %5476 = vmatprep.mubr.msk.bf16.mxu1 %vm1660_vm0, %v3950_v14  ;;  %v3953_v37 = vpack.c.bf16 %v3937_v11, %v3936_v9 }
 0x783   : > { %5477 = vmatmul.mubr.msk.bf16.gmra.mxu1 %vm1660_vm0, %v3951_v29 }
 0x784   : > { %5480 = vmatprep.mubr.msk.bf16.mxu1 %vm1660_vm0, %v3952_v16 }
 0x78b   : > { %5481 = vmatmul.mubr.msk.bf16.gmra.mxu1 %vm1660_vm0, %v3953_v37 }
 0x7fb   : > { %v5454_v55 = vpop.f32.mrf.mxu1 }
 0x7fc   : > { %v4081_v38 = vadd.f32 %v5454_v55, %v7888_v19 }
 0x7fd   : > { %v4072_v23 = vpop.f32.mrf.mxu1 }
 0x7fe   : > { %v4073_v40 = vadd.f32 %v7888_v19, %v4072_v23  ;;  %v4233_v26 = vmul.f32 0.70710677, %v4081_v38  ;;  %v4201_v42 = vmul.f32 0.5, %v4081_v38 }
 0x7ff   : > { %v5455_v49 = vpop.f32.mrf.mxu1 }
 0x800   : > { %v4231_v34 = vmul.f32 0.70710677, %v4073_v40  ;;  %v4084_v2 = vadd.f32 %v5455_v49, %v7888_v19  ;;  %v4199_v4 = vmul.f32 0.5, %v4073_v40 }
 0x801   : > { %v4075_v35 = vpop.f32.mrf.mxu1 }
 0x802   : > { %5931 = verf.f32 %v4231_v34  ;;  %v4234_v18 = vmul.f32 0.70710677, %v4084_v2  ;;  %v4076_v63 = vadd.f32 %v7888_v19, %v4075_v35  ;;  %v4202_v31 = vmul.f32 0.5, %v4084_v2 }
 0x803   : > { %5933 = verf.f32 %v4233_v26  ;;  %v5458_v36 = vpop.f32.mrf.mxu1 }
 0x804   : > { %5935 = verf.f32 %v4234_v18  ;;  %v4232_v56 = vmul.f32 0.70710677, %v4076_v63  ;;  %v7895_v0 = vadd.f32 %v5458_v36, %v7888_v19  ;;  %v4200_v61 = vmul.f32 0.5, %v4076_v63 }
 0x805   : > { %v4088_v13 = vpop.f32.mrf.mxu1 }
 0x806   : > { %5937 = verf.f32 %v4232_v56  ;;  %v4089_v50 = vadd.f32 %v7888_v19, %v4088_v13  ;;  %v4237_v15 = vmul.f32 0.70710677, %v7895_v0 }
 0x807   : > { %v5459_v41 = vpop.f32.mrf.mxu1 }
 0x808   : > { %v4235_v47 = vmul.f32 0.70710677, %v4089_v50  ;;  %v4100_v24 = vadd.f32 %v5459_v41, %v7888_v19  ;;  %v4203_v38 = vmul.f32 0.5, %v4089_v50 }
 0x809   : > { %v4091_v1 = vpop.f32.mrf.mxu1 }
 0x80a   : > { %5939 = verf.f32 %v4235_v47  ;;  %v4238_v52 = vmul.f32 0.70710677, %v4100_v24  ;;  %v7901_v5 = vadd.f32 %v7888_v19, %v4091_v1  ;;  %v4206_v18 = vmul.f32 0.5, %v4100_v24 }
 0x80b   : > { %5941 = verf.f32 %v4237_v15  ;;  %v5462_v46 = vpop.f32.mrf.mxu1  ;;  %v4205_v15 = vmul.f32 0.5, %v7895_v0 }
 0x80c   : > { %5943 = verf.f32 %v4238_v52  ;;  %v4236_v7 = vmul.f32 0.70710677, %v7901_v5  ;;  %v7905_v58 = vadd.f32 %v5462_v46, %v7888_v19  ;;  %v4204_v56 = vmul.f32 0.5, %v7901_v5 }
 0x80d   : > { %v4104_v51 = vpop.f32.mrf.mxu1 }
 0x80e   : > { %5945 = verf.f32 %v4236_v7  ;;  %v4241_v17 = vmul.f32 0.70710677, %v7905_v58  ;;  %v7909_v59 = vadd.f32 %v7888_v19, %v4104_v51 }
 0x80f   : > { %v5932_v21 = vpop.eup %5931  ;;  %v5463_v28 = vpop.f32.mrf.mxu1 }
 0x810   : > { %v5934_v6 = vpop.eup %5933  ;;  %v7912_v27 = vadd.f32 %v5463_v28, %v7888_v19  ;;  %v4239_v10 = vmul.f32 0.70710677, %v7909_v59  ;;  %v4295_v25 = vadd.f32 1.0, %v5932_v21  ;;  %5947 = verf.f32 %v4241_v17 }
 0x811   : > { %v5936_v8 = vpop.eup %5935  ;;  %v4107_v57 = vpop.f32.mrf.mxu1  ;;  %v4297_v45 = vadd.f32 1.0, %v5934_v6 }
 0x812   : > { %v4298_v53 = vadd.f32 1.0, %v5936_v8  ;;  %v4242_v44 = vmul.f32 0.70710677, %v7912_v27  ;;  %5949 = verf.f32 %v4239_v10  ;;  %v7917_v62 = vadd.f32 %v7888_v19, %v4107_v57 }
 0x813   : > { %v5938_v39 = vpop.eup %5937  ;;  %v5466_v54 = vpop.f32.mrf.mxu1  ;;  %v4327_v22 = vmul.f32 %v4295_v25, %v4199_v4  ;;  %v4329_v29 = vmul.f32 %v4297_v45, %v4201_v42 }
 0x814   : > { %v4296_v32 = vadd.f32 1.0, %v5938_v39  ;;  %5951 = verf.f32 %v4242_v44  ;;  %v7920_v20 = vadd.f32 %v5466_v54, %v7888_v19  ;;  %v4330_v60 = vmul.f32 %v4298_v53, %v4202_v31 }
 0x815   : > { %v4240_v12 = vmul.f32 0.70710677, %v7917_v62  ;;  %v4120_v33 = vpop.f32.mrf.mxu1  ;;  %v4210_v54 = vmul.f32 0.5, %v7912_v27  ;;  %v4208_v42 = vmul.f32 0.5, %v7917_v62 }
 0x816   : > { %v4328_v14 = vmul.f32 %v4296_v32, %v4200_v61  ;;  %v4245_v43 = vmul.f32 0.70710677, %v7920_v20  ;;  %v7925_v16 = vadd.f32 %v7888_v19, %v4120_v33  ;;  %v4360_v55 = vpack.c.bf16 %v4330_v60, %v4329_v29 }
 0x817   : > { %v5940_v48 = vpop.eup %5939  ;;  %5953 = verf.f32 %v4240_v12  ;;  %v5467_v3 = vpop.f32.mrf.mxu1  ;;  %v4207_v32 = vmul.f32 0.5, %v7909_v59 }
 0x818   : > { %v5942_v11 = vpop.eup %5941  ;;  %v4359_v9 = vpack.c.bf16 %v4328_v14, %v4327_v22  ;;  %v7928_v37 = vadd.f32 %v5467_v3, %v7888_v19  ;;  %v4243_v23 = vmul.f32 0.70710677, %v7925_v16  ;;  %v4299_v26 = vadd.f32 1.0, %v5940_v48 }
 0x819   : > { %v5944_v30 = vpop.eup %5943  ;;  %v4123_v40 = vpop.f32.mrf.mxu1  ;;  %5955 = verf.f32 %v4245_v43  ;;  %v4301_v35 = vadd.f32 1.0, %v5942_v11  ;;  %v4209_v22 = vmul.f32 0.5, %v7905_v58 }
 0x81a   : > { %v4302_v49 = vadd.f32 1.0, %v5944_v30  ;;  %v4246_v34 = vmul.f32 0.70710677, %v7928_v37  ;;  %5492 = vmatprep.mubr.msk.bf16.mxu0 %vm1660_vm0, %v4359_v9  ;;  %5957 = verf.f32 %v4243_v23  ;;  %v7934_v63 = vadd.f32 %v7888_v19, %v4123_v40 }
 0x81b   : > { %v5946_v2 = vpop.eup %5945  ;;  %v5470_v36 = vpop.f32.mrf.mxu1  ;;  %5493 = vmatmul.mubr.msk.bf16.vlgmr.msra.gmra.mxu0 %vm1660_vm0, %v4360_v55  ;;  %v4331_v1 = vmul.f32 %v4299_v26, %v4203_v38  ;;  %v4333_v7 = vmul.f32 %v4301_v35, %v4205_v15 }
 0x81c   : > { %v4300_v13 = vadd.f32 1.0, %v5946_v2  ;;  %5959 = verf.f32 %v4246_v34  ;;  %v7939_v50 = vadd.f32 %v5470_v36, %v7888_v19  ;;  %v4334_v41 = vmul.f32 %v4302_v49, %v4206_v18 }
 0x81d   : > { %v4244_v47 = vmul.f32 0.70710677, %v7934_v63  ;;  %v4136_v24 = vpop.f32.mrf.mxu1  ;;  %v5948_v46 = vpop.eup %5947  ;;  %v4214_v18 = vmul.f32 0.5, %v7928_v37  ;;  %v4211_v36 = vmul.f32 0.5, %v7925_v16 }
 0x81e   : > { %v4332_v52 = vmul.f32 %v4300_v13, %v4204_v56  ;;  %v4249_v51 = vmul.f32 0.70710677, %v7939_v50  ;;  %v7945_v5 = vadd.f32 %v7888_v19, %v4136_v24  ;;  %v4362_v8 = vpack.c.bf16 %v4334_v41, %v4333_v7 }
 0x81f   : > { %5961 = verf.f32 %v4244_v47  ;;  %v5471_v17 = vpop.f32.mrf.mxu1  ;;  %v5950_v21 = vpop.eup %5949  ;;  %v4305_v31 = vadd.f32 1.0, %v5948_v46  ;;  %v4212_v56 = vmul.f32 0.5, %v7934_v63  ;;  %v4213_v41 = vmul.f32 0.5, %v7920_v20 }
 0x820   : > { %v4361_v28 = vpack.c.bf16 %v4332_v52, %v4331_v1  ;;  %v7948_v6 = vadd.f32 %v5471_v17, %v7888_v19  ;;  %v4247_v4 = vmul.f32 0.70710677, %v7945_v5  ;;  %5963 = verf.f32 %v4249_v51 }
 0x821   : > { %v5952_v0 = vpop.eup %5951  ;;  %v4139_v10 = vpop.f32.mrf.mxu1  ;;  %v4303_v44 = vadd.f32 1.0, %v5950_v21  ;;  %v4337_v62 = vmul.f32 %v4305_v31, %v4209_v22  ;;  %v4215_v16 = vmul.f32 0.5, %v7945_v5 }
 0x822   : > { %v4306_v57 = vadd.f32 1.0, %v5952_v0  ;;  %v4250_v25 = vmul.f32 0.70710677, %v7948_v6  ;;  %v7953_v53 = vadd.f32 %v7888_v19, %v4139_v10  ;;  %5496 = vmatprep.mubr.msk.bf16.mxu0 %vm1660_vm0, %v4361_v28  ;;  %5965 = verf.f32 %v4247_v4 }
 0x823   : > { %v5474_v39 = vpop.f32.mrf.mxu1  ;;  %5497 = vmatmul.mubr.msk.bf16.gmra.mxu0 %vm1660_vm0, %v4362_v8  ;;  %v4335_v29 = vmul.f32 %v4303_v44, %v4207_v32  ;;  %v4218_v20 = vmul.f32 0.5, %v7948_v6  ;;  %v4217_v10 = vmul.f32 0.5, %v7939_v50 }
 0x824   : > { %v5954_v45 = vpop.eup %5953  ;;  %5967 = verf.f32 %v4250_v25  ;;  %v4248_v61 = vmul.f32 0.70710677, %v7953_v53  ;;  %v7962_v12 = vadd.f32 %v5474_v39, %v7888_v19  ;;  %v4338_v14 = vmul.f32 %v4306_v57, %v4210_v54 }
 0x825   : > { %v4304_v60 = vadd.f32 1.0, %v5954_v45  ;;  %v4152_v33 = vpop.f32.mrf.mxu1  ;;  %v4216_v8 = vmul.f32 0.5, %v7953_v53 }
 0x826   : > { %5969 = verf.f32 %v4248_v61  ;;  %v7966_v48 = vadd.f32 %v7888_v19, %v4152_v33  ;;  %v5956_v27 = vpop.eup %5955  ;;  %v4253_v3 = vmul.f32 0.70710677, %v7962_v12  ;;  %v4364_v23 = vpack.c.bf16 %v4338_v14, %v4337_v62 }
 0x827   : > { %v4336_v43 = vmul.f32 %v4304_v60, %v4208_v42  ;;  %v5475_v59 = vpop.f32.mrf.mxu1  ;;  %v5958_v11 = vpop.eup %5957  ;;  %v4309_v35 = vadd.f32 1.0, %v5956_v27  ;;  %v4221_v14 = vmul.f32 0.5, %v7962_v12 }
 0x828   : > { %v4251_v9 = vmul.f32 0.70710677, %v7966_v48  ;;  %v4164_v30 = vadd.f32 %v5475_v59, %v7888_v19  ;;  %5971 = verf.f32 %v4253_v3  ;;  %v4307_v49 = vadd.f32 1.0, %v5958_v11 }
 0x829   : > { %v5960_v55 = vpop.eup %5959  ;;  %v4363_v38 = vpack.c.bf16 %v4336_v43, %v4335_v29  ;;  %v4155_v58 = vpop.f32.mrf.mxu1  ;;  %v4341_v7 = vmul.f32 %v4309_v35, %v4213_v41  ;;  %v4219_v50 = vmul.f32 0.5, %v7966_v48 }
 0x82a   : > { %v4310_v40 = vadd.f32 1.0, %v5960_v55  ;;  %v4254_v26 = vmul.f32 0.70710677, %v4164_v30  ;;  %5973 = verf.f32 %v4251_v9  ;;  %v4156_v34 = vadd.f32 %v7888_v19, %v4155_v58 }
 0x82b   : > { %5500 = vmatprep.mubr.msk.bf16.mxu0 %vm1660_vm0, %v4363_v38  ;;  %v4339_v1 = vmul.f32 %v4307_v49, %v4211_v36  ;;  %v4222_v60 = vmul.f32 0.5, %v4164_v30 }
 0x82c   : > { %v5962_v2 = vpop.eup %5961  ;;  %5975 = verf.f32 %v4254_v26  ;;  %5501 = vmatmul.mubr.msk.bf16.gmra.mxu0 %vm1660_vm0, %v4364_v23  ;;  %v4252_v15 = vmul.f32 0.70710677, %v4156_v34  ;;  %v4342_v47 = vmul.f32 %v4310_v40, %v4214_v18  ;;  %v4220_v33 = vmul.f32 0.5, %v4156_v34 }
 0x82d   : > { %v4308_v13 = vadd.f32 1.0, %v5962_v2  ;;  %v5964_v24 = vpop.eup %5963 }
 0x82e   : > { %5977 = verf.f32 %v4252_v15  ;;  %v4366_v17 = vpack.c.bf16 %v4342_v47, %v4341_v7  ;;  %v4313_v63 = vadd.f32 1.0, %v5964_v24 }
 0x82f   : > { %v4340_v52 = vmul.f32 %v4308_v13, %v4212_v56  ;;  %v5966_v46 = vpop.eup %5965 }
 0x830   : > { %v4311_v21 = vadd.f32 1.0, %v5966_v46  ;;  %v4345_v31 = vmul.f32 %v4313_v63, %v4217_v10 }
 0x831   : > { %v5968_v51 = vpop.eup %5967  ;;  %v4365_v37 = vpack.c.bf16 %v4340_v52, %v4339_v1 }
 0x832   : > { %v4314_v28 = vadd.f32 1.0, %v5968_v51  ;;  %v4343_v57 = vmul.f32 %v4311_v21, %v4215_v16 }
 0x833   : > { %v5970_v0 = vpop.eup %5969  ;;  %5504 = vmatprep.mubr.msk.bf16.mxu0 %vm1660_vm0, %v4365_v37 }
 0x834   : > { %v4312_v4 = vadd.f32 1.0, %v5970_v0  ;;  %5505 = vmatmul.mubr.msk.bf16.gmra.mxu0 %vm1660_vm0, %v4366_v17  ;;  %v4346_v25 = vmul.f32 %v4314_v28, %v4218_v20 }
 0x835   : > { %v5972_v39 = vpop.eup %5971 }
 0x836   : > { %v4344_v44 = vmul.f32 %v4312_v4, %v4216_v8  ;;  %v4368_v61 = vpack.c.bf16 %v4346_v25, %v4345_v31  ;;  %v4317_v53 = vadd.f32 1.0, %v5972_v39 }
 0x837   : > { %v5974_v45 = vpop.eup %5973 }
 0x838   : > { %v4367_v54 = vpack.c.bf16 %v4344_v44, %v4343_v57  ;;  %v4315_v6 = vadd.f32 1.0, %v5974_v45  ;;  %v4349_v3 = vmul.f32 %v4317_v53, %v4221_v14 }
 0x839   : > { %v5976_v5 = vpop.eup %5975 }
 0x83a   : > { %v4318_v32 = vadd.f32 1.0, %v5976_v5  ;;  %5508 = vmatprep.mubr.msk.bf16.mxu0 %vm1660_vm0, %v4367_v54  ;;  %v4347_v29 = vmul.f32 %v4315_v6, %v4219_v50 }
 0x83b   : > { %v5978_v42 = vpop.eup %5977 }
 0x83c   : > { %5509 = vmatmul.mubr.msk.bf16.gmra.mxu0 %vm1660_vm0, %v4368_v61  ;;  %v4316_v22 = vadd.f32 1.0, %v5978_v42  ;;  %v4350_v27 = vmul.f32 %v4318_v32, %v4222_v60 }
 0x83e   : > { %v4348_v43 = vmul.f32 %v4316_v22, %v4220_v33  ;;  %v4370_v11 = vpack.c.bf16 %v4350_v27, %v4349_v3 }
 0x840   : > { %v4369_v59 = vpack.c.bf16 %v4348_v43, %v4347_v29  ;;  %v8006_v43 = vld [vmem:[%s8161_s2 + $0x4] ss:$0 sm:$0xff] }
 0x842   : > { %5512 = vmatprep.mubr.msk.bf16.mxu0 %vm1660_vm0, %v4369_v59 }
 0x843   : > { %v5478_v62 = vpop.f32.mrf.mxu1 }
 0x844   : > { %v4177_v9 = vadd.f32 %v5478_v62, %v7888_v19  ;;  %5513 = vmatmul.mubr.msk.bf16.gmra.mxu0 %vm1660_vm0, %v4370_v11  ;;  %v5996_v62 = vld [vmem:[#allocation5 + $0x10] sm:$0xff] }
 0x845   : > { %v4168_v30 = vpop.f32.mrf.mxu1 }
 0x846   : > { %v4169_v48 = vadd.f32 %v7888_v19, %v4168_v30  ;;  %v4257_v55 = vmul.f32 0.70710677, %v4177_v9  ;;  %v4225_v20 = vmul.f32 0.5, %v4177_v9 }
 0x847   : > { %v5479_v38 = vpop.f32.mrf.mxu1 }
 0x848   : > { %v4255_v58 = vmul.f32 0.70710677, %v4169_v48  ;;  %v4180_v12 = vadd.f32 %v5479_v38, %v7888_v19  ;;  %v4223_v0 = vmul.f32 0.5, %v4169_v48 }
 0x849   : > { %v4171_v23 = vpop.f32.mrf.mxu1 }
 0x84a   : > { %5979 = verf.f32 %v4255_v58  ;;  %v4258_v40 = vmul.f32 0.70710677, %v4180_v12  ;;  %v4172_v26 = vadd.f32 %v7888_v19, %v4171_v23  ;;  %v4226_v28 = vmul.f32 0.5, %v4180_v12  ;;  %v5998_v23 = vld [vmem:[#allocation5 + $0x18] sm:$0xff] }
 0x84b   : > { %5981 = verf.f32 %v4257_v55  ;;  %v5482_v49 = vpop.f32.mrf.mxu1  ;;  %v5997_v55 = vld [vmem:[#allocation5] sm:$0xff] }
 0x84c   : > { %5983 = verf.f32 %v4258_v40  ;;  %v4256_v34 = vmul.f32 0.70710677, %v4172_v26  ;;  %v4193_v2 = vadd.f32 %v5482_v49, %v7888_v19  ;;  %v4224_v16 = vmul.f32 0.5, %v4172_v26 }
 0x84d   : > { %v4184_v35 = vpop.f32.mrf.mxu1 }
 0x84e   : > { %5985 = verf.f32 %v4256_v34  ;;  %v4185_v18 = vadd.f32 %v7888_v19, %v4184_v35  ;;  %v4261_v36 = vmul.f32 0.70710677, %v4193_v2  ;;  %v4229_v60 = vmul.f32 0.5, %v4193_v2  ;;  %v5999_v34 = vld [vmem:[#allocation5 + $0x8] sm:$0xff] }
 0x84f   : > { %v5483_v56 = vpop.f32.mrf.mxu1 }
 0x850   : > { %v4259_v13 = vmul.f32 0.70710677, %v4185_v18  ;;  %v4196_v15 = vadd.f32 %v5483_v56, %v7888_v19  ;;  %v4227_v6 = vmul.f32 0.5, %v4185_v18 }
 0x851   : > { %v4187_v41 = vpop.f32.mrf.mxu1 }
 0x852   : > { %5987 = verf.f32 %v4259_v13  ;;  %v4262_v47 = vmul.f32 0.70710677, %v4196_v15  ;;  %v4188_v24 = vadd.f32 %v7888_v19, %v4187_v41  ;;  %v4230_v32 = vmul.f32 0.5, %v4196_v15  ;;  %v6001_v41 = vld [vmem:[#allocation5 + $0x20] sm:$0xff] }
 0x853   : > { %5989 = verf.f32 %v4261_v36  ;;  %v6000_v36 = vld [vmem:[#allocation5 + $0x30] sm:$0xff] }
 0x854   : > { %5991 = verf.f32 %v4262_v47  ;;  %v4260_v1 = vmul.f32 0.70710677, %v4188_v24  ;;  %v4228_v42 = vmul.f32 0.5, %v4188_v24 }
 0x856   : > { %5993 = verf.f32 %v4260_v1 }
 0x857   : > { %v5980_v52 = vpop.eup %5979 }
 0x858   : > { %v5982_v46 = vpop.eup %5981  ;;  %v4319_v51 = vadd.f32 1.0, %v5980_v52  ;;  %v6002_v52 = vld [vmem:[#allocation5 + $0x38] sm:$0xff] }
 0x859   : > { %v5984_v7 = vpop.eup %5983  ;;  %v4321_v21 = vadd.f32 1.0, %v5982_v46 }
 0x85a   : > { %v4322_v37 = vadd.f32 1.0, %v5984_v7  ;;  %v4351_v4 = vmul.f32 %v4319_v51, %v4223_v0  ;;  %v6003_v51 = vld [vmem:[#allocation5 + $0x28] sm:$0xff]  ;;  %v6004_v0 = vld [vmem:[#allocation5 + $0x50] sm:$0xff] }
 0x85b   : > { %v5986_v17 = vpop.eup %5985  ;;  %v4353_v57 = vmul.f32 %v4321_v21, %v4225_v20 }
 0x85c   : > { %v4320_v63 = vadd.f32 1.0, %v5986_v17  ;;  %v4354_v8 = vmul.f32 %v4322_v37, %v4226_v28 }
 0x85e   : > { %v4352_v10 = vmul.f32 %v4320_v63, %v4224_v16  ;;  %v4372_v45 = vpack.c.bf16 %v4354_v8, %v4353_v57  ;;  %v6005_v8 = vld [vmem:[#allocation5 + $0x40] sm:$0xff]  ;;  %v6006_v57 = vld [vmem:[#allocation5 + $0x58] sm:$0xff] }
 0x85f   : > { %v5988_v19 = vpop.eup %5987 }
 0x860   : > { %v5990_v25 = vpop.eup %5989  ;;  %v4371_v44 = vpack.c.bf16 %v4352_v10, %v4351_v4  ;;  %v4323_v31 = vadd.f32 1.0, %v5988_v19 }
 0x861   : > { %v5992_v39 = vpop.eup %5991  ;;  %v4325_v61 = vadd.f32 1.0, %v5990_v25 }
 0x862   : > { %v4326_v54 = vadd.f32 1.0, %v5992_v39  ;;  %5516 = vmatprep.mubr.msk.bf16.mxu0 %vm1660_vm0, %v4371_v44  ;;  %v4355_v33 = vmul.f32 %v4323_v31, %v4227_v6 }
 0x863   : > { %v5994_v5 = vpop.eup %5993  ;;  %5517 = vmatmul.mubr.msk.bf16.gmra.mxu0 %vm1660_vm0, %v4372_v45  ;;  %v4357_v14 = vmul.f32 %v4325_v61, %v4229_v60  ;;  %v6007_v45 = vld [vmem:[#allocation5 + $0x48] sm:$0xff]  ;;  %v6008_v61 = vld [vmem:[#allocation5 + $0x70] sm:$0xff] }
 0x864   : > { %v4324_v53 = vadd.f32 1.0, %v5994_v5  ;;  %v4358_v50 = vmul.f32 %v4326_v54, %v4230_v32 }
 0x866   : > { %v4356_v22 = vmul.f32 %v4324_v53, %v4228_v42  ;;  %v4374_v29 = vpack.c.bf16 %v4358_v50, %v4357_v14  ;;  %v6009_v53 = vld [vmem:[#allocation5 + $0x60] sm:$0xff] }
 0x868   : > { %v4373_v27 = vpack.c.bf16 %v4356_v22, %v4355_v33  ;;  %v6010_v22 = vld [vmem:[#allocation5 + $0x78] sm:$0xff] }
 0x86a   : > { %5520 = vmatprep.mubr.msk.bf16.mxu0 %vm1660_vm0, %v4373_v27 }
 0x86b   : > { %5521 = vmatmul.mubr.msk.bf16.gmra.mxu0 %vm1660_vm0, %v4374_v29 }
 0x8db   : > { %v5494_v3 = vpop.f32.mrf.mxu0 }
 0x8dc   : > { %v4494_v59 = vadd.f32 %v5494_v3, %v8006_v43  ;;  %v6011_v3 = vld [vmem:[#allocation5 + $0x68] sm:$0xff] }
 0x8dd   : > { %v4485_v11 = vpop.f32.mrf.mxu0 }
 0x8de   : > { %v4614_v9 = vadd.f32 %v5996_v62, %v4494_v59  ;;  %v4486_v30 = vadd.f32 %v8006_v43, %v4485_v11 }
 0x8df   : > { %v5495_v48 = vpop.f32.mrf.mxu0 }
 0x8e0   : > { %4646 = vst.msk [vmem:[%s8012_s26 + $0x10] sm:$0xff] %vm1660_vm0, %v4614_v9  ;;  %v4612_v38 = vadd.f32 %v5997_v55, %v4486_v30  ;;  %v4497_v58 = vadd.f32 %v5495_v48, %v8006_v43  ;;  %v6012_v9 = vld [vmem:[#allocation5 + $0x90] sm:$0xff] }
 0x8e1   : > { %v4488_v12 = vpop.f32.mrf.mxu0 }
 0x8e2   : > { %4644 = vst.msk [vmem:[%s8012_s26] sm:$0xff] %vm1660_vm0, %v4612_v38  ;;  %v4615_v40 = vadd.f32 %v5998_v23, %v4497_v58  ;;  %v4489_v26 = vadd.f32 %v8006_v43, %v4488_v12  ;;  %v6013_v38 = vld [vmem:[#allocation5 + $0x80] sm:$0xff] }
 0x8e3   : > { %v5498_v49 = vpop.f32.mrf.mxu0 }
 0x8e4   : > { %4647 = vst.msk [vmem:[%s8012_s26 + $0x18] sm:$0xff] %vm1660_vm0, %v4615_v40  ;;  %v4613_v2 = vadd.f32 %v5999_v34, %v4489_v26  ;;  %v4510_v35 = vadd.f32 %v5498_v49, %v8006_v43  ;;  %v6014_v40 = vld [vmem:[#allocation5 + $0x98] sm:$0xff] }
 0x8e5   : > { %v4501_v18 = vpop.f32.mrf.mxu0 }
 0x8e6   : > { %4645 = vst.msk [vmem:[%s8012_s26 + $0x8] sm:$0xff] %vm1660_vm0, %v4613_v2  ;;  %v4618_v56 = vadd.f32 %v6000_v36, %v4510_v35  ;;  %v4502_v13 = vadd.f32 %v8006_v43, %v4501_v18  ;;  %v6015_v2 = vld [vmem:[#allocation5 + $0x88] sm:$0xff] }
 0x8e7   : > { %v5499_v15 = vpop.f32.mrf.mxu0 }
 0x8e8   : > { %4650 = vst.msk [vmem:[%s8012_s26 + $0x30] sm:$0xff] %vm1660_vm0, %v4618_v56  ;;  %v4616_v47 = vadd.f32 %v6001_v41, %v4502_v13  ;;  %v4513_v24 = vadd.f32 %v5499_v15, %v8006_v43  ;;  %v6016_v56 = vld [vmem:[#allocation5 + $0xb0] sm:$0xff] }
 0x8e9   : > { %v4504_v1 = vpop.f32.mrf.mxu0 }
 0x8ea   : > { %4648 = vst.msk [vmem:[%s8012_s26 + $0x20] sm:$0xff] %vm1660_vm0, %v4616_v47  ;;  %v4619_v46 = vadd.f32 %v6002_v52, %v4513_v24  ;;  %v4505_v7 = vadd.f32 %v8006_v43, %v4504_v1  ;;  %v6017_v47 = vld [vmem:[#allocation5 + $0xa0] sm:$0xff] }
 0x8ec   : > { %4651 = vst.msk [vmem:[%s8012_s26 + $0x38] sm:$0xff] %vm1660_vm0, %v4619_v46  ;;  %v4617_v37 = vadd.f32 %v6003_v51, %v4505_v7  ;;  %v5502_v17 = vpop.f32.mrf.mxu0  ;;  %v6018_v46 = vld [vmem:[#allocation5 + $0xb8] sm:$0xff] }
 0x8ed   : > { %v4526_v21 = vadd.f32 %v5502_v17, %v8006_v43 }
 0x8ee   : > { %4649 = vst.msk [vmem:[%s8012_s26 + $0x28] sm:$0xff] %vm1660_vm0, %v4617_v37  ;;  %v4517_v28 = vpop.f32.mrf.mxu0  ;;  %v6019_v37 = vld [vmem:[#allocation5 + $0xa8] sm:$0xff] }
 0x8ef   : > { %v4622_v16 = vadd.f32 %v6004_v0, %v4526_v21  ;;  %v4518_v63 = vadd.f32 %v8006_v43, %v4517_v28 }
 0x8f0   : > { %v5503_v20 = vpop.f32.mrf.mxu0 }
 0x8f1   : > { %4654 = vst.msk [vmem:[%s8012_s26 + $0x50] sm:$0xff] %vm1660_vm0, %v4622_v16  ;;  %v4620_v4 = vadd.f32 %v6005_v8, %v4518_v63  ;;  %v4529_v10 = vadd.f32 %v5503_v20, %v8006_v43  ;;  %v6020_v16 = vld [vmem:[#allocation5 + $0xd0] sm:$0xff] }
 0x8f2   : > { %v4520_v19 = vpop.f32.mrf.mxu0 }
 0x8f3   : > { %4652 = vst.msk [vmem:[%s8012_s26 + $0x40] sm:$0xff] %vm1660_vm0, %v4620_v4  ;;  %v4623_v25 = vadd.f32 %v6006_v57, %v4529_v10  ;;  %v4521_v44 = vadd.f32 %v8006_v43, %v4520_v19  ;;  %v6021_v4 = vld [vmem:[#allocation5 + $0xc0] sm:$0xff] }
 0x8f4   : > { %v5506_v39 = vpop.f32.mrf.mxu0 }
 0x8f5   : > { %4655 = vst.msk [vmem:[%s8012_s26 + $0x58] sm:$0xff] %vm1660_vm0, %v4623_v25  ;;  %v4621_v31 = vadd.f32 %v6007_v45, %v4521_v44  ;;  %v4542_v54 = vadd.f32 %v5506_v39, %v8006_v43  ;;  %v6022_v25 = vld [vmem:[#allocation5 + $0xd8] sm:$0xff] }
 0x8f6   : > { %v4533_v5 = vpop.f32.mrf.mxu0 }
 0x8f7   : > { %4653 = vst.msk [vmem:[%s8012_s26 + $0x48] sm:$0xff] %vm1660_vm0, %v4621_v31  ;;  %v4626_v32 = vadd.f32 %v6008_v61, %v4542_v54  ;;  %v4534_v6 = vadd.f32 %v8006_v43, %v4533_v5  ;;  %v6023_v31 = vld [vmem:[#allocation5 + $0xc8] sm:$0xff] }
 0x8f8   : > { %v5507_v42 = vpop.f32.mrf.mxu0 }
 0x8f9   : > { %4658 = vst.msk [vmem:[%s8012_s26 + $0x70] sm:$0xff] %vm1660_vm0, %v4626_v32  ;;  %v4624_v60 = vadd.f32 %v6009_v53, %v4534_v6  ;;  %v4545_v50 = vadd.f32 %v5507_v42, %v8006_v43  ;;  %v6024_v32 = vld [vmem:[#allocation5 + $0xf0] sm:$0xff] }
 0x8fa   : > { %v4536_v33 = vpop.f32.mrf.mxu0 }
 0x8fb   : > { %4656 = vst.msk [vmem:[%s8012_s26 + $0x60] sm:$0xff] %vm1660_vm0, %v4624_v60  ;;  %v4627_v14 = vadd.f32 %v6010_v22, %v4545_v50  ;;  %v4537_v27 = vadd.f32 %v8006_v43, %v4536_v33  ;;  %v6025_v60 = vld [vmem:[#allocation5 + $0xe0] sm:$0xff] }
 0x8fc   : > { %v5510_v29 = vpop.f32.mrf.mxu0 }
 0x8fd   : > { %4659 = vst.msk [vmem:[%s8012_s26 + $0x78] sm:$0xff] %vm1660_vm0, %v4627_v14  ;;  %v4625_v59 = vadd.f32 %v6011_v3, %v4537_v27  ;;  %v4558_v11 = vadd.f32 %v5510_v29, %v8006_v43  ;;  %v6026_v14 = vld [vmem:[#allocation5 + $0xf8] sm:$0xff]  ;;  %v6027_v3 = vld [vmem:[#allocation5 + $0xe8] sm:$0xff] }
 0x8fe   : > { %v4549_v62 = vpop.f32.mrf.mxu0 }
 0x8ff   : > { %4657 = vst.msk [vmem:[%s8012_s26 + $0x68] sm:$0xff] %vm1660_vm0, %v4625_v59  ;;  %v4630_v30 = vadd.f32 %v6012_v9, %v4558_v11  ;;  %v4550_v48 = vadd.f32 %v8006_v43, %v4549_v62 }
 0x900   : > { %v5511_v55 = vpop.f32.mrf.mxu0 }
 0x901   : > { %4662 = vst.msk [vmem:[%s8012_s26 + $0x90] sm:$0xff] %vm1660_vm0, %v4630_v30  ;;  %v4628_v58 = vadd.f32 %v6013_v38, %v4550_v48  ;;  %v4561_v12 = vadd.f32 %v5511_v55, %v8006_v43 }
 0x902   : > { %v4552_v23 = vpop.f32.mrf.mxu0 }
 0x903   : > { %4660 = vst.msk [vmem:[%s8012_s26 + $0x80] sm:$0xff] %vm1660_vm0, %v4628_v58  ;;  %v4631_v26 = vadd.f32 %v6014_v40, %v4561_v12  ;;  %v4553_v49 = vadd.f32 %v8006_v43, %v4552_v23 }
 0x904   : > { %v5514_v34 = vpop.f32.mrf.mxu0 }
 0x905   : > { %4663 = vst.msk [vmem:[%s8012_s26 + $0x98] sm:$0xff] %vm1660_vm0, %v4631_v26  ;;  %v4629_v35 = vadd.f32 %v6015_v2, %v4553_v49  ;;  %v4574_v18 = vadd.f32 %v5514_v34, %v8006_v43 }
 0x906   : > { %v4565_v36 = vpop.f32.mrf.mxu0 }
 0x907   : > { %4661 = vst.msk [vmem:[%s8012_s26 + $0x88] sm:$0xff] %vm1660_vm0, %v4629_v35  ;;  %v4634_v13 = vadd.f32 %v6016_v56, %v4574_v18  ;;  %v4566_v15 = vadd.f32 %v8006_v43, %v4565_v36 }
 0x908   : > { %v5515_v41 = vpop.f32.mrf.mxu0 }
 0x909   : > { %4666 = vst.msk [vmem:[%s8012_s26 + $0xb0] sm:$0xff] %vm1660_vm0, %v4634_v13  ;;  %v4632_v24 = vadd.f32 %v6017_v47, %v4566_v15  ;;  %v4577_v1 = vadd.f32 %v5515_v41, %v8006_v43 }
 0x90a   : > { %v4568_v52 = vpop.f32.mrf.mxu0 }
 0x90b   : > { %4664 = vst.msk [vmem:[%s8012_s26 + $0xa0] sm:$0xff] %vm1660_vm0, %v4632_v24  ;;  %v4635_v7 = vadd.f32 %v6018_v46, %v4577_v1  ;;  %v4569_v51 = vadd.f32 %v8006_v43, %v4568_v52 }
 0x90d   : > { %4667 = vst.msk [vmem:[%s8012_s26 + $0xb8] sm:$0xff] %vm1660_vm0, %v4635_v7  ;;  %v4633_v17 = vadd.f32 %v6019_v37, %v4569_v51 }
 0x90f   : > { %4665 = vst.msk [vmem:[%s8012_s26 + $0xa8] sm:$0xff] %vm1660_vm0, %v4633_v17 }
 0x923   : > { %v5518_v21 = vpop.f32.mrf.mxu0 }
 0x924   : > { %v4590_v28 = vadd.f32 %v5518_v21, %v8006_v43 }
 0x925   : > { %v4581_v0 = vpop.f32.mrf.mxu0 }
 0x926   : > { %v4638_v63 = vadd.f32 %v6020_v16, %v4590_v28  ;;  %v4582_v20 = vadd.f32 %v8006_v43, %v4581_v0 }
 0x927   : > { %v5519_v8 = vpop.f32.mrf.mxu0 }
 0x928   : > { %4670 = vst.msk [vmem:[%s8012_s26 + $0xd0] sm:$0xff] %vm1660_vm0, %v4638_v63  ;;  %v4636_v10 = vadd.f32 %v6021_v4, %v4582_v20  ;;  %v4593_v19 = vadd.f32 %v5519_v8, %v8006_v43 }
 0x929   : > { %v4584_v57 = vpop.f32.mrf.mxu0 }
 0x92a   : > { %4668 = vst.msk [vmem:[%s8012_s26 + $0xc0] sm:$0xff] %vm1660_vm0, %v4636_v10  ;;  %v4639_v44 = vadd.f32 %v6022_v25, %v4593_v19  ;;  %v4585_v39 = vadd.f32 %v8006_v43, %v4584_v57 }
 0x92b   : > { %v5522_v45 = vpop.f32.mrf.mxu0 }
 0x92c   : > { %4671 = vst.msk [vmem:[%s8012_s26 + $0xd8] sm:$0xff] %vm1660_vm0, %v4639_v44  ;;  %v4637_v54 = vadd.f32 %v6023_v31, %v4585_v39  ;;  %v4606_v5 = vadd.f32 %v5522_v45, %v8006_v43 }
 0x92d   : > { %v4597_v61 = vpop.f32.mrf.mxu0 }
 0x92e   : > { %4669 = vst.msk [vmem:[%s8012_s26 + $0xc8] sm:$0xff] %vm1660_vm0, %v4637_v54  ;;  %v4642_v6 = vadd.f32 %v6024_v32, %v4606_v5  ;;  %v4598_v42 = vadd.f32 %v8006_v43, %v4597_v61 }
 0x92f   : > { %v5523_v53 = vpop.f32.mrf.mxu0 }
 0x930   : > { %4674 = vst.msk [vmem:[%s8012_s26 + $0xf0] sm:$0xff] %vm1660_vm0, %v4642_v6  ;;  %v4640_v50 = vadd.f32 %v6025_v60, %v4598_v42  ;;  %v4609_v33 = vadd.f32 %v5523_v53, %v8006_v43 }
 0x931   : > { %v4600_v22 = vpop.f32.mrf.mxu0 }
 0x932   : > { %4672 = vst.msk [vmem:[%s8012_s26 + $0xe0] sm:$0xff] %vm1660_vm0, %v4640_v50  ;;  %v4643_v27 = vadd.f32 %v6026_v14, %v4609_v33  ;;  %v4601_v29 = vadd.f32 %v8006_v43, %v4600_v22 }
 0x934   : > { %4675 = vst.msk [vmem:[%s8012_s26 + $0xf8] sm:$0xff] %vm1660_vm0, %v4643_v27  ;;  %v4641_v59 = vadd.f32 %v6027_v3, %v4601_v29 }
 0x936   : > { %4673 = vst.msk [vmem:[%s8012_s26 + $0xe8] sm:$0xff] %vm1660_vm0, %v4641_v59 }
 0x937   : > { %6041 = shalt.err (!%p6038_p3)
}
 0x938   : > { %s6042_s14 = scalar_lea.hbm %s8109_s10, 4096  ;;  %s6046_s23 = scalar_lea.hbm %s8164_s5, 8192 }
 0x939   : > { %p6043_p4 = scmp.ne.s32.totalorder %s8109_s10, %s6042_s14  ;;  %p6047_p9 = scmp.lt.s32.totalorder %s8109_s10, %s8164_s5 }
 0x93a   : > { %p6048_p10 = scmp.lt.s32.totalorder %s6046_s23, %s6042_s14 }
 0x93b   : > { %p6044_p7 = pnand %p6043_p4, %p6163_p5 }
 0x93c   : > { %p6049_p11 = por %p6048_p10, %p6047_p9 }
 0x93d   : > { %p6045_p8 = pneg %p6044_p7 }
 0x93f   : > { %p6050_p12 = pnand %p6049_p11, %p6045_p8 }
 0x941   : > { %6053 = shalt.err (!%p6050_p12)
}
 0x942   : > { %s6093_s26 = smov 128   ;;  %s6094_s30 = smov 8  }
 0x943   : > { %5548 = dma.vmem_to_hbm [thread:$0]  (%p6163_p5), %s8111_s6, 4096, %s8109_s10, %s8119_s22, %s6093_s26, %s6093_s26, %s6094_s30  }
 0x944 PF: > { %p5554_p13 = scmp.ge.s32.totalorder %s6088_s21, 2  ;;  %s4705_s7 = sand.u32 1, %s6076_s18  }
 0x945   : > { %s4706_s8 = scalar_lea.sflag [#allocation7], %s4705_s7 }
 0x946   : > { %p5551_p0 = pnand %p5554_p13, %p6167_p6 }
 0x948   : > { %p5552_p1 = pneg %p5551_p0 }
 0x94a   : > { %6071 = dma.done.wait (%p5552_p1), %s4706_s8, 4096  }
 0x94b   : > { %6073 = vsyncadd (%p5552_p1), %s4706_s8, 4294963200  ;;  %p15_p2 = scmp.ge.s32.totalorder %s6150_s24, 4   ;;  %s8212_s18 = smov %s6080_s19 }
 0x94c   : > { %s8213_s19 = smov %s6084_s20  ;;  %s8214_s20 = smov %s6161_s27 }
 0x94d   : > { %s8215_s21 = smov %s6150_s24  ;;  %17 = sbr.rel (!%p15_p2) target bundleno = 3 (0x3), region = 75 }
 0x952   :  { %4711 = vsyncpa [#allocation7], 1 }
 0x953   :  { %4713 = vsyncpa [#allocation7 + $0x1], 1 }

</bundles_post_ra>
